<compile_context>
chip_gen: v7x
topology: tpu7x:2x2x1
jax: 0.10.0
libtpu: 0.0.40
codegen_flags: <defaults>
</compile_context>

<pallas_src>
import functools
import math

import jax
import jax.numpy as jnp
from jax.experimental import pallas as pl
from jax.experimental.pallas import tpu as pltpu


def _round_up(x, m):
    return (x + m - 1) // m * m


# ----------------------------------------------------------------------------
# Fused conv3x3(pad=1) + bias + ReLU + maxpool2x2 block kernel.
#   x_ref : (1, 4, L, Cin_p)   bf16  -- 4 parity planes, spatially flattened
#   w_ref : (9, Cin_p, Cout_p) bf16  -- per-tap weights
#   b_ref : (1, Cout_p)        f32
#   o_ref : (1, M, Cout_p)     bf16  -- pooled activations, M = Ho*(Wo+1)
# For pooled output (r, c), quadrant (pi, pj), tap (di, dj) the needed input
# pixel lives in parity plane ((pi+di)%2, (pj+dj)%2) at flat offset
# ((pi+di)//2)*(Wo+1) + (pj+dj)//2 + r*(Wo+1) + c, i.e. a contiguous slice of
# that plane; the extra column per row (c == Wo) is garbage and dropped by the
# wrapper.
# ----------------------------------------------------------------------------
def _conv_block_kernel(x_ref, w_ref, b_ref, o_ref, *, Ho, Wo):
    Wq = Wo + 1
    M = Ho * Wq
    pooled = None
    # NOTE: for real 512-channel VGG blocks the 4 quadrants could be stacked
    # along M to get one long MXU stream per tap instead of 4 short ones.
    for pi in (0, 1):
        for pj in (0, 1):
            acc = None
            for di in range(3):
                for dj in range(3):
                    roff, a = divmod(pi + di, 2)
                    coff, b = divmod(pj + dj, 2)
                    lhs = x_ref[0, 2 * a + b, pl.ds(roff * Wq + coff, M), :]
                    d = jnp.dot(lhs, w_ref[3 * di + dj],
                                preferred_element_type=jnp.float32)
                    acc = d if acc is None else acc + d
            pooled = acc if pooled is None else jnp.maximum(pooled, acc)
    # relu(maxpool(conv + b)) == maxpool(relu(conv + b)) since relu is monotone
    o_ref[0] = jnp.maximum(pooled + b_ref[...], 0.0).astype(o_ref.dtype)


def conv_block(x_nhwc, w_taps, b_pad, cout):
    """One VGG block: conv3x3(pad=1,stride=1) + ReLU + maxpool2x2, fused."""
    N, H, W, C = x_nhwc.shape
    assert H % 2 == 0 and W % 2 == 0  # torch floor-mode pool; even sizes only
    Ho, Wo = H // 2, W // 2
    _, Cin_p, Cout_p = w_taps.shape
    Hq, Wq = Ho + 2, Wo + 1           # +2 bottom zero-rows absorb tap overrun
    L = Hq * Wq                       # flattened parity-plane length
    M = Ho * Wq                       # rows computed per image (1 junk col/row)

    # XLA glue (O(activation), bf16): spatial+channel pad, 4 parity planes.
    xp = jnp.pad(x_nhwc.astype(jnp.bfloat16),
                 ((0, 0), (1, 3), (1, 1), (0, Cin_p - C)))
    planes = jnp.stack(
        [xp[:, a::2, b::2, :].reshape(N, L, Cin_p)
         for a in (0, 1) for b in (0, 1)], axis=1)           # (N, 4, L, Cin_p)

    flops = 2 * 36 * N * M * Cin_p * Cout_p
    bytes_accessed = (N * 4 * L * Cin_p * 2 + w_taps.size * 2
                      + b_pad.size * 4 + N * M * Cout_p * 2)

    out = pl.pallas_call(
        functools.partial(_conv_block_kernel, Ho=Ho, Wo=Wo),
        out_shape=jax.ShapeDtypeStruct((N, M, Cout_p), jnp.bfloat16),
        grid=(N,),
        in_specs=[
            pl.BlockSpec((1, 4, L, Cin_p), lambda n: (n, 0, 0, 0)),
            pl.BlockSpec((9, Cin_p, Cout_p), lambda n: (0, 0, 0)),
            pl.BlockSpec((1, Cout_p), lambda n: (0, 0)),
        ],
        out_specs=pl.BlockSpec((1, M, Cout_p), lambda n: (n, 0, 0)),
        compiler_params=pltpu.CompilerParams(
            dimension_semantics=("parallel",)),
        cost_estimate=pl.CostEstimate(flops=int(flops), transcendentals=0,
                                      bytes_accessed=int(bytes_accessed)),
    )(planes, w_taps, b_pad)

    # Drop the per-row garbage column and any channel padding (tiny slice).
    return out.reshape(N, Ho, Wq, Cout_p)[:, :, :Wo, :cout]


# ----------------------------------------------------------------------------
# Fused classifier tail: cls0 -> ReLU -> cls3 -> ReLU -> bottleneck -> fc
# (Dropout layers are identity in eval.)  Two outputs: (features, logits).
# TODO(synk): real VGG classifier sizes (25088x4096, 4096x4096) need a K-tiled
# accumulator grid instead of fully VMEM-resident weights.
# ----------------------------------------------------------------------------
def _classifier_kernel(x_ref, w0_ref, b0_ref, w1_ref, b1_ref, w2_ref, b2_ref,
                       w3_ref, b3_ref, feat_ref, logit_ref):
    h = jnp.dot(x_ref[...], w0_ref[...], preferred_element_type=jnp.float32)
    h = jnp.maximum(h + b0_ref[...], 0.0)
    h = jnp.dot(h.astype(jnp.bfloat16), w1_ref[...],
                preferred_element_type=jnp.float32)
    h = jnp.maximum(h + b1_ref[...], 0.0)
    feat = jnp.dot(h.astype(jnp.bfloat16), w2_ref[...],
                   preferred_element_type=jnp.float32) + b2_ref[...]
    logits = jnp.dot(feat.astype(jnp.bfloat16), w3_ref[...],
                     preferred_element_type=jnp.float32) + b3_ref[...]
    feat_ref[...] = feat
    logit_ref[...] = logits


def classifier_fused(flat, prepared):
    M, K = flat.shape
    w0, b0 = prepared["cls0"]
    w1, b1 = prepared["cls3"]
    w2, b2 = prepared["bottleneck"]
    w3, b3 = prepared["fc"]
    Kp0 = w0.shape[0]
    Nf, Nl = w2.shape[1], w3.shape[1]

    Mp8 = _round_up(M, 8)
    tm = min(256, Mp8)
    Mp = _round_up(Mp8, tm)
    xp = jnp.pad(flat.astype(jnp.bfloat16), ((0, Mp - M), (0, Kp0 - K)))

    def full(shape):
        return pl.BlockSpec(shape, lambda i: (0, 0))

    flops = 2 * Mp * (w0.shape[0] * w0.shape[1] + w1.shape[0] * w1.shape[1]
                      + w2.shape[0] * w2.shape[1] + w3.shape[0] * w3.shape[1])
    bytes_accessed = (Mp * Kp0 * 2 + (w0.size + w1.size + w2.size + w3.size) * 2
                      + (b0.size + b1.size + b2.size + b3.size) * 4
                      + Mp * (Nf + Nl) * 4)

    feat, logits = pl.pallas_call(
        _classifier_kernel,
        out_shape=(jax.ShapeDtypeStruct((Mp, Nf), jnp.float32),
                   jax.ShapeDtypeStruct((Mp, Nl), jnp.float32)),
        grid=(Mp // tm,),
        in_specs=[pl.BlockSpec((tm, Kp0), lambda i: (i, 0)),
                  full(w0.shape), full(b0.shape),
                  full(w1.shape), full(b1.shape),
                  full(w2.shape), full(b2.shape),
                  full(w3.shape), full(b3.shape)],
        out_specs=(pl.BlockSpec((tm, Nf), lambda i: (i, 0)),
                   pl.BlockSpec((tm, Nl), lambda i: (i, 0))),
        compiler_params=pltpu.CompilerParams(
            dimension_semantics=("parallel",)),
        cost_estimate=pl.CostEstimate(flops=int(flops), transcendentals=0,
                                      bytes_accessed=int(bytes_accessed)),
    )(xp, w0, b0, w1, b1, w2, b2, w3, b3)
    return (feat[:M, :prepared["bottleneck_dim"]],
            logits[:M, :prepared["class_num"]])


# ----------------------------------------------------------------------------
# Parameter init (synthetic, mirrors init_weights style) + one-time prep
# ----------------------------------------------------------------------------
def init_params(key):
    keys = jax.random.split(key, 8)

    def kaiming_uniform(k, shape, fan_in):
        bound = math.sqrt(6.0 / fan_in)
        return jax.random.uniform(k, shape, jnp.float32, -bound, bound)

    def xavier_normal(k, shape):
        fan_in, fan_out = shape
        std = math.sqrt(2.0 / (fan_in + fan_out))
        return std * jax.random.normal(k, shape, jnp.float32)

    params = {}
    # mini VGG "features": 3 blocks of [conv3x3 + ReLU + maxpool2x2]
    chans = [(3, 8), (8, 16), (16, 32)]
    convs = []
    for idx, (cin, cout) in enumerate(chans):
        w = kaiming_uniform(keys[idx], (9 * cin, cout), fan_in=9 * cin)
        convs.append((w, jnp.zeros((cout,), jnp.float32)))
    params["convs"] = convs
    # classifier[0..5]: Linear(flat,64) ReLU Dropout Linear(64,64) ReLU Dropout
    params["cls0"] = (xavier_normal(keys[3], (128, 64)), jnp.zeros((64,), jnp.float32))
    params["cls3"] = (xavier_normal(keys[4], (64, 64)), jnp.zeros((64,), jnp.float32))
    # bottleneck + fc (new_cls=True, use_bottleneck=True path)
    params["bottleneck"] = (xavier_normal(keys[5], (64, 32)), jnp.zeros((32,), jnp.float32))
    params["fc"] = (xavier_normal(keys[6], (32, 10)), jnp.zeros((10,), jnp.float32))
    return params


def prepare_params(raw):
    """Reorganize/pad/cast once; done outside the forward."""
    def prep_linear(w, b):
        K, Nn = w.shape
        Kp, Np = _round_up(K, 128), _round_up(Nn, 128)
        wp = jnp.pad(w, ((0, Kp - K), (0, Np - Nn))).astype(jnp.bfloat16)
        bp = jnp.pad(b, ((0, Np - Nn),)).reshape(1, Np).astype(jnp.float32)
        return wp, bp

    def prep_conv(w, b):
        k9, cout = w.shape
        cin = k9 // 9
        cin_p, cout_p = _round_up(cin, 8), _round_up(cout, 8)
        wt = w.reshape(9, cin, cout)                       # tap-major (di*3+dj)
        wt = jnp.pad(wt, ((0, 0), (0, cin_p - cin), (0, cout_p - cout)))
        bp = jnp.pad(b, ((0, cout_p - cout),)).reshape(1, cout_p)
        return wt.astype(jnp.bfloat16), bp.astype(jnp.float32), cout

    prepared = {"convs": [prep_conv(w, b) for (w, b) in raw["convs"]]}
    for name in ("cls0", "cls3", "bottleneck", "fc"):
        prepared[name] = prep_linear(*raw[name])
    prepared["bottleneck_dim"] = raw["bottleneck"][0].shape[1]
    prepared["class_num"] = raw["fc"][0].shape[1]
    return prepared


# ----------------------------------------------------------------------------
# VGGFc.forward : features -> flatten -> classifier -> bottleneck -> fc
# returns (bottleneck_features, logits)
# ----------------------------------------------------------------------------
def vggfc_forward(prepared, x_nchw):
    x = jnp.transpose(x_nchw, (0, 2, 3, 1))          # NCHW -> NHWC
    for w_taps, b_pad, cout in prepared["convs"]:
        x = conv_block(x, w_taps, b_pad, cout)       # conv+ReLU+pool fused
    n = x.shape[0]
    # flatten in torch's (C, H, W) order: x.view(x.size(0), -1) on NCHW tensors
    flat = jnp.transpose(x, (0, 3, 1, 2)).reshape(n, -1)
    return classifier_fused(flat, prepared)


if __name__ == "__main__":
    key = jax.random.PRNGKey(0)
    pkey, xkey = jax.random.split(key)
    raw = init_params(pkey)
    prepared = prepare_params(raw)
    x = jax.random.normal(xkey, (2, 3, 16, 16), jnp.float32)  # NCHW, like torch

    fwd = jax.jit(functools.partial(vggfc_forward, prepared))
    feat, logits = fwd(x)
    jax.block_until_ready((feat, logits))

    assert feat.shape == (2, 32), feat.shape      # bottleneck features
    assert logits.shape == (2, 10), logits.shape  # class logits
    print("KERNEL_OK")
</pallas_src>

<mosaic_0001>
module attributes {stable_mosaic.version = 11 : i64} {
  func.func @_conv_block_kernel(%arg0: i32, %arg1: memref<1x4x90x8xbf16, #tpu.memory_space<vmem>>, %arg2: memref<9x8x8xbf16, #tpu.memory_space<vmem>>, %arg3: memref<1x8xf32, #tpu.memory_space<vmem>>, %arg4: memref<1x72x8xbf16, #tpu.memory_space<vmem>>) attributes {dimension_semantics = [#tpu.dimension_semantics<parallel>], iteration_bounds = array<i64: 2>, scalar_prefetch = 0 : i64, scratch_operands = 0 : i64, tpu.core_type = #tpu.core_type<tc>, window_params = [{transform_indices = @transform_0, window_bounds = array<i64: 1, 4, 90, 8>}, {pipeline_mode = #tpu.pipeline_mode<synchronous>, transform_indices = @transform_1, window_bounds = array<i64: 9, 8, 8>}, {pipeline_mode = #tpu.pipeline_mode<synchronous>, transform_indices = @transform_2, window_bounds = array<i64: 1, 8>}, {transform_indices = @transform_3, window_bounds = array<i64: 1, 72, 8>}]} {
    %c0 = arith.constant 0 : index
    %c0_0 = arith.constant 0 : index
    %c0_1 = arith.constant 0 : index
    %c0_2 = arith.constant 0 : index
    %0 = vector.load %arg1[%c0, %c0_0, %c0_1, %c0_2] : memref<1x4x90x8xbf16, #tpu.memory_space<vmem>>, vector<1x1x72x8xbf16>
    %1 = vector.shape_cast %0 : vector<1x1x72x8xbf16> to vector<72x8xbf16>
    %c0_3 = arith.constant 0 : index
    %c0_4 = arith.constant 0 : index
    %c0_5 = arith.constant 0 : index
    %2 = vector.load %arg2[%c0_3, %c0_4, %c0_5] : memref<9x8x8xbf16, #tpu.memory_space<vmem>>, vector<1x8x8xbf16>
    %3 = vector.shape_cast %2 : vector<1x8x8xbf16> to vector<8x8xbf16>
    %cst = arith.constant dense<0.000000e+00> : vector<72x8xf32>
    %4 = tpu.matmul %1, %3, %cst {dimension_numbers = #tpu.dot_dimension_numbers<[1], [0], [0], [1], [0, 0, 1, 1], [], []>} : vector<72x8xbf16>, vector<8x8xbf16>, vector<72x8xf32> -> vector<72x8xf32>
    %c0_6 = arith.constant 0 : index
    %c1 = arith.constant 1 : index
    %c0_7 = arith.constant 0 : index
    %c0_8 = arith.constant 0 : index
    %5 = vector.load %arg1[%c0_6, %c1, %c0_7, %c0_8] : memref<1x4x90x8xbf16, #tpu.memory_space<vmem>>, vector<1x1x72x8xbf16>
    %6 = vector.shape_cast %5 : vector<1x1x72x8xbf16> to vector<72x8xbf16>
    %c1_9 = arith.constant 1 : index
    %c0_10 = arith.constant 0 : index
    %c0_11 = arith.constant 0 : index
    %7 = vector.load %arg2[%c1_9, %c0_10, %c0_11] : memref<9x8x8xbf16, #tpu.memory_space<vmem>>, vector<1x8x8xbf16>
    %8 = vector.shape_cast %7 : vector<1x8x8xbf16> to vector<8x8xbf16>
    %cst_12 = arith.constant dense<0.000000e+00> : vector<72x8xf32>
    %9 = tpu.matmul %6, %8, %cst_12 {dimension_numbers = #tpu.dot_dimension_numbers<[1], [0], [0], [1], [0, 0, 1, 1], [], []>} : vector<72x8xbf16>, vector<8x8xbf16>, vector<72x8xf32> -> vector<72x8xf32>
    %10 = arith.addf %4, %9 : vector<72x8xf32>
    %c0_13 = arith.constant 0 : index
    %c0_14 = arith.constant 0 : index
    %c1_15 = arith.constant 1 : index
    %c0_16 = arith.constant 0 : index
    %11 = vector.load %arg1[%c0_13, %c0_14, %c1_15, %c0_16] : memref<1x4x90x8xbf16, #tpu.memory_space<vmem>>, vector<1x1x72x8xbf16>
    %12 = vector.shape_cast %11 : vector<1x1x72x8xbf16> to vector<72x8xbf16>
    %c2 = arith.constant 2 : index
    %c0_17 = arith.constant 0 : index
    %c0_18 = arith.constant 0 : index
    %13 = vector.load %arg2[%c2, %c0_17, %c0_18] : memref<9x8x8xbf16, #tpu.memory_space<vmem>>, vector<1x8x8xbf16>
    %14 = vector.shape_cast %13 : vector<1x8x8xbf16> to vector<8x8xbf16>
    %cst_19 = arith.constant dense<0.000000e+00> : vector<72x8xf32>
    %15 = tpu.matmul %12, %14, %cst_19 {dimension_numbers = #tpu.dot_dimension_numbers<[1], [0], [0], [1], [0, 0, 1, 1], [], []>} : vector<72x8xbf16>, vector<8x8xbf16>, vector<72x8xf32> -> vector<72x8xf32>
    %16 = arith.addf %10, %15 : vector<72x8xf32>
    %c0_20 = arith.constant 0 : index
    %c2_21 = arith.constant 2 : index
    %c0_22 = arith.constant 0 : index
    %c0_23 = arith.constant 0 : index
    %17 = vector.load %arg1[%c0_20, %c2_21, %c0_22, %c0_23] : memref<1x4x90x8xbf16, #tpu.memory_space<vmem>>, vector<1x1x72x8xbf16>
    %18 = vector.shape_cast %17 : vector<1x1x72x8xbf16> to vector<72x8xbf16>
    %c3 = arith.constant 3 : index
    %c0_24 = arith.constant 0 : index
    %c0_25 = arith.constant 0 : index
    %19 = vector.load %arg2[%c3, %c0_24, %c0_25] : memref<9x8x8xbf16, #tpu.memory_space<vmem>>, vector<1x8x8xbf16>
    %20 = vector.shape_cast %19 : vector<1x8x8xbf16> to vector<8x8xbf16>
    %cst_26 = arith.constant dense<0.000000e+00> : vector<72x8xf32>
    %21 = tpu.matmul %18, %20, %cst_26 {dimension_numbers = #tpu.dot_dimension_numbers<[1], [0], [0], [1], [0, 0, 1, 1], [], []>} : vector<72x8xbf16>, vector<8x8xbf16>, vector<72x8xf32> -> vector<72x8xf32>
    %22 = arith.addf %16, %21 : vector<72x8xf32>
    %c0_27 = arith.constant 0 : index
    %c3_28 = arith.constant 3 : index
    %c0_29 = arith.constant 0 : index
    %c0_30 = arith.constant 0 : index
    %23 = vector.load %arg1[%c0_27, %c3_28, %c0_29, %c0_30] : memref<1x4x90x8xbf16, #tpu.memory_space<vmem>>, vector<1x1x72x8xbf16>
    %24 = vector.shape_cast %23 : vector<1x1x72x8xbf16> to vector<72x8xbf16>
    %c4 = arith.constant 4 : index
    %c0_31 = arith.constant 0 : index
    %c0_32 = arith.constant 0 : index
    %25 = vector.load %arg2[%c4, %c0_31, %c0_32] : memref<9x8x8xbf16, #tpu.memory_space<vmem>>, vector<1x8x8xbf16>
    %26 = vector.shape_cast %25 : vector<1x8x8xbf16> to vector<8x8xbf16>
    %cst_33 = arith.constant dense<0.000000e+00> : vector<72x8xf32>
    %27 = tpu.matmul %24, %26, %cst_33 {dimension_numbers = #tpu.dot_dimension_numbers<[1], [0], [0], [1], [0, 0, 1, 1], [], []>} : vector<72x8xbf16>, vector<8x8xbf16>, vector<72x8xf32> -> vector<72x8xf32>
    %28 = arith.addf %22, %27 : vector<72x8xf32>
    %c0_34 = arith.constant 0 : index
    %c2_35 = arith.constant 2 : index
    %c1_36 = arith.constant 1 : index
    %c0_37 = arith.constant 0 : index
    %29 = vector.load %arg1[%c0_34, %c2_35, %c1_36, %c0_37] : memref<1x4x90x8xbf16, #tpu.memory_space<vmem>>, vector<1x1x72x8xbf16>
    %30 = vector.shape_cast %29 : vector<1x1x72x8xbf16> to vector<72x8xbf16>
    %c5 = arith.constant 5 : index
    %c0_38 = arith.constant 0 : index
    %c0_39 = arith.constant 0 : index
    %31 = vector.load %arg2[%c5, %c0_38, %c0_39] : memref<9x8x8xbf16, #tpu.memory_space<vmem>>, vector<1x8x8xbf16>
    %32 = vector.shape_cast %31 : vector<1x8x8xbf16> to vector<8x8xbf16>
    %cst_40 = arith.constant dense<0.000000e+00> : vector<72x8xf32>
    %33 = tpu.matmul %30, %32, %cst_40 {dimension_numbers = #tpu.dot_dimension_numbers<[1], [0], [0], [1], [0, 0, 1, 1], [], []>} : vector<72x8xbf16>, vector<8x8xbf16>, vector<72x8xf32> -> vector<72x8xf32>
    %34 = arith.addf %28, %33 : vector<72x8xf32>
    %c0_41 = arith.constant 0 : index
    %c0_42 = arith.constant 0 : index
    %c9 = arith.constant 9 : index
    %c0_43 = arith.constant 0 : index
    %35 = vector.load %arg1[%c0_41, %c0_42, %c9, %c0_43] : memref<1x4x90x8xbf16, #tpu.memory_space<vmem>>, vector<1x1x72x8xbf16>
    %36 = vector.shape_cast %35 : vector<1x1x72x8xbf16> to vector<72x8xbf16>
    %c6 = arith.constant 6 : index
    %c0_44 = arith.constant 0 : index
    %c0_45 = arith.constant 0 : index
    %37 = vector.load %arg2[%c6, %c0_44, %c0_45] : memref<9x8x8xbf16, #tpu.memory_space<vmem>>, vector<1x8x8xbf16>
    %38 = vector.shape_cast %37 : vector<1x8x8xbf16> to vector<8x8xbf16>
    %cst_46 = arith.constant dense<0.000000e+00> : vector<72x8xf32>
    %39 = tpu.matmul %36, %38, %cst_46 {dimension_numbers = #tpu.dot_dimension_numbers<[1], [0], [0], [1], [0, 0, 1, 1], [], []>} : vector<72x8xbf16>, vector<8x8xbf16>, vector<72x8xf32> -> vector<72x8xf32>
    %40 = arith.addf %34, %39 : vector<72x8xf32>
    %c0_47 = arith.constant 0 : index
    %c1_48 = arith.constant 1 : index
    %c9_49 = arith.constant 9 : index
    %c0_50 = arith.constant 0 : index
    %41 = vector.load %arg1[%c0_47, %c1_48, %c9_49, %c0_50] : memref<1x4x90x8xbf16, #tpu.memory_space<vmem>>, vector<1x1x72x8xbf16>
    %42 = vector.shape_cast %41 : vector<1x1x72x8xbf16> to vector<72x8xbf16>
    %c7 = arith.constant 7 : index
    %c0_51 = arith.constant 0 : index
    %c0_52 = arith.constant 0 : index
    %43 = vector.load %arg2[%c7, %c0_51, %c0_52] : memref<9x8x8xbf16, #tpu.memory_space<vmem>>, vector<1x8x8xbf16>
    %44 = vector.shape_cast %43 : vector<1x8x8xbf16> to vector<8x8xbf16>
    %cst_53 = arith.constant dense<0.000000e+00> : vector<72x8xf32>
    %45 = tpu.matmul %42, %44, %cst_53 {dimension_numbers = #tpu.dot_dimension_numbers<[1], [0], [0], [1], [0, 0, 1, 1], [], []>} : vector<72x8xbf16>, vector<8x8xbf16>, vector<72x8xf32> -> vector<72x8xf32>
    %46 = arith.addf %40, %45 : vector<72x8xf32>
    %c0_54 = arith.constant 0 : index
    %c0_55 = arith.constant 0 : index
    %c10 = arith.constant 10 : index
    %c0_56 = arith.constant 0 : index
    %47 = vector.load %arg1[%c0_54, %c0_55, %c10, %c0_56] : memref<1x4x90x8xbf16, #tpu.memory_space<vmem>>, vector<1x1x72x8xbf16>
    %48 = vector.shape_cast %47 : vector<1x1x72x8xbf16> to vector<72x8xbf16>
    %c8 = arith.constant 8 : index
    %c0_57 = arith.constant 0 : index
    %c0_58 = arith.constant 0 : index
    %49 = vector.load %arg2[%c8, %c0_57, %c0_58] : memref<9x8x8xbf16, #tpu.memory_space<vmem>>, vector<1x8x8xbf16>
    %50 = vector.shape_cast %49 : vector<1x8x8xbf16> to vector<8x8xbf16>
    %cst_59 = arith.constant dense<0.000000e+00> : vector<72x8xf32>
    %51 = tpu.matmul %48, %50, %cst_59 {dimension_numbers = #tpu.dot_dimension_numbers<[1], [0], [0], [1], [0, 0, 1, 1], [], []>} : vector<72x8xbf16>, vector<8x8xbf16>, vector<72x8xf32> -> vector<72x8xf32>
    %52 = arith.addf %46, %51 : vector<72x8xf32>
    %c0_60 = arith.constant 0 : index
    %c1_61 = arith.constant 1 : index
    %c0_62 = arith.constant 0 : index
    %c0_63 = arith.constant 0 : index
    %53 = vector.load %arg1[%c0_60, %c1_61, %c0_62, %c0_63] : memref<1x4x90x8xbf16, #tpu.memory_space<vmem>>, vector<1x1x72x8xbf16>
    %54 = vector.shape_cast %53 : vector<1x1x72x8xbf16> to vector<72x8xbf16>
    %c0_64 = arith.constant 0 : index
    %c0_65 = arith.constant 0 : index
    %c0_66 = arith.constant 0 : index
    %55 = vector.load %arg2[%c0_64, %c0_65, %c0_66] : memref<9x8x8xbf16, #tpu.memory_space<vmem>>, vector<1x8x8xbf16>
    %56 = vector.shape_cast %55 : vector<1x8x8xbf16> to vector<8x8xbf16>
    %cst_67 = arith.constant dense<0.000000e+00> : vector<72x8xf32>
    %57 = tpu.matmul %54, %56, %cst_67 {dimension_numbers = #tpu.dot_dimension_numbers<[1], [0], [0], [1], [0, 0, 1, 1], [], []>} : vector<72x8xbf16>, vector<8x8xbf16>, vector<72x8xf32> -> vector<72x8xf32>
    %c0_68 = arith.constant 0 : index
    %c0_69 = arith.constant 0 : index
    %c1_70 = arith.constant 1 : index
    %c0_71 = arith.constant 0 : index
    %58 = vector.load %arg1[%c0_68, %c0_69, %c1_70, %c0_71] : memref<1x4x90x8xbf16, #tpu.memory_space<vmem>>, vector<1x1x72x8xbf16>
    %59 = vector.shape_cast %58 : vector<1x1x72x8xbf16> to vector<72x8xbf16>
    %c1_72 = arith.constant 1 : index
    %c0_73 = arith.constant 0 : index
    %c0_74 = arith.constant 0 : index
    %60 = vector.load %arg2[%c1_72, %c0_73, %c0_74] : memref<9x8x8xbf16, #tpu.memory_space<vmem>>, vector<1x8x8xbf16>
    %61 = vector.shape_cast %60 : vector<1x8x8xbf16> to vector<8x8xbf16>
    %cst_75 = arith.constant dense<0.000000e+00> : vector<72x8xf32>
    %62 = tpu.matmul %59, %61, %cst_75 {dimension_numbers = #tpu.dot_dimension_numbers<[1], [0], [0], [1], [0, 0, 1, 1], [], []>} : vector<72x8xbf16>, vector<8x8xbf16>, vector<72x8xf32> -> vector<72x8xf32>
    %63 = arith.addf %57, %62 : vector<72x8xf32>
    %c0_76 = arith.constant 0 : index
    %c1_77 = arith.constant 1 : index
    %c1_78 = arith.constant 1 : index
    %c0_79 = arith.constant 0 : index
    %64 = vector.load %arg1[%c0_76, %c1_77, %c1_78, %c0_79] : memref<1x4x90x8xbf16, #tpu.memory_space<vmem>>, vector<1x1x72x8xbf16>
    %65 = vector.shape_cast %64 : vector<1x1x72x8xbf16> to vector<72x8xbf16>
    %c2_80 = arith.constant 2 : index
    %c0_81 = arith.constant 0 : index
    %c0_82 = arith.constant 0 : index
    %66 = vector.load %arg2[%c2_80, %c0_81, %c0_82] : memref<9x8x8xbf16, #tpu.memory_space<vmem>>, vector<1x8x8xbf16>
    %67 = vector.shape_cast %66 : vector<1x8x8xbf16> to vector<8x8xbf16>
    %cst_83 = arith.constant dense<0.000000e+00> : vector<72x8xf32>
    %68 = tpu.matmul %65, %67, %cst_83 {dimension_numbers = #tpu.dot_dimension_numbers<[1], [0], [0], [1], [0, 0, 1, 1], [], []>} : vector<72x8xbf16>, vector<8x8xbf16>, vector<72x8xf32> -> vector<72x8xf32>
    %69 = arith.addf %63, %68 : vector<72x8xf32>
    %c0_84 = arith.constant 0 : index
    %c3_85 = arith.constant 3 : index
    %c0_86 = arith.constant 0 : index
    %c0_87 = arith.constant 0 : index
    %70 = vector.load %arg1[%c0_84, %c3_85, %c0_86, %c0_87] : memref<1x4x90x8xbf16, #tpu.memory_space<vmem>>, vector<1x1x72x8xbf16>
    %71 = vector.shape_cast %70 : vector<1x1x72x8xbf16> to vector<72x8xbf16>
    %c3_88 = arith.constant 3 : index
    %c0_89 = arith.constant 0 : index
    %c0_90 = arith.constant 0 : index
    %72 = vector.load %arg2[%c3_88, %c0_89, %c0_90] : memref<9x8x8xbf16, #tpu.memory_space<vmem>>, vector<1x8x8xbf16>
    %73 = vector.shape_cast %72 : vector<1x8x8xbf16> to vector<8x8xbf16>
    %cst_91 = arith.constant dense<0.000000e+00> : vector<72x8xf32>
    %74 = tpu.matmul %71, %73, %cst_91 {dimension_numbers = #tpu.dot_dimension_numbers<[1], [0], [0], [1], [0, 0, 1, 1], [], []>} : vector<72x8xbf16>, vector<8x8xbf16>, vector<72x8xf32> -> vector<72x8xf32>
    %75 = arith.addf %69, %74 : vector<72x8xf32>
    %c0_92 = arith.constant 0 : index
    %c2_93 = arith.constant 2 : index
    %c1_94 = arith.constant 1 : index
    %c0_95 = arith.constant 0 : index
    %76 = vector.load %arg1[%c0_92, %c2_93, %c1_94, %c0_95] : memref<1x4x90x8xbf16, #tpu.memory_space<vmem>>, vector<1x1x72x8xbf16>
    %77 = vector.shape_cast %76 : vector<1x1x72x8xbf16> to vector<72x8xbf16>
    %c4_96 = arith.constant 4 : index
    %c0_97 = arith.constant 0 : index
    %c0_98 = arith.constant 0 : index
    %78 = vector.load %arg2[%c4_96, %c0_97, %c0_98] : memref<9x8x8xbf16, #tpu.memory_space<vmem>>, vector<1x8x8xbf16>
    %79 = vector.shape_cast %78 : vector<1x8x8xbf16> to vector<8x8xbf16>
    %cst_99 = arith.constant dense<0.000000e+00> : vector<72x8xf32>
    %80 = tpu.matmul %77, %79, %cst_99 {dimension_numbers = #tpu.dot_dimension_numbers<[1], [0], [0], [1], [0, 0, 1, 1], [], []>} : vector<72x8xbf16>, vector<8x8xbf16>, vector<72x8xf32> -> vector<72x8xf32>
    %81 = arith.addf %75, %80 : vector<72x8xf32>
    %c0_100 = arith.constant 0 : index
    %c3_101 = arith.constant 3 : index
    %c1_102 = arith.constant 1 : index
    %c0_103 = arith.constant 0 : index
    %82 = vector.load %arg1[%c0_100, %c3_101, %c1_102, %c0_103] : memref<1x4x90x8xbf16, #tpu.memory_space<vmem>>, vector<1x1x72x8xbf16>
    %83 = vector.shape_cast %82 : vector<1x1x72x8xbf16> to vector<72x8xbf16>
    %c5_104 = arith.constant 5 : index
    %c0_105 = arith.constant 0 : index
    %c0_106 = arith.constant 0 : index
    %84 = vector.load %arg2[%c5_104, %c0_105, %c0_106] : memref<9x8x8xbf16, #tpu.memory_space<vmem>>, vector<1x8x8xbf16>
    %85 = vector.shape_cast %84 : vector<1x8x8xbf16> to vector<8x8xbf16>
    %cst_107 = arith.constant dense<0.000000e+00> : vector<72x8xf32>
    %86 = tpu.matmul %83, %85, %cst_107 {dimension_numbers = #tpu.dot_dimension_numbers<[1], [0], [0], [1], [0, 0, 1, 1], [], []>} : vector<72x8xbf16>, vector<8x8xbf16>, vector<72x8xf32> -> vector<72x8xf32>
    %87 = arith.addf %81, %86 : vector<72x8xf32>
    %c0_108 = arith.constant 0 : index
    %c1_109 = arith.constant 1 : index
    %c9_110 = arith.constant 9 : index
    %c0_111 = arith.constant 0 : index
    %88 = vector.load %arg1[%c0_108, %c1_109, %c9_110, %c0_111] : memref<1x4x90x8xbf16, #tpu.memory_space<vmem>>, vector<1x1x72x8xbf16>
    %89 = vector.shape_cast %88 : vector<1x1x72x8xbf16> to vector<72x8xbf16>
    %c6_112 = arith.constant 6 : index
    %c0_113 = arith.constant 0 : index
    %c0_114 = arith.constant 0 : index
    %90 = vector.load %arg2[%c6_112, %c0_113, %c0_114] : memref<9x8x8xbf16, #tpu.memory_space<vmem>>, vector<1x8x8xbf16>
    %91 = vector.shape_cast %90 : vector<1x8x8xbf16> to vector<8x8xbf16>
    %cst_115 = arith.constant dense<0.000000e+00> : vector<72x8xf32>
    %92 = tpu.matmul %89, %91, %cst_115 {dimension_numbers = #tpu.dot_dimension_numbers<[1], [0], [0], [1], [0, 0, 1, 1], [], []>} : vector<72x8xbf16>, vector<8x8xbf16>, vector<72x8xf32> -> vector<72x8xf32>
    %93 = arith.addf %87, %92 : vector<72x8xf32>
    %c0_116 = arith.constant 0 : index
    %c0_117 = arith.constant 0 : index
    %c10_118 = arith.constant 10 : index
    %c0_119 = arith.constant 0 : index
    %94 = vector.load %arg1[%c0_116, %c0_117, %c10_118, %c0_119] : memref<1x4x90x8xbf16, #tpu.memory_space<vmem>>, vector<1x1x72x8xbf16>
    %95 = vector.shape_cast %94 : vector<1x1x72x8xbf16> to vector<72x8xbf16>
    %c7_120 = arith.constant 7 : index
    %c0_121 = arith.constant 0 : index
    %c0_122 = arith.constant 0 : index
    %96 = vector.load %arg2[%c7_120, %c0_121, %c0_122] : memref<9x8x8xbf16, #tpu.memory_space<vmem>>, vector<1x8x8xbf16>
    %97 = vector.shape_cast %96 : vector<1x8x8xbf16> to vector<8x8xbf16>
    %cst_123 = arith.constant dense<0.000000e+00> : vector<72x8xf32>
    %98 = tpu.matmul %95, %97, %cst_123 {dimension_numbers = #tpu.dot_dimension_numbers<[1], [0], [0], [1], [0, 0, 1, 1], [], []>} : vector<72x8xbf16>, vector<8x8xbf16>, vector<72x8xf32> -> vector<72x8xf32>
    %99 = arith.addf %93, %98 : vector<72x8xf32>
    %c0_124 = arith.constant 0 : index
    %c1_125 = arith.constant 1 : index
    %c10_126 = arith.constant 10 : index
    %c0_127 = arith.constant 0 : index
    %100 = vector.load %arg1[%c0_124, %c1_125, %c10_126, %c0_127] : memref<1x4x90x8xbf16, #tpu.memory_space<vmem>>, vector<1x1x72x8xbf16>
    %101 = vector.shape_cast %100 : vector<1x1x72x8xbf16> to vector<72x8xbf16>
    %c8_128 = arith.constant 8 : index
    %c0_129 = arith.constant 0 : index
    %c0_130 = arith.constant 0 : index
    %102 = vector.load %arg2[%c8_128, %c0_129, %c0_130] : memref<9x8x8xbf16, #tpu.memory_space<vmem>>, vector<1x8x8xbf16>
    %103 = vector.shape_cast %102 : vector<1x8x8xbf16> to vector<8x8xbf16>
    %cst_131 = arith.constant dense<0.000000e+00> : vector<72x8xf32>
    %104 = tpu.matmul %101, %103, %cst_131 {dimension_numbers = #tpu.dot_dimension_numbers<[1], [0], [0], [1], [0, 0, 1, 1], [], []>} : vector<72x8xbf16>, vector<8x8xbf16>, vector<72x8xf32> -> vector<72x8xf32>
    %105 = arith.addf %99, %104 : vector<72x8xf32>
    %106 = arith.maximumf %52, %105 : vector<72x8xf32>
    %c0_132 = arith.constant 0 : index
    %c2_133 = arith.constant 2 : index
    %c0_134 = arith.constant 0 : index
    %c0_135 = arith.constant 0 : index
    %107 = vector.load %arg1[%c0_132, %c2_133, %c0_134, %c0_135] : memref<1x4x90x8xbf16, #tpu.memory_space<vmem>>, vector<1x1x72x8xbf16>
    %108 = vector.shape_cast %107 : vector<1x1x72x8xbf16> to vector<72x8xbf16>
    %c0_136 = arith.constant 0 : index
    %c0_137 = arith.constant 0 : index
    %c0_138 = arith.constant 0 : index
    %109 = vector.load %arg2[%c0_136, %c0_137, %c0_138] : memref<9x8x8xbf16, #tpu.memory_space<vmem>>, vector<1x8x8xbf16>
    %110 = vector.shape_cast %109 : vector<1x8x8xbf16> to vector<8x8xbf16>
    %cst_139 = arith.constant dense<0.000000e+00> : vector<72x8xf32>
    %111 = tpu.matmul %108, %110, %cst_139 {dimension_numbers = #tpu.dot_dimension_numbers<[1], [0], [0], [1], [0, 0, 1, 1], [], []>} : vector<72x8xbf16>, vector<8x8xbf16>, vector<72x8xf32> -> vector<72x8xf32>
    %c0_140 = arith.constant 0 : index
    %c3_141 = arith.constant 3 : index
    %c0_142 = arith.constant 0 : index
    %c0_143 = arith.constant 0 : index
    %112 = vector.load %arg1[%c0_140, %c3_141, %c0_142, %c0_143] : memref<1x4x90x8xbf16, #tpu.memory_space<vmem>>, vector<1x1x72x8xbf16>
    %113 = vector.shape_cast %112 : vector<1x1x72x8xbf16> to vector<72x8xbf16>
    %c1_144 = arith.constant 1 : index
    %c0_145 = arith.constant 0 : index
    %c0_146 = arith.constant 0 : index
    %114 = vector.load %arg2[%c1_144, %c0_145, %c0_146] : memref<9x8x8xbf16, #tpu.memory_space<vmem>>, vector<1x8x8xbf16>
    %115 = vector.shape_cast %114 : vector<1x8x8xbf16> to vector<8x8xbf16>
    %cst_147 = arith.constant dense<0.000000e+00> : vector<72x8xf32>
    %116 = tpu.matmul %113, %115, %cst_147 {dimension_numbers = #tpu.dot_dimension_numbers<[1], [0], [0], [1], [0, 0, 1, 1], [], []>} : vector<72x8xbf16>, vector<8x8xbf16>, vector<72x8xf32> -> vector<72x8xf32>
    %117 = arith.addf %111, %116 : vector<72x8xf32>
    %c0_148 = arith.constant 0 : index
    %c2_149 = arith.constant 2 : index
    %c1_150 = arith.constant 1 : index
    %c0_151 = arith.constant 0 : index
    %118 = vector.load %arg1[%c0_148, %c2_149, %c1_150, %c0_151] : memref<1x4x90x8xbf16, #tpu.memory_space<vmem>>, vector<1x1x72x8xbf16>
    %119 = vector.shape_cast %118 : vector<1x1x72x8xbf16> to vector<72x8xbf16>
    %c2_152 = arith.constant 2 : index
    %c0_153 = arith.constant 0 : index
    %c0_154 = arith.constant 0 : index
    %120 = vector.load %arg2[%c2_152, %c0_153, %c0_154] : memref<9x8x8xbf16, #tpu.memory_space<vmem>>, vector<1x8x8xbf16>
    %121 = vector.shape_cast %120 : vector<1x8x8xbf16> to vector<8x8xbf16>
    %cst_155 = arith.constant dense<0.000000e+00> : vector<72x8xf32>
    %122 = tpu.matmul %119, %121, %cst_155 {dimension_numbers = #tpu.dot_dimension_numbers<[1], [0], [0], [1], [0, 0, 1, 1], [], []>} : vector<72x8xbf16>, vector<8x8xbf16>, vector<72x8xf32> -> vector<72x8xf32>
    %123 = arith.addf %117, %122 : vector<72x8xf32>
    %c0_156 = arith.constant 0 : index
    %c0_157 = arith.constant 0 : index
    %c9_158 = arith.constant 9 : index
    %c0_159 = arith.constant 0 : index
    %124 = vector.load %arg1[%c0_156, %c0_157, %c9_158, %c0_159] : memref<1x4x90x8xbf16, #tpu.memory_space<vmem>>, vector<1x1x72x8xbf16>
    %125 = vector.shape_cast %124 : vector<1x1x72x8xbf16> to vector<72x8xbf16>
    %c3_160 = arith.constant 3 : index
    %c0_161 = arith.constant 0 : index
    %c0_162 = arith.constant 0 : index
    %126 = vector.load %arg2[%c3_160, %c0_161, %c0_162] : memref<9x8x8xbf16, #tpu.memory_space<vmem>>, vector<1x8x8xbf16>
    %127 = vector.shape_cast %126 : vector<1x8x8xbf16> to vector<8x8xbf16>
    %cst_163 = arith.constant dense<0.000000e+00> : vector<72x8xf32>
    %128 = tpu.matmul %125, %127, %cst_163 {dimension_numbers = #tpu.dot_dimension_numbers<[1], [0], [0], [1], [0, 0, 1, 1], [], []>} : vector<72x8xbf16>, vector<8x8xbf16>, vector<72x8xf32> -> vector<72x8xf32>
    %129 = arith.addf %123, %128 : vector<72x8xf32>
    %c0_164 = arith.constant 0 : index
    %c1_165 = arith.constant 1 : index
    %c9_166 = arith.constant 9 : index
    %c0_167 = arith.constant 0 : index
    %130 = vector.load %arg1[%c0_164, %c1_165, %c9_166, %c0_167] : memref<1x4x90x8xbf16, #tpu.memory_space<vmem>>, vector<1x1x72x8xbf16>
    %131 = vector.shape_cast %130 : vector<1x1x72x8xbf16> to vector<72x8xbf16>
    %c4_168 = arith.constant 4 : index
    %c0_169 = arith.constant 0 : index
    %c0_170 = arith.constant 0 : index
    %132 = vector.load %arg2[%c4_168, %c0_169, %c0_170] : memref<9x8x8xbf16, #tpu.memory_space<vmem>>, vector<1x8x8xbf16>
    %133 = vector.shape_cast %132 : vector<1x8x8xbf16> to vector<8x8xbf16>
    %cst_171 = arith.constant dense<0.000000e+00> : vector<72x8xf32>
    %134 = tpu.matmul %131, %133, %cst_171 {dimension_numbers = #tpu.dot_dimension_numbers<[1], [0], [0], [1], [0, 0, 1, 1], [], []>} : vector<72x8xbf16>, vector<8x8xbf16>, vector<72x8xf32> -> vector<72x8xf32>
    %135 = arith.addf %129, %134 : vector<72x8xf32>
    %c0_172 = arith.constant 0 : index
    %c0_173 = arith.constant 0 : index
    %c10_174 = arith.constant 10 : index
    %c0_175 = arith.constant 0 : index
    %136 = vector.load %arg1[%c0_172, %c0_173, %c10_174, %c0_175] : memref<1x4x90x8xbf16, #tpu.memory_space<vmem>>, vector<1x1x72x8xbf16>
    %137 = vector.shape_cast %136 : vector<1x1x72x8xbf16> to vector<72x8xbf16>
    %c5_176 = arith.constant 5 : index
    %c0_177 = arith.constant 0 : index
    %c0_178 = arith.constant 0 : index
    %138 = vector.load %arg2[%c5_176, %c0_177, %c0_178] : memref<9x8x8xbf16, #tpu.memory_space<vmem>>, vector<1x8x8xbf16>
    %139 = vector.shape_cast %138 : vector<1x8x8xbf16> to vector<8x8xbf16>
    %cst_179 = arith.constant dense<0.000000e+00> : vector<72x8xf32>
    %140 = tpu.matmul %137, %139, %cst_179 {dimension_numbers = #tpu.dot_dimension_numbers<[1], [0], [0], [1], [0, 0, 1, 1], [], []>} : vector<72x8xbf16>, vector<8x8xbf16>, vector<72x8xf32> -> vector<72x8xf32>
    %141 = arith.addf %135, %140 : vector<72x8xf32>
    %c0_180 = arith.constant 0 : index
    %c2_181 = arith.constant 2 : index
    %c9_182 = arith.constant 9 : index
    %c0_183 = arith.constant 0 : index
    %142 = vector.load %arg1[%c0_180, %c2_181, %c9_182, %c0_183] : memref<1x4x90x8xbf16, #tpu.memory_space<vmem>>, vector<1x1x72x8xbf16>
    %143 = vector.shape_cast %142 : vector<1x1x72x8xbf16> to vector<72x8xbf16>
    %c6_184 = arith.constant 6 : index
    %c0_185 = arith.constant 0 : index
    %c0_186 = arith.constant 0 : index
    %144 = vector.load %arg2[%c6_184, %c0_185, %c0_186] : memref<9x8x8xbf16, #tpu.memory_space<vmem>>, vector<1x8x8xbf16>
    %145 = vector.shape_cast %144 : vector<1x8x8xbf16> to vector<8x8xbf16>
    %cst_187 = arith.constant dense<0.000000e+00> : vector<72x8xf32>
    %146 = tpu.matmul %143, %145, %cst_187 {dimension_numbers = #tpu.dot_dimension_numbers<[1], [0], [0], [1], [0, 0, 1, 1], [], []>} : vector<72x8xbf16>, vector<8x8xbf16>, vector<72x8xf32> -> vector<72x8xf32>
    %147 = arith.addf %141, %146 : vector<72x8xf32>
    %c0_188 = arith.constant 0 : index
    %c3_189 = arith.constant 3 : index
    %c9_190 = arith.constant 9 : index
    %c0_191 = arith.constant 0 : index
    %148 = vector.load %arg1[%c0_188, %c3_189, %c9_190, %c0_191] : memref<1x4x90x8xbf16, #tpu.memory_space<vmem>>, vector<1x1x72x8xbf16>
    %149 = vector.shape_cast %148 : vector<1x1x72x8xbf16> to vector<72x8xbf16>
    %c7_192 = arith.constant 7 : index
    %c0_193 = arith.constant 0 : index
    %c0_194 = arith.constant 0 : index
    %150 = vector.load %arg2[%c7_192, %c0_193, %c0_194] : memref<9x8x8xbf16, #tpu.memory_space<vmem>>, vector<1x8x8xbf16>
    %151 = vector.shape_cast %150 : vector<1x8x8xbf16> to vector<8x8xbf16>
    %cst_195 = arith.constant dense<0.000000e+00> : vector<72x8xf32>
    %152 = tpu.matmul %149, %151, %cst_195 {dimension_numbers = #tpu.dot_dimension_numbers<[1], [0], [0], [1], [0, 0, 1, 1], [], []>} : vector<72x8xbf16>, vector<8x8xbf16>, vector<72x8xf32> -> vector<72x8xf32>
    %153 = arith.addf %147, %152 : vector<72x8xf32>
    %c0_196 = arith.constant 0 : index
    %c2_197 = arith.constant 2 : index
    %c10_198 = arith.constant 10 : index
    %c0_199 = arith.constant 0 : index
    %154 = vector.load %arg1[%c0_196, %c2_197, %c10_198, %c0_199] : memref<1x4x90x8xbf16, #tpu.memory_space<vmem>>, vector<1x1x72x8xbf16>
    %155 = vector.shape_cast %154 : vector<1x1x72x8xbf16> to vector<72x8xbf16>
    %c8_200 = arith.constant 8 : index
    %c0_201 = arith.constant 0 : index
    %c0_202 = arith.constant 0 : index
    %156 = vector.load %arg2[%c8_200, %c0_201, %c0_202] : memref<9x8x8xbf16, #tpu.memory_space<vmem>>, vector<1x8x8xbf16>
    %157 = vector.shape_cast %156 : vector<1x8x8xbf16> to vector<8x8xbf16>
    %cst_203 = arith.constant dense<0.000000e+00> : vector<72x8xf32>
    %158 = tpu.matmul %155, %157, %cst_203 {dimension_numbers = #tpu.dot_dimension_numbers<[1], [0], [0], [1], [0, 0, 1, 1], [], []>} : vector<72x8xbf16>, vector<8x8xbf16>, vector<72x8xf32> -> vector<72x8xf32>
    %159 = arith.addf %153, %158 : vector<72x8xf32>
    %160 = arith.maximumf %106, %159 : vector<72x8xf32>
    %c0_204 = arith.constant 0 : index
    %c3_205 = arith.constant 3 : index
    %c0_206 = arith.constant 0 : index
    %c0_207 = arith.constant 0 : index
    %161 = vector.load %arg1[%c0_204, %c3_205, %c0_206, %c0_207] : memref<1x4x90x8xbf16, #tpu.memory_space<vmem>>, vector<1x1x72x8xbf16>
    %162 = vector.shape_cast %161 : vector<1x1x72x8xbf16> to vector<72x8xbf16>
    %c0_208 = arith.constant 0 : index
    %c0_209 = arith.constant 0 : index
    %c0_210 = arith.constant 0 : index
    %163 = vector.load %arg2[%c0_208, %c0_209, %c0_210] : memref<9x8x8xbf16, #tpu.memory_space<vmem>>, vector<1x8x8xbf16>
    %164 = vector.shape_cast %163 : vector<1x8x8xbf16> to vector<8x8xbf16>
    %cst_211 = arith.constant dense<0.000000e+00> : vector<72x8xf32>
    %165 = tpu.matmul %162, %164, %cst_211 {dimension_numbers = #tpu.dot_dimension_numbers<[1], [0], [0], [1], [0, 0, 1, 1], [], []>} : vector<72x8xbf16>, vector<8x8xbf16>, vector<72x8xf32> -> vector<72x8xf32>
    %c0_212 = arith.constant 0 : index
    %c2_213 = arith.constant 2 : index
    %c1_214 = arith.constant 1 : index
    %c0_215 = arith.constant 0 : index
    %166 = vector.load %arg1[%c0_212, %c2_213, %c1_214, %c0_215] : memref<1x4x90x8xbf16, #tpu.memory_space<vmem>>, vector<1x1x72x8xbf16>
    %167 = vector.shape_cast %166 : vector<1x1x72x8xbf16> to vector<72x8xbf16>
    %c1_216 = arith.constant 1 : index
    %c0_217 = arith.constant 0 : index
    %c0_218 = arith.constant 0 : index
    %168 = vector.load %arg2[%c1_216, %c0_217, %c0_218] : memref<9x8x8xbf16, #tpu.memory_space<vmem>>, vector<1x8x8xbf16>
    %169 = vector.shape_cast %168 : vector<1x8x8xbf16> to vector<8x8xbf16>
    %cst_219 = arith.constant dense<0.000000e+00> : vector<72x8xf32>
    %170 = tpu.matmul %167, %169, %cst_219 {dimension_numbers = #tpu.dot_dimension_numbers<[1], [0], [0], [1], [0, 0, 1, 1], [], []>} : vector<72x8xbf16>, vector<8x8xbf16>, vector<72x8xf32> -> vector<72x8xf32>
    %171 = arith.addf %165, %170 : vector<72x8xf32>
    %c0_220 = arith.constant 0 : index
    %c3_221 = arith.constant 3 : index
    %c1_222 = arith.constant 1 : index
    %c0_223 = arith.constant 0 : index
    %172 = vector.load %arg1[%c0_220, %c3_221, %c1_222, %c0_223] : memref<1x4x90x8xbf16, #tpu.memory_space<vmem>>, vector<1x1x72x8xbf16>
    %173 = vector.shape_cast %172 : vector<1x1x72x8xbf16> to vector<72x8xbf16>
    %c2_224 = arith.constant 2 : index
    %c0_225 = arith.constant 0 : index
    %c0_226 = arith.constant 0 : index
    %174 = vector.load %arg2[%c2_224, %c0_225, %c0_226] : memref<9x8x8xbf16, #tpu.memory_space<vmem>>, vector<1x8x8xbf16>
    %175 = vector.shape_cast %174 : vector<1x8x8xbf16> to vector<8x8xbf16>
    %cst_227 = arith.constant dense<0.000000e+00> : vector<72x8xf32>
    %176 = tpu.matmul %173, %175, %cst_227 {dimension_numbers = #tpu.dot_dimension_numbers<[1], [0], [0], [1], [0, 0, 1, 1], [], []>} : vector<72x8xbf16>, vector<8x8xbf16>, vector<72x8xf32> -> vector<72x8xf32>
    %177 = arith.addf %171, %176 : vector<72x8xf32>
    %c0_228 = arith.constant 0 : index
    %c1_229 = arith.constant 1 : index
    %c9_230 = arith.constant 9 : index
    %c0_231 = arith.constant 0 : index
    %178 = vector.load %arg1[%c0_228, %c1_229, %c9_230, %c0_231] : memref<1x4x90x8xbf16, #tpu.memory_space<vmem>>, vector<1x1x72x8xbf16>
    %179 = vector.shape_cast %178 : vector<1x1x72x8xbf16> to vector<72x8xbf16>
    %c3_232 = arith.constant 3 : index
    %c0_233 = arith.constant 0 : index
    %c0_234 = arith.constant 0 : index
    %180 = vector.load %arg2[%c3_232, %c0_233, %c0_234] : memref<9x8x8xbf16, #tpu.memory_space<vmem>>, vector<1x8x8xbf16>
    %181 = vector.shape_cast %180 : vector<1x8x8xbf16> to vector<8x8xbf16>
    %cst_235 = arith.constant dense<0.000000e+00> : vector<72x8xf32>
    %182 = tpu.matmul %179, %181, %cst_235 {dimension_numbers = #tpu.dot_dimension_numbers<[1], [0], [0], [1], [0, 0, 1, 1], [], []>} : vector<72x8xbf16>, vector<8x8xbf16>, vector<72x8xf32> -> vector<72x8xf32>
    %183 = arith.addf %177, %182 : vector<72x8xf32>
    %c0_236 = arith.constant 0 : index
    %c0_237 = arith.constant 0 : index
    %c10_238 = arith.constant 10 : index
    %c0_239 = arith.constant 0 : index
    %184 = vector.load %arg1[%c0_236, %c0_237, %c10_238, %c0_239] : memref<1x4x90x8xbf16, #tpu.memory_space<vmem>>, vector<1x1x72x8xbf16>
    %185 = vector.shape_cast %184 : vector<1x1x72x8xbf16> to vector<72x8xbf16>
    %c4_240 = arith.constant 4 : index
    %c0_241 = arith.constant 0 : index
    %c0_242 = arith.constant 0 : index
    %186 = vector.load %arg2[%c4_240, %c0_241, %c0_242] : memref<9x8x8xbf16, #tpu.memory_space<vmem>>, vector<1x8x8xbf16>
    %187 = vector.shape_cast %186 : vector<1x8x8xbf16> to vector<8x8xbf16>
    %cst_243 = arith.constant dense<0.000000e+00> : vector<72x8xf32>
    %188 = tpu.matmul %185, %187, %cst_243 {dimension_numbers = #tpu.dot_dimension_numbers<[1], [0], [0], [1], [0, 0, 1, 1], [], []>} : vector<72x8xbf16>, vector<8x8xbf16>, vector<72x8xf32> -> vector<72x8xf32>
    %189 = arith.addf %183, %188 : vector<72x8xf32>
    %c0_244 = arith.constant 0 : index
    %c1_245 = arith.constant 1 : index
    %c10_246 = arith.constant 10 : index
    %c0_247 = arith.constant 0 : index
    %190 = vector.load %arg1[%c0_244, %c1_245, %c10_246, %c0_247] : memref<1x4x90x8xbf16, #tpu.memory_space<vmem>>, vector<1x1x72x8xbf16>
    %191 = vector.shape_cast %190 : vector<1x1x72x8xbf16> to vector<72x8xbf16>
    %c5_248 = arith.constant 5 : index
    %c0_249 = arith.constant 0 : index
    %c0_250 = arith.constant 0 : index
    %192 = vector.load %arg2[%c5_248, %c0_249, %c0_250] : memref<9x8x8xbf16, #tpu.memory_space<vmem>>, vector<1x8x8xbf16>
    %193 = vector.shape_cast %192 : vector<1x8x8xbf16> to vector<8x8xbf16>
    %cst_251 = arith.constant dense<0.000000e+00> : vector<72x8xf32>
    %194 = tpu.matmul %191, %193, %cst_251 {dimension_numbers = #tpu.dot_dimension_numbers<[1], [0], [0], [1], [0, 0, 1, 1], [], []>} : vector<72x8xbf16>, vector<8x8xbf16>, vector<72x8xf32> -> vector<72x8xf32>
    %195 = arith.addf %189, %194 : vector<72x8xf32>
    %c0_252 = arith.constant 0 : index
    %c3_253 = arith.constant 3 : index
    %c9_254 = arith.constant 9 : index
    %c0_255 = arith.constant 0 : index
    %196 = vector.load %arg1[%c0_252, %c3_253, %c9_254, %c0_255] : memref<1x4x90x8xbf16, #tpu.memory_space<vmem>>, vector<1x1x72x8xbf16>
    %197 = vector.shape_cast %196 : vector<1x1x72x8xbf16> to vector<72x8xbf16>
    %c6_256 = arith.constant 6 : index
    %c0_257 = arith.constant 0 : index
    %c0_258 = arith.constant 0 : index
    %198 = vector.load %arg2[%c6_256, %c0_257, %c0_258] : memref<9x8x8xbf16, #tpu.memory_space<vmem>>, vector<1x8x8xbf16>
    %199 = vector.shape_cast %198 : vector<1x8x8xbf16> to vector<8x8xbf16>
    %cst_259 = arith.constant dense<0.000000e+00> : vector<72x8xf32>
    %200 = tpu.matmul %197, %199, %cst_259 {dimension_numbers = #tpu.dot_dimension_numbers<[1], [0], [0], [1], [0, 0, 1, 1], [], []>} : vector<72x8xbf16>, vector<8x8xbf16>, vector<72x8xf32> -> vector<72x8xf32>
    %201 = arith.addf %195, %200 : vector<72x8xf32>
    %c0_260 = arith.constant 0 : index
    %c2_261 = arith.constant 2 : index
    %c10_262 = arith.constant 10 : index
    %c0_263 = arith.constant 0 : index
    %202 = vector.load %arg1[%c0_260, %c2_261, %c10_262, %c0_263] : memref<1x4x90x8xbf16, #tpu.memory_space<vmem>>, vector<1x1x72x8xbf16>
    %203 = vector.shape_cast %202 : vector<1x1x72x8xbf16> to vector<72x8xbf16>
    %c7_264 = arith.constant 7 : index
    %c0_265 = arith.constant 0 : index
    %c0_266 = arith.constant 0 : index
    %204 = vector.load %arg2[%c7_264, %c0_265, %c0_266] : memref<9x8x8xbf16, #tpu.memory_space<vmem>>, vector<1x8x8xbf16>
    %205 = vector.shape_cast %204 : vector<1x8x8xbf16> to vector<8x8xbf16>
    %cst_267 = arith.constant dense<0.000000e+00> : vector<72x8xf32>
    %206 = tpu.matmul %203, %205, %cst_267 {dimension_numbers = #tpu.dot_dimension_numbers<[1], [0], [0], [1], [0, 0, 1, 1], [], []>} : vector<72x8xbf16>, vector<8x8xbf16>, vector<72x8xf32> -> vector<72x8xf32>
    %207 = arith.addf %201, %206 : vector<72x8xf32>
    %c0_268 = arith.constant 0 : index
    %c3_269 = arith.constant 3 : index
    %c10_270 = arith.constant 10 : index
    %c0_271 = arith.constant 0 : index
    %208 = vector.load %arg1[%c0_268, %c3_269, %c10_270, %c0_271] : memref<1x4x90x8xbf16, #tpu.memory_space<vmem>>, vector<1x1x72x8xbf16>
    %209 = vector.shape_cast %208 : vector<1x1x72x8xbf16> to vector<72x8xbf16>
    %c8_272 = arith.constant 8 : index
    %c0_273 = arith.constant 0 : index
    %c0_274 = arith.constant 0 : index
    %210 = vector.load %arg2[%c8_272, %c0_273, %c0_274] : memref<9x8x8xbf16, #tpu.memory_space<vmem>>, vector<1x8x8xbf16>
    %211 = vector.shape_cast %210 : vector<1x8x8xbf16> to vector<8x8xbf16>
    %cst_275 = arith.constant dense<0.000000e+00> : vector<72x8xf32>
    %212 = tpu.matmul %209, %211, %cst_275 {dimension_numbers = #tpu.dot_dimension_numbers<[1], [0], [0], [1], [0, 0, 1, 1], [], []>} : vector<72x8xbf16>, vector<8x8xbf16>, vector<72x8xf32> -> vector<72x8xf32>
    %213 = arith.addf %207, %212 : vector<72x8xf32>
    %214 = arith.maximumf %160, %213 : vector<72x8xf32>
    %c0_276 = arith.constant 0 : index
    %c0_277 = arith.constant 0 : index
    %215 = vector.load %arg3[%c0_276, %c0_277] : memref<1x8xf32, #tpu.memory_space<vmem>>, vector<1x8xf32>
    %216 = vector.broadcast %215 : vector<1x8xf32> to vector<72x8xf32>
    %217 = arith.addf %214, %216 : vector<72x8xf32>
    %cst_278 = arith.constant 0.000000e+00 : f32
    %218 = vector.broadcast %cst_278 : f32 to vector<72x8xf32>
    %219 = arith.maximumf %217, %218 : vector<72x8xf32>
    %220 = arith.truncf %219 : vector<72x8xf32> to vector<72x8xbf16>
    %c0_279 = arith.constant 0 : index
    %c0_280 = arith.constant 0 : index
    %c0_281 = arith.constant 0 : index
    %221 = vector.load %arg4[%c0_279, %c0_280, %c0_281] : memref<1x72x8xbf16, #tpu.memory_space<vmem>>, vector<1x72x8xbf16>
    %222 = vector.shape_cast %221 : vector<1x72x8xbf16> to vector<72x8xbf16>
    %223 = vector.shape_cast %220 : vector<72x8xbf16> to vector<1x72x8xbf16>
    tpu.vector_store %arg4[%c0_279, %c0_280, %c0_281], %223 {strides = array<i32>} : memref<1x72x8xbf16, #tpu.memory_space<vmem>>, vector<1x72x8xbf16>,
    return
  }
  func.func @transform_0(%arg0: i32) -> (i32, i32, i32, i32) {
    %c0_i32 = arith.constant 0 : i32
    %c0_i32_0 = arith.constant 0 : i32
    %c0_i32_1 = arith.constant 0 : i32
    %c0_i32_2 = arith.constant 0 : i32
    return %arg0, %c0_i32, %c0_i32_0, %c0_i32_1 : i32, i32, i32, i32
  }
  func.func @transform_1(%arg0: i32) -> (i32, i32, i32) {
    %c0_i32 = arith.constant 0 : i32
    %c0_i32_0 = arith.constant 0 : i32
    %c0_i32_1 = arith.constant 0 : i32
    %c0_i32_2 = arith.constant 0 : i32
    return %c0_i32, %c0_i32_0, %c0_i32_1 : i32, i32, i32
  }
  func.func @transform_2(%arg0: i32) -> (i32, i32) {
    %c0_i32 = arith.constant 0 : i32
    %c0_i32_0 = arith.constant 0 : i32
    %c0_i32_1 = arith.constant 0 : i32
    return %c0_i32, %c0_i32_0 : i32, i32
  }
  func.func @transform_3(%arg0: i32) -> (i32, i32, i32) {
    %c0_i32 = arith.constant 0 : i32
    %c0_i32_0 = arith.constant 0 : i32
    %c0_i32_1 = arith.constant 0 : i32
    return %arg0, %c0_i32, %c0_i32_0 : i32, i32, i32
  }
}

module attributes {stable_mosaic.version = 11 : i64} {
  func.func @_conv_block_kernel(%arg0: i32, %arg1: memref<1x4x30x8xbf16, #tpu.memory_space<vmem>>, %arg2: memref<9x8x16xbf16, #tpu.memory_space<vmem>>, %arg3: memref<1x16xf32, #tpu.memory_space<vmem>>, %arg4: memref<1x20x16xbf16, #tpu.memory_space<vmem>>) attributes {dimension_semantics = [#tpu.dimension_semantics<parallel>], iteration_bounds = array<i64: 2>, scalar_prefetch = 0 : i64, scratch_operands = 0 : i64, tpu.core_type = #tpu.core_type<tc>, window_params = [{transform_indices = @transform_0, window_bounds = array<i64: 1, 4, 30, 8>}, {pipeline_mode = #tpu.pipeline_mode<synchronous>, transform_indices = @transform_1, window_bounds = array<i64: 9, 8, 16>}, {pipeline_mode = #tpu.pipeline_mode<synchronous>, transform_indices = @transform_2, window_bounds = array<i64: 1, 16>}, {transform_indices = @transform_3, window_bounds = array<i64: 1, 20, 16>}]} {
    %c0 = arith.constant 0 : index
    %c0_0 = arith.constant 0 : index
    %c0_1 = arith.constant 0 : index
    %c0_2 = arith.constant 0 : index
    %0 = vector.load %arg1[%c0, %c0_0, %c0_1, %c0_2] : memref<1x4x30x8xbf16, #tpu.memory_space<vmem>>, vector<1x1x20x8xbf16>
    %1 = vector.shape_cast %0 : vector<1x1x20x8xbf16> to vector<20x8xbf16>
    %c0_3 = arith.constant 0 : index
    %c0_4 = arith.constant 0 : index
    %c0_5 = arith.constant 0 : index
    %2 = vector.load %arg2[%c0_3, %c0_4, %c0_5] : memref<9x8x16xbf16, #tpu.memory_space<vmem>>, vector<1x8x16xbf16>
    %3 = vector.shape_cast %2 : vector<1x8x16xbf16> to vector<8x16xbf16>
    %cst = arith.constant dense<0.000000e+00> : vector<20x16xf32>
    %4 = tpu.matmul %1, %3, %cst {dimension_numbers = #tpu.dot_dimension_numbers<[1], [0], [0], [1], [0, 0, 1, 1], [], []>} : vector<20x8xbf16>, vector<8x16xbf16>, vector<20x16xf32> -> vector<20x16xf32>
    %c0_6 = arith.constant 0 : index
    %c1 = arith.constant 1 : index
    %c0_7 = arith.constant 0 : index
    %c0_8 = arith.constant 0 : index
    %5 = vector.load %arg1[%c0_6, %c1, %c0_7, %c0_8] : memref<1x4x30x8xbf16, #tpu.memory_space<vmem>>, vector<1x1x20x8xbf16>
    %6 = vector.shape_cast %5 : vector<1x1x20x8xbf16> to vector<20x8xbf16>
    %c1_9 = arith.constant 1 : index
    %c0_10 = arith.constant 0 : index
    %c0_11 = arith.constant 0 : index
    %7 = vector.load %arg2[%c1_9, %c0_10, %c0_11] : memref<9x8x16xbf16, #tpu.memory_space<vmem>>, vector<1x8x16xbf16>
    %8 = vector.shape_cast %7 : vector<1x8x16xbf16> to vector<8x16xbf16>
    %cst_12 = arith.constant dense<0.000000e+00> : vector<20x16xf32>
    %9 = tpu.matmul %6, %8, %cst_12 {dimension_numbers = #tpu.dot_dimension_numbers<[1], [0], [0], [1], [0, 0, 1, 1], [], []>} : vector<20x8xbf16>, vector<8x16xbf16>, vector<20x16xf32> -> vector<20x16xf32>
    %10 = arith.addf %4, %9 : vector<20x16xf32>
    %c0_13 = arith.constant 0 : index
    %c0_14 = arith.constant 0 : index
    %c1_15 = arith.constant 1 : index
    %c0_16 = arith.constant 0 : index
    %11 = vector.load %arg1[%c0_13, %c0_14, %c1_15, %c0_16] : memref<1x4x30x8xbf16, #tpu.memory_space<vmem>>, vector<1x1x20x8xbf16>
    %12 = vector.shape_cast %11 : vector<1x1x20x8xbf16> to vector<20x8xbf16>
    %c2 = arith.constant 2 : index
    %c0_17 = arith.constant 0 : index
    %c0_18 = arith.constant 0 : index
    %13 = vector.load %arg2[%c2, %c0_17, %c0_18] : memref<9x8x16xbf16, #tpu.memory_space<vmem>>, vector<1x8x16xbf16>
    %14 = vector.shape_cast %13 : vector<1x8x16xbf16> to vector<8x16xbf16>
    %cst_19 = arith.constant dense<0.000000e+00> : vector<20x16xf32>
    %15 = tpu.matmul %12, %14, %cst_19 {dimension_numbers = #tpu.dot_dimension_numbers<[1], [0], [0], [1], [0, 0, 1, 1], [], []>} : vector<20x8xbf16>, vector<8x16xbf16>, vector<20x16xf32> -> vector<20x16xf32>
    %16 = arith.addf %10, %15 : vector<20x16xf32>
    %c0_20 = arith.constant 0 : index
    %c2_21 = arith.constant 2 : index
    %c0_22 = arith.constant 0 : index
    %c0_23 = arith.constant 0 : index
    %17 = vector.load %arg1[%c0_20, %c2_21, %c0_22, %c0_23] : memref<1x4x30x8xbf16, #tpu.memory_space<vmem>>, vector<1x1x20x8xbf16>
    %18 = vector.shape_cast %17 : vector<1x1x20x8xbf16> to vector<20x8xbf16>
    %c3 = arith.constant 3 : index
    %c0_24 = arith.constant 0 : index
    %c0_25 = arith.constant 0 : index
    %19 = vector.load %arg2[%c3, %c0_24, %c0_25] : memref<9x8x16xbf16, #tpu.memory_space<vmem>>, vector<1x8x16xbf16>
    %20 = vector.shape_cast %19 : vector<1x8x16xbf16> to vector<8x16xbf16>
    %cst_26 = arith.constant dense<0.000000e+00> : vector<20x16xf32>
    %21 = tpu.matmul %18, %20, %cst_26 {dimension_numbers = #tpu.dot_dimension_numbers<[1], [0], [0], [1], [0, 0, 1, 1], [], []>} : vector<20x8xbf16>, vector<8x16xbf16>, vector<20x16xf32> -> vector<20x16xf32>
    %22 = arith.addf %16, %21 : vector<20x16xf32>
    %c0_27 = arith.constant 0 : index
    %c3_28 = arith.constant 3 : index
    %c0_29 = arith.constant 0 : index
    %c0_30 = arith.constant 0 : index
    %23 = vector.load %arg1[%c0_27, %c3_28, %c0_29, %c0_30] : memref<1x4x30x8xbf16, #tpu.memory_space<vmem>>, vector<1x1x20x8xbf16>
    %24 = vector.shape_cast %23 : vector<1x1x20x8xbf16> to vector<20x8xbf16>
    %c4 = arith.constant 4 : index
    %c0_31 = arith.constant 0 : index
    %c0_32 = arith.constant 0 : index
    %25 = vector.load %arg2[%c4, %c0_31, %c0_32] : memref<9x8x16xbf16, #tpu.memory_space<vmem>>, vector<1x8x16xbf16>
    %26 = vector.shape_cast %25 : vector<1x8x16xbf16> to vector<8x16xbf16>
    %cst_33 = arith.constant dense<0.000000e+00> : vector<20x16xf32>
    %27 = tpu.matmul %24, %26, %cst_33 {dimension_numbers = #tpu.dot_dimension_numbers<[1], [0], [0], [1], [0, 0, 1, 1], [], []>} : vector<20x8xbf16>, vector<8x16xbf16>, vector<20x16xf32> -> vector<20x16xf32>
    %28 = arith.addf %22, %27 : vector<20x16xf32>
    %c0_34 = arith.constant 0 : index
    %c2_35 = arith.constant 2 : index
    %c1_36 = arith.constant 1 : index
    %c0_37 = arith.constant 0 : index
    %29 = vector.load %arg1[%c0_34, %c2_35, %c1_36, %c0_37] : memref<1x4x30x8xbf16, #tpu.memory_space<vmem>>, vector<1x1x20x8xbf16>
    %30 = vector.shape_cast %29 : vector<1x1x20x8xbf16> to vector<20x8xbf16>
    %c5 = arith.constant 5 : index
    %c0_38 = arith.constant 0 : index
    %c0_39 = arith.constant 0 : index
    %31 = vector.load %arg2[%c5, %c0_38, %c0_39] : memref<9x8x16xbf16, #tpu.memory_space<vmem>>, vector<1x8x16xbf16>
    %32 = vector.shape_cast %31 : vector<1x8x16xbf16> to vector<8x16xbf16>
    %cst_40 = arith.constant dense<0.000000e+00> : vector<20x16xf32>
    %33 = tpu.matmul %30, %32, %cst_40 {dimension_numbers = #tpu.dot_dimension_numbers<[1], [0], [0], [1], [0, 0, 1, 1], [], []>} : vector<20x8xbf16>, vector<8x16xbf16>, vector<20x16xf32> -> vector<20x16xf32>
    %34 = arith.addf %28, %33 : vector<20x16xf32>
    %c0_41 = arith.constant 0 : index
    %c0_42 = arith.constant 0 : index
    %c5_43 = arith.constant 5 : index
    %c0_44 = arith.constant 0 : index
    %35 = vector.load %arg1[%c0_41, %c0_42, %c5_43, %c0_44] : memref<1x4x30x8xbf16, #tpu.memory_space<vmem>>, vector<1x1x20x8xbf16>
    %36 = vector.shape_cast %35 : vector<1x1x20x8xbf16> to vector<20x8xbf16>
    %c6 = arith.constant 6 : index
    %c0_45 = arith.constant 0 : index
    %c0_46 = arith.constant 0 : index
    %37 = vector.load %arg2[%c6, %c0_45, %c0_46] : memref<9x8x16xbf16, #tpu.memory_space<vmem>>, vector<1x8x16xbf16>
    %38 = vector.shape_cast %37 : vector<1x8x16xbf16> to vector<8x16xbf16>
    %cst_47 = arith.constant dense<0.000000e+00> : vector<20x16xf32>
    %39 = tpu.matmul %36, %38, %cst_47 {dimension_numbers = #tpu.dot_dimension_numbers<[1], [0], [0], [1], [0, 0, 1, 1], [], []>} : vector<20x8xbf16>, vector<8x16xbf16>, vector<20x16xf32> -> vector<20x16xf32>
    %40 = arith.addf %34, %39 : vector<20x16xf32>
    %c0_48 = arith.constant 0 : index
    %c1_49 = arith.constant 1 : index
    %c5_50 = arith.constant 5 : index
    %c0_51 = arith.constant 0 : index
    %41 = vector.load %arg1[%c0_48, %c1_49, %c5_50, %c0_51] : memref<1x4x30x8xbf16, #tpu.memory_space<vmem>>, vector<1x1x20x8xbf16>
    %42 = vector.shape_cast %41 : vector<1x1x20x8xbf16> to vector<20x8xbf16>
    %c7 = arith.constant 7 : index
    %c0_52 = arith.constant 0 : index
    %c0_53 = arith.constant 0 : index
    %43 = vector.load %arg2[%c7, %c0_52, %c0_53] : memref<9x8x16xbf16, #tpu.memory_space<vmem>>, vector<1x8x16xbf16>
    %44 = vector.shape_cast %43 : vector<1x8x16xbf16> to vector<8x16xbf16>
    %cst_54 = arith.constant dense<0.000000e+00> : vector<20x16xf32>
    %45 = tpu.matmul %42, %44, %cst_54 {dimension_numbers = #tpu.dot_dimension_numbers<[1], [0], [0], [1], [0, 0, 1, 1], [], []>} : vector<20x8xbf16>, vector<8x16xbf16>, vector<20x16xf32> -> vector<20x16xf32>
    %46 = arith.addf %40, %45 : vector<20x16xf32>
    %c0_55 = arith.constant 0 : index
    %c0_56 = arith.constant 0 : index
    %c6_57 = arith.constant 6 : index
    %c0_58 = arith.constant 0 : index
    %47 = vector.load %arg1[%c0_55, %c0_56, %c6_57, %c0_58] : memref<1x4x30x8xbf16, #tpu.memory_space<vmem>>, vector<1x1x20x8xbf16>
    %48 = vector.shape_cast %47 : vector<1x1x20x8xbf16> to vector<20x8xbf16>
    %c8 = arith.constant 8 : index
    %c0_59 = arith.constant 0 : index
    %c0_60 = arith.constant 0 : index
    %49 = vector.load %arg2[%c8, %c0_59, %c0_60] : memref<9x8x16xbf16, #tpu.memory_space<vmem>>, vector<1x8x16xbf16>
    %50 = vector.shape_cast %49 : vector<1x8x16xbf16> to vector<8x16xbf16>
    %cst_61 = arith.constant dense<0.000000e+00> : vector<20x16xf32>
    %51 = tpu.matmul %48, %50, %cst_61 {dimension_numbers = #tpu.dot_dimension_numbers<[1], [0], [0], [1], [0, 0, 1, 1], [], []>} : vector<20x8xbf16>, vector<8x16xbf16>, vector<20x16xf32> -> vector<20x16xf32>
    %52 = arith.addf %46, %51 : vector<20x16xf32>
    %c0_62 = arith.constant 0 : index
    %c1_63 = arith.constant 1 : index
    %c0_64 = arith.constant 0 : index
    %c0_65 = arith.constant 0 : index
    %53 = vector.load %arg1[%c0_62, %c1_63, %c0_64, %c0_65] : memref<1x4x30x8xbf16, #tpu.memory_space<vmem>>, vector<1x1x20x8xbf16>
    %54 = vector.shape_cast %53 : vector<1x1x20x8xbf16> to vector<20x8xbf16>
    %c0_66 = arith.constant 0 : index
    %c0_67 = arith.constant 0 : index
    %c0_68 = arith.constant 0 : index
    %55 = vector.load %arg2[%c0_66, %c0_67, %c0_68] : memref<9x8x16xbf16, #tpu.memory_space<vmem>>, vector<1x8x16xbf16>
    %56 = vector.shape_cast %55 : vector<1x8x16xbf16> to vector<8x16xbf16>
    %cst_69 = arith.constant dense<0.000000e+00> : vector<20x16xf32>
    %57 = tpu.matmul %54, %56, %cst_69 {dimension_numbers = #tpu.dot_dimension_numbers<[1], [0], [0], [1], [0, 0, 1, 1], [], []>} : vector<20x8xbf16>, vector<8x16xbf16>, vector<20x16xf32> -> vector<20x16xf32>
    %c0_70 = arith.constant 0 : index
    %c0_71 = arith.constant 0 : index
    %c1_72 = arith.constant 1 : index
    %c0_73 = arith.constant 0 : index
    %58 = vector.load %arg1[%c0_70, %c0_71, %c1_72, %c0_73] : memref<1x4x30x8xbf16, #tpu.memory_space<vmem>>, vector<1x1x20x8xbf16>
    %59 = vector.shape_cast %58 : vector<1x1x20x8xbf16> to vector<20x8xbf16>
    %c1_74 = arith.constant 1 : index
    %c0_75 = arith.constant 0 : index
    %c0_76 = arith.constant 0 : index
    %60 = vector.load %arg2[%c1_74, %c0_75, %c0_76] : memref<9x8x16xbf16, #tpu.memory_space<vmem>>, vector<1x8x16xbf16>
    %61 = vector.shape_cast %60 : vector<1x8x16xbf16> to vector<8x16xbf16>
    %cst_77 = arith.constant dense<0.000000e+00> : vector<20x16xf32>
    %62 = tpu.matmul %59, %61, %cst_77 {dimension_numbers = #tpu.dot_dimension_numbers<[1], [0], [0], [1], [0, 0, 1, 1], [], []>} : vector<20x8xbf16>, vector<8x16xbf16>, vector<20x16xf32> -> vector<20x16xf32>
    %63 = arith.addf %57, %62 : vector<20x16xf32>
    %c0_78 = arith.constant 0 : index
    %c1_79 = arith.constant 1 : index
    %c1_80 = arith.constant 1 : index
    %c0_81 = arith.constant 0 : index
    %64 = vector.load %arg1[%c0_78, %c1_79, %c1_80, %c0_81] : memref<1x4x30x8xbf16, #tpu.memory_space<vmem>>, vector<1x1x20x8xbf16>
    %65 = vector.shape_cast %64 : vector<1x1x20x8xbf16> to vector<20x8xbf16>
    %c2_82 = arith.constant 2 : index
    %c0_83 = arith.constant 0 : index
    %c0_84 = arith.constant 0 : index
    %66 = vector.load %arg2[%c2_82, %c0_83, %c0_84] : memref<9x8x16xbf16, #tpu.memory_space<vmem>>, vector<1x8x16xbf16>
    %67 = vector.shape_cast %66 : vector<1x8x16xbf16> to vector<8x16xbf16>
    %cst_85 = arith.constant dense<0.000000e+00> : vector<20x16xf32>
    %68 = tpu.matmul %65, %67, %cst_85 {dimension_numbers = #tpu.dot_dimension_numbers<[1], [0], [0], [1], [0, 0, 1, 1], [], []>} : vector<20x8xbf16>, vector<8x16xbf16>, vector<20x16xf32> -> vector<20x16xf32>
    %69 = arith.addf %63, %68 : vector<20x16xf32>
    %c0_86 = arith.constant 0 : index
    %c3_87 = arith.constant 3 : index
    %c0_88 = arith.constant 0 : index
    %c0_89 = arith.constant 0 : index
    %70 = vector.load %arg1[%c0_86, %c3_87, %c0_88, %c0_89] : memref<1x4x30x8xbf16, #tpu.memory_space<vmem>>, vector<1x1x20x8xbf16>
    %71 = vector.shape_cast %70 : vector<1x1x20x8xbf16> to vector<20x8xbf16>
    %c3_90 = arith.constant 3 : index
    %c0_91 = arith.constant 0 : index
    %c0_92 = arith.constant 0 : index
    %72 = vector.load %arg2[%c3_90, %c0_91, %c0_92] : memref<9x8x16xbf16, #tpu.memory_space<vmem>>, vector<1x8x16xbf16>
    %73 = vector.shape_cast %72 : vector<1x8x16xbf16> to vector<8x16xbf16>
    %cst_93 = arith.constant dense<0.000000e+00> : vector<20x16xf32>
    %74 = tpu.matmul %71, %73, %cst_93 {dimension_numbers = #tpu.dot_dimension_numbers<[1], [0], [0], [1], [0, 0, 1, 1], [], []>} : vector<20x8xbf16>, vector<8x16xbf16>, vector<20x16xf32> -> vector<20x16xf32>
    %75 = arith.addf %69, %74 : vector<20x16xf32>
    %c0_94 = arith.constant 0 : index
    %c2_95 = arith.constant 2 : index
    %c1_96 = arith.constant 1 : index
    %c0_97 = arith.constant 0 : index
    %76 = vector.load %arg1[%c0_94, %c2_95, %c1_96, %c0_97] : memref<1x4x30x8xbf16, #tpu.memory_space<vmem>>, vector<1x1x20x8xbf16>
    %77 = vector.shape_cast %76 : vector<1x1x20x8xbf16> to vector<20x8xbf16>
    %c4_98 = arith.constant 4 : index
    %c0_99 = arith.constant 0 : index
    %c0_100 = arith.constant 0 : index
    %78 = vector.load %arg2[%c4_98, %c0_99, %c0_100] : memref<9x8x16xbf16, #tpu.memory_space<vmem>>, vector<1x8x16xbf16>
    %79 = vector.shape_cast %78 : vector<1x8x16xbf16> to vector<8x16xbf16>
    %cst_101 = arith.constant dense<0.000000e+00> : vector<20x16xf32>
    %80 = tpu.matmul %77, %79, %cst_101 {dimension_numbers = #tpu.dot_dimension_numbers<[1], [0], [0], [1], [0, 0, 1, 1], [], []>} : vector<20x8xbf16>, vector<8x16xbf16>, vector<20x16xf32> -> vector<20x16xf32>
    %81 = arith.addf %75, %80 : vector<20x16xf32>
    %c0_102 = arith.constant 0 : index
    %c3_103 = arith.constant 3 : index
    %c1_104 = arith.constant 1 : index
    %c0_105 = arith.constant 0 : index
    %82 = vector.load %arg1[%c0_102, %c3_103, %c1_104, %c0_105] : memref<1x4x30x8xbf16, #tpu.memory_space<vmem>>, vector<1x1x20x8xbf16>
    %83 = vector.shape_cast %82 : vector<1x1x20x8xbf16> to vector<20x8xbf16>
    %c5_106 = arith.constant 5 : index
    %c0_107 = arith.constant 0 : index
    %c0_108 = arith.constant 0 : index
    %84 = vector.load %arg2[%c5_106, %c0_107, %c0_108] : memref<9x8x16xbf16, #tpu.memory_space<vmem>>, vector<1x8x16xbf16>
    %85 = vector.shape_cast %84 : vector<1x8x16xbf16> to vector<8x16xbf16>
    %cst_109 = arith.constant dense<0.000000e+00> : vector<20x16xf32>
    %86 = tpu.matmul %83, %85, %cst_109 {dimension_numbers = #tpu.dot_dimension_numbers<[1], [0], [0], [1], [0, 0, 1, 1], [], []>} : vector<20x8xbf16>, vector<8x16xbf16>, vector<20x16xf32> -> vector<20x16xf32>
    %87 = arith.addf %81, %86 : vector<20x16xf32>
    %c0_110 = arith.constant 0 : index
    %c1_111 = arith.constant 1 : index
    %c5_112 = arith.constant 5 : index
    %c0_113 = arith.constant 0 : index
    %88 = vector.load %arg1[%c0_110, %c1_111, %c5_112, %c0_113] : memref<1x4x30x8xbf16, #tpu.memory_space<vmem>>, vector<1x1x20x8xbf16>
    %89 = vector.shape_cast %88 : vector<1x1x20x8xbf16> to vector<20x8xbf16>
    %c6_114 = arith.constant 6 : index
    %c0_115 = arith.constant 0 : index
    %c0_116 = arith.constant 0 : index
    %90 = vector.load %arg2[%c6_114, %c0_115, %c0_116] : memref<9x8x16xbf16, #tpu.memory_space<vmem>>, vector<1x8x16xbf16>
    %91 = vector.shape_cast %90 : vector<1x8x16xbf16> to vector<8x16xbf16>
    %cst_117 = arith.constant dense<0.000000e+00> : vector<20x16xf32>
    %92 = tpu.matmul %89, %91, %cst_117 {dimension_numbers = #tpu.dot_dimension_numbers<[1], [0], [0], [1], [0, 0, 1, 1], [], []>} : vector<20x8xbf16>, vector<8x16xbf16>, vector<20x16xf32> -> vector<20x16xf32>
    %93 = arith.addf %87, %92 : vector<20x16xf32>
    %c0_118 = arith.constant 0 : index
    %c0_119 = arith.constant 0 : index
    %c6_120 = arith.constant 6 : index
    %c0_121 = arith.constant 0 : index
    %94 = vector.load %arg1[%c0_118, %c0_119, %c6_120, %c0_121] : memref<1x4x30x8xbf16, #tpu.memory_space<vmem>>, vector<1x1x20x8xbf16>
    %95 = vector.shape_cast %94 : vector<1x1x20x8xbf16> to vector<20x8xbf16>
    %c7_122 = arith.constant 7 : index
    %c0_123 = arith.constant 0 : index
    %c0_124 = arith.constant 0 : index
    %96 = vector.load %arg2[%c7_122, %c0_123, %c0_124] : memref<9x8x16xbf16, #tpu.memory_space<vmem>>, vector<1x8x16xbf16>
    %97 = vector.shape_cast %96 : vector<1x8x16xbf16> to vector<8x16xbf16>
    %cst_125 = arith.constant dense<0.000000e+00> : vector<20x16xf32>
    %98 = tpu.matmul %95, %97, %cst_125 {dimension_numbers = #tpu.dot_dimension_numbers<[1], [0], [0], [1], [0, 0, 1, 1], [], []>} : vector<20x8xbf16>, vector<8x16xbf16>, vector<20x16xf32> -> vector<20x16xf32>
    %99 = arith.addf %93, %98 : vector<20x16xf32>
    %c0_126 = arith.constant 0 : index
    %c1_127 = arith.constant 1 : index
    %c6_128 = arith.constant 6 : index
    %c0_129 = arith.constant 0 : index
    %100 = vector.load %arg1[%c0_126, %c1_127, %c6_128, %c0_129] : memref<1x4x30x8xbf16, #tpu.memory_space<vmem>>, vector<1x1x20x8xbf16>
    %101 = vector.shape_cast %100 : vector<1x1x20x8xbf16> to vector<20x8xbf16>
    %c8_130 = arith.constant 8 : index
    %c0_131 = arith.constant 0 : index
    %c0_132 = arith.constant 0 : index
    %102 = vector.load %arg2[%c8_130, %c0_131, %c0_132] : memref<9x8x16xbf16, #tpu.memory_space<vmem>>, vector<1x8x16xbf16>
    %103 = vector.shape_cast %102 : vector<1x8x16xbf16> to vector<8x16xbf16>
    %cst_133 = arith.constant dense<0.000000e+00> : vector<20x16xf32>
    %104 = tpu.matmul %101, %103, %cst_133 {dimension_numbers = #tpu.dot_dimension_numbers<[1], [0], [0], [1], [0, 0, 1, 1], [], []>} : vector<20x8xbf16>, vector<8x16xbf16>, vector<20x16xf32> -> vector<20x16xf32>
    %105 = arith.addf %99, %104 : vector<20x16xf32>
    %106 = arith.maximumf %52, %105 : vector<20x16xf32>
    %c0_134 = arith.constant 0 : index
    %c2_135 = arith.constant 2 : index
    %c0_136 = arith.constant 0 : index
    %c0_137 = arith.constant 0 : index
    %107 = vector.load %arg1[%c0_134, %c2_135, %c0_136, %c0_137] : memref<1x4x30x8xbf16, #tpu.memory_space<vmem>>, vector<1x1x20x8xbf16>
    %108 = vector.shape_cast %107 : vector<1x1x20x8xbf16> to vector<20x8xbf16>
    %c0_138 = arith.constant 0 : index
    %c0_139 = arith.constant 0 : index
    %c0_140 = arith.constant 0 : index
    %109 = vector.load %arg2[%c0_138, %c0_139, %c0_140] : memref<9x8x16xbf16, #tpu.memory_space<vmem>>, vector<1x8x16xbf16>
    %110 = vector.shape_cast %109 : vector<1x8x16xbf16> to vector<8x16xbf16>
    %cst_141 = arith.constant dense<0.000000e+00> : vector<20x16xf32>
    %111 = tpu.matmul %108, %110, %cst_141 {dimension_numbers = #tpu.dot_dimension_numbers<[1], [0], [0], [1], [0, 0, 1, 1], [], []>} : vector<20x8xbf16>, vector<8x16xbf16>, vector<20x16xf32> -> vector<20x16xf32>
    %c0_142 = arith.constant 0 : index
    %c3_143 = arith.constant 3 : index
    %c0_144 = arith.constant 0 : index
    %c0_145 = arith.constant 0 : index
    %112 = vector.load %arg1[%c0_142, %c3_143, %c0_144, %c0_145] : memref<1x4x30x8xbf16, #tpu.memory_space<vmem>>, vector<1x1x20x8xbf16>
    %113 = vector.shape_cast %112 : vector<1x1x20x8xbf16> to vector<20x8xbf16>
    %c1_146 = arith.constant 1 : index
    %c0_147 = arith.constant 0 : index
    %c0_148 = arith.constant 0 : index
    %114 = vector.load %arg2[%c1_146, %c0_147, %c0_148] : memref<9x8x16xbf16, #tpu.memory_space<vmem>>, vector<1x8x16xbf16>
    %115 = vector.shape_cast %114 : vector<1x8x16xbf16> to vector<8x16xbf16>
    %cst_149 = arith.constant dense<0.000000e+00> : vector<20x16xf32>
    %116 = tpu.matmul %113, %115, %cst_149 {dimension_numbers = #tpu.dot_dimension_numbers<[1], [0], [0], [1], [0, 0, 1, 1], [], []>} : vector<20x8xbf16>, vector<8x16xbf16>, vector<20x16xf32> -> vector<20x16xf32>
    %117 = arith.addf %111, %116 : vector<20x16xf32>
    %c0_150 = arith.constant 0 : index
    %c2_151 = arith.constant 2 : index
    %c1_152 = arith.constant 1 : index
    %c0_153 = arith.constant 0 : index
    %118 = vector.load %arg1[%c0_150, %c2_151, %c1_152, %c0_153] : memref<1x4x30x8xbf16, #tpu.memory_space<vmem>>, vector<1x1x20x8xbf16>
    %119 = vector.shape_cast %118 : vector<1x1x20x8xbf16> to vector<20x8xbf16>
    %c2_154 = arith.constant 2 : index
    %c0_155 = arith.constant 0 : index
    %c0_156 = arith.constant 0 : index
    %120 = vector.load %arg2[%c2_154, %c0_155, %c0_156] : memref<9x8x16xbf16, #tpu.memory_space<vmem>>, vector<1x8x16xbf16>
    %121 = vector.shape_cast %120 : vector<1x8x16xbf16> to vector<8x16xbf16>
    %cst_157 = arith.constant dense<0.000000e+00> : vector<20x16xf32>
    %122 = tpu.matmul %119, %121, %cst_157 {dimension_numbers = #tpu.dot_dimension_numbers<[1], [0], [0], [1], [0, 0, 1, 1], [], []>} : vector<20x8xbf16>, vector<8x16xbf16>, vector<20x16xf32> -> vector<20x16xf32>
    %123 = arith.addf %117, %122 : vector<20x16xf32>
    %c0_158 = arith.constant 0 : index
    %c0_159 = arith.constant 0 : index
    %c5_160 = arith.constant 5 : index
    %c0_161 = arith.constant 0 : index
    %124 = vector.load %arg1[%c0_158, %c0_159, %c5_160, %c0_161] : memref<1x4x30x8xbf16, #tpu.memory_space<vmem>>, vector<1x1x20x8xbf16>
    %125 = vector.shape_cast %124 : vector<1x1x20x8xbf16> to vector<20x8xbf16>
    %c3_162 = arith.constant 3 : index
    %c0_163 = arith.constant 0 : index
    %c0_164 = arith.constant 0 : index
    %126 = vector.load %arg2[%c3_162, %c0_163, %c0_164] : memref<9x8x16xbf16, #tpu.memory_space<vmem>>, vector<1x8x16xbf16>
    %127 = vector.shape_cast %126 : vector<1x8x16xbf16> to vector<8x16xbf16>
    %cst_165 = arith.constant dense<0.000000e+00> : vector<20x16xf32>
    %128 = tpu.matmul %125, %127, %cst_165 {dimension_numbers = #tpu.dot_dimension_numbers<[1], [0], [0], [1], [0, 0, 1, 1], [], []>} : vector<20x8xbf16>, vector<8x16xbf16>, vector<20x16xf32> -> vector<20x16xf32>
    %129 = arith.addf %123, %128 : vector<20x16xf32>
    %c0_166 = arith.constant 0 : index
    %c1_167 = arith.constant 1 : index
    %c5_168 = arith.constant 5 : index
    %c0_169 = arith.constant 0 : index
    %130 = vector.load %arg1[%c0_166, %c1_167, %c5_168, %c0_169] : memref<1x4x30x8xbf16, #tpu.memory_space<vmem>>, vector<1x1x20x8xbf16>
    %131 = vector.shape_cast %130 : vector<1x1x20x8xbf16> to vector<20x8xbf16>
    %c4_170 = arith.constant 4 : index
    %c0_171 = arith.constant 0 : index
    %c0_172 = arith.constant 0 : index
    %132 = vector.load %arg2[%c4_170, %c0_171, %c0_172] : memref<9x8x16xbf16, #tpu.memory_space<vmem>>, vector<1x8x16xbf16>
    %133 = vector.shape_cast %132 : vector<1x8x16xbf16> to vector<8x16xbf16>
    %cst_173 = arith.constant dense<0.000000e+00> : vector<20x16xf32>
    %134 = tpu.matmul %131, %133, %cst_173 {dimension_numbers = #tpu.dot_dimension_numbers<[1], [0], [0], [1], [0, 0, 1, 1], [], []>} : vector<20x8xbf16>, vector<8x16xbf16>, vector<20x16xf32> -> vector<20x16xf32>
    %135 = arith.addf %129, %134 : vector<20x16xf32>
    %c0_174 = arith.constant 0 : index
    %c0_175 = arith.constant 0 : index
    %c6_176 = arith.constant 6 : index
    %c0_177 = arith.constant 0 : index
    %136 = vector.load %arg1[%c0_174, %c0_175, %c6_176, %c0_177] : memref<1x4x30x8xbf16, #tpu.memory_space<vmem>>, vector<1x1x20x8xbf16>
    %137 = vector.shape_cast %136 : vector<1x1x20x8xbf16> to vector<20x8xbf16>
    %c5_178 = arith.constant 5 : index
    %c0_179 = arith.constant 0 : index
    %c0_180 = arith.constant 0 : index
    %138 = vector.load %arg2[%c5_178, %c0_179, %c0_180] : memref<9x8x16xbf16, #tpu.memory_space<vmem>>, vector<1x8x16xbf16>
    %139 = vector.shape_cast %138 : vector<1x8x16xbf16> to vector<8x16xbf16>
    %cst_181 = arith.constant dense<0.000000e+00> : vector<20x16xf32>
    %140 = tpu.matmul %137, %139, %cst_181 {dimension_numbers = #tpu.dot_dimension_numbers<[1], [0], [0], [1], [0, 0, 1, 1], [], []>} : vector<20x8xbf16>, vector<8x16xbf16>, vector<20x16xf32> -> vector<20x16xf32>
    %141 = arith.addf %135, %140 : vector<20x16xf32>
    %c0_182 = arith.constant 0 : index
    %c2_183 = arith.constant 2 : index
    %c5_184 = arith.constant 5 : index
    %c0_185 = arith.constant 0 : index
    %142 = vector.load %arg1[%c0_182, %c2_183, %c5_184, %c0_185] : memref<1x4x30x8xbf16, #tpu.memory_space<vmem>>, vector<1x1x20x8xbf16>
    %143 = vector.shape_cast %142 : vector<1x1x20x8xbf16> to vector<20x8xbf16>
    %c6_186 = arith.constant 6 : index
    %c0_187 = arith.constant 0 : index
    %c0_188 = arith.constant 0 : index
    %144 = vector.load %arg2[%c6_186, %c0_187, %c0_188] : memref<9x8x16xbf16, #tpu.memory_space<vmem>>, vector<1x8x16xbf16>
    %145 = vector.shape_cast %144 : vector<1x8x16xbf16> to vector<8x16xbf16>
    %cst_189 = arith.constant dense<0.000000e+00> : vector<20x16xf32>
    %146 = tpu.matmul %143, %145, %cst_189 {dimension_numbers = #tpu.dot_dimension_numbers<[1], [0], [0], [1], [0, 0, 1, 1], [], []>} : vector<20x8xbf16>, vector<8x16xbf16>, vector<20x16xf32> -> vector<20x16xf32>
    %147 = arith.addf %141, %146 : vector<20x16xf32>
    %c0_190 = arith.constant 0 : index
    %c3_191 = arith.constant 3 : index
    %c5_192 = arith.constant 5 : index
    %c0_193 = arith.constant 0 : index
    %148 = vector.load %arg1[%c0_190, %c3_191, %c5_192, %c0_193] : memref<1x4x30x8xbf16, #tpu.memory_space<vmem>>, vector<1x1x20x8xbf16>
    %149 = vector.shape_cast %148 : vector<1x1x20x8xbf16> to vector<20x8xbf16>
    %c7_194 = arith.constant 7 : index
    %c0_195 = arith.constant 0 : index
    %c0_196 = arith.constant 0 : index
    %150 = vector.load %arg2[%c7_194, %c0_195, %c0_196] : memref<9x8x16xbf16, #tpu.memory_space<vmem>>, vector<1x8x16xbf16>
    %151 = vector.shape_cast %150 : vector<1x8x16xbf16> to vector<8x16xbf16>
    %cst_197 = arith.constant dense<0.000000e+00> : vector<20x16xf32>
    %152 = tpu.matmul %149, %151, %cst_197 {dimension_numbers = #tpu.dot_dimension_numbers<[1], [0], [0], [1], [0, 0, 1, 1], [], []>} : vector<20x8xbf16>, vector<8x16xbf16>, vector<20x16xf32> -> vector<20x16xf32>
    %153 = arith.addf %147, %152 : vector<20x16xf32>
    %c0_198 = arith.constant 0 : index
    %c2_199 = arith.constant 2 : index
    %c6_200 = arith.constant 6 : index
    %c0_201 = arith.constant 0 : index
    %154 = vector.load %arg1[%c0_198, %c2_199, %c6_200, %c0_201] : memref<1x4x30x8xbf16, #tpu.memory_space<vmem>>, vector<1x1x20x8xbf16>
    %155 = vector.shape_cast %154 : vector<1x1x20x8xbf16> to vector<20x8xbf16>
    %c8_202 = arith.constant 8 : index
    %c0_203 = arith.constant 0 : index
    %c0_204 = arith.constant 0 : index
    %156 = vector.load %arg2[%c8_202, %c0_203, %c0_204] : memref<9x8x16xbf16, #tpu.memory_space<vmem>>, vector<1x8x16xbf16>
    %157 = vector.shape_cast %156 : vector<1x8x16xbf16> to vector<8x16xbf16>
    %cst_205 = arith.constant dense<0.000000e+00> : vector<20x16xf32>
    %158 = tpu.matmul %155, %157, %cst_205 {dimension_numbers = #tpu.dot_dimension_numbers<[1], [0], [0], [1], [0, 0, 1, 1], [], []>} : vector<20x8xbf16>, vector<8x16xbf16>, vector<20x16xf32> -> vector<20x16xf32>
    %159 = arith.addf %153, %158 : vector<20x16xf32>
    %160 = arith.maximumf %106, %159 : vector<20x16xf32>
    %c0_206 = arith.constant 0 : index
    %c3_207 = arith.constant 3 : index
    %c0_208 = arith.constant 0 : index
    %c0_209 = arith.constant 0 : index
    %161 = vector.load %arg1[%c0_206, %c3_207, %c0_208, %c0_209] : memref<1x4x30x8xbf16, #tpu.memory_space<vmem>>, vector<1x1x20x8xbf16>
    %162 = vector.shape_cast %161 : vector<1x1x20x8xbf16> to vector<20x8xbf16>
    %c0_210 = arith.constant 0 : index
    %c0_211 = arith.constant 0 : index
    %c0_212 = arith.constant 0 : index
    %163 = vector.load %arg2[%c0_210, %c0_211, %c0_212] : memref<9x8x16xbf16, #tpu.memory_space<vmem>>, vector<1x8x16xbf16>
    %164 = vector.shape_cast %163 : vector<1x8x16xbf16> to vector<8x16xbf16>
    %cst_213 = arith.constant dense<0.000000e+00> : vector<20x16xf32>
    %165 = tpu.matmul %162, %164, %cst_213 {dimension_numbers = #tpu.dot_dimension_numbers<[1], [0], [0], [1], [0, 0, 1, 1], [], []>} : vector<20x8xbf16>, vector<8x16xbf16>, vector<20x16xf32> -> vector<20x16xf32>
    %c0_214 = arith.constant 0 : index
    %c2_215 = arith.constant 2 : index
    %c1_216 = arith.constant 1 : index
    %c0_217 = arith.constant 0 : index
    %166 = vector.load %arg1[%c0_214, %c2_215, %c1_216, %c0_217] : memref<1x4x30x8xbf16, #tpu.memory_space<vmem>>, vector<1x1x20x8xbf16>
    %167 = vector.shape_cast %166 : vector<1x1x20x8xbf16> to vector<20x8xbf16>
    %c1_218 = arith.constant 1 : index
    %c0_219 = arith.constant 0 : index
    %c0_220 = arith.constant 0 : index
    %168 = vector.load %arg2[%c1_218, %c0_219, %c0_220] : memref<9x8x16xbf16, #tpu.memory_space<vmem>>, vector<1x8x16xbf16>
    %169 = vector.shape_cast %168 : vector<1x8x16xbf16> to vector<8x16xbf16>
    %cst_221 = arith.constant dense<0.000000e+00> : vector<20x16xf32>
    %170 = tpu.matmul %167, %169, %cst_221 {dimension_numbers = #tpu.dot_dimension_numbers<[1], [0], [0], [1], [0, 0, 1, 1], [], []>} : vector<20x8xbf16>, vector<8x16xbf16>, vector<20x16xf32> -> vector<20x16xf32>
    %171 = arith.addf %165, %170 : vector<20x16xf32>
    %c0_222 = arith.constant 0 : index
    %c3_223 = arith.constant 3 : index
    %c1_224 = arith.constant 1 : index
    %c0_225 = arith.constant 0 : index
    %172 = vector.load %arg1[%c0_222, %c3_223, %c1_224, %c0_225] : memref<1x4x30x8xbf16, #tpu.memory_space<vmem>>, vector<1x1x20x8xbf16>
    %173 = vector.shape_cast %172 : vector<1x1x20x8xbf16> to vector<20x8xbf16>
    %c2_226 = arith.constant 2 : index
    %c0_227 = arith.constant 0 : index
    %c0_228 = arith.constant 0 : index
    %174 = vector.load %arg2[%c2_226, %c0_227, %c0_228] : memref<9x8x16xbf16, #tpu.memory_space<vmem>>, vector<1x8x16xbf16>
    %175 = vector.shape_cast %174 : vector<1x8x16xbf16> to vector<8x16xbf16>
    %cst_229 = arith.constant dense<0.000000e+00> : vector<20x16xf32>
    %176 = tpu.matmul %173, %175, %cst_229 {dimension_numbers = #tpu.dot_dimension_numbers<[1], [0], [0], [1], [0, 0, 1, 1], [], []>} : vector<20x8xbf16>, vector<8x16xbf16>, vector<20x16xf32> -> vector<20x16xf32>
    %177 = arith.addf %171, %176 : vector<20x16xf32>
    %c0_230 = arith.constant 0 : index
    %c1_231 = arith.constant 1 : index
    %c5_232 = arith.constant 5 : index
    %c0_233 = arith.constant 0 : index
    %178 = vector.load %arg1[%c0_230, %c1_231, %c5_232, %c0_233] : memref<1x4x30x8xbf16, #tpu.memory_space<vmem>>, vector<1x1x20x8xbf16>
    %179 = vector.shape_cast %178 : vector<1x1x20x8xbf16> to vector<20x8xbf16>
    %c3_234 = arith.constant 3 : index
    %c0_235 = arith.constant 0 : index
    %c0_236 = arith.constant 0 : index
    %180 = vector.load %arg2[%c3_234, %c0_235, %c0_236] : memref<9x8x16xbf16, #tpu.memory_space<vmem>>, vector<1x8x16xbf16>
    %181 = vector.shape_cast %180 : vector<1x8x16xbf16> to vector<8x16xbf16>
    %cst_237 = arith.constant dense<0.000000e+00> : vector<20x16xf32>
    %182 = tpu.matmul %179, %181, %cst_237 {dimension_numbers = #tpu.dot_dimension_numbers<[1], [0], [0], [1], [0, 0, 1, 1], [], []>} : vector<20x8xbf16>, vector<8x16xbf16>, vector<20x16xf32> -> vector<20x16xf32>
    %183 = arith.addf %177, %182 : vector<20x16xf32>
    %c0_238 = arith.constant 0 : index
    %c0_239 = arith.constant 0 : index
    %c6_240 = arith.constant 6 : index
    %c0_241 = arith.constant 0 : index
    %184 = vector.load %arg1[%c0_238, %c0_239, %c6_240, %c0_241] : memref<1x4x30x8xbf16, #tpu.memory_space<vmem>>, vector<1x1x20x8xbf16>
    %185 = vector.shape_cast %184 : vector<1x1x20x8xbf16> to vector<20x8xbf16>
    %c4_242 = arith.constant 4 : index
    %c0_243 = arith.constant 0 : index
    %c0_244 = arith.constant 0 : index
    %186 = vector.load %arg2[%c4_242, %c0_243, %c0_244] : memref<9x8x16xbf16, #tpu.memory_space<vmem>>, vector<1x8x16xbf16>
    %187 = vector.shape_cast %186 : vector<1x8x16xbf16> to vector<8x16xbf16>
    %cst_245 = arith.constant dense<0.000000e+00> : vector<20x16xf32>
    %188 = tpu.matmul %185, %187, %cst_245 {dimension_numbers = #tpu.dot_dimension_numbers<[1], [0], [0], [1], [0, 0, 1, 1], [], []>} : vector<20x8xbf16>, vector<8x16xbf16>, vector<20x16xf32> -> vector<20x16xf32>
    %189 = arith.addf %183, %188 : vector<20x16xf32>
    %c0_246 = arith.constant 0 : index
    %c1_247 = arith.constant 1 : index
    %c6_248 = arith.constant 6 : index
    %c0_249 = arith.constant 0 : index
    %190 = vector.load %arg1[%c0_246, %c1_247, %c6_248, %c0_249] : memref<1x4x30x8xbf16, #tpu.memory_space<vmem>>, vector<1x1x20x8xbf16>
    %191 = vector.shape_cast %190 : vector<1x1x20x8xbf16> to vector<20x8xbf16>
    %c5_250 = arith.constant 5 : index
    %c0_251 = arith.constant 0 : index
    %c0_252 = arith.constant 0 : index
    %192 = vector.load %arg2[%c5_250, %c0_251, %c0_252] : memref<9x8x16xbf16, #tpu.memory_space<vmem>>, vector<1x8x16xbf16>
    %193 = vector.shape_cast %192 : vector<1x8x16xbf16> to vector<8x16xbf16>
    %cst_253 = arith.constant dense<0.000000e+00> : vector<20x16xf32>
    %194 = tpu.matmul %191, %193, %cst_253 {dimension_numbers = #tpu.dot_dimension_numbers<[1], [0], [0], [1], [0, 0, 1, 1], [], []>} : vector<20x8xbf16>, vector<8x16xbf16>, vector<20x16xf32> -> vector<20x16xf32>
    %195 = arith.addf %189, %194 : vector<20x16xf32>
    %c0_254 = arith.constant 0 : index
    %c3_255 = arith.constant 3 : index
    %c5_256 = arith.constant 5 : index
    %c0_257 = arith.constant 0 : index
    %196 = vector.load %arg1[%c0_254, %c3_255, %c5_256, %c0_257] : memref<1x4x30x8xbf16, #tpu.memory_space<vmem>>, vector<1x1x20x8xbf16>
    %197 = vector.shape_cast %196 : vector<1x1x20x8xbf16> to vector<20x8xbf16>
    %c6_258 = arith.constant 6 : index
    %c0_259 = arith.constant 0 : index
    %c0_260 = arith.constant 0 : index
    %198 = vector.load %arg2[%c6_258, %c0_259, %c0_260] : memref<9x8x16xbf16, #tpu.memory_space<vmem>>, vector<1x8x16xbf16>
    %199 = vector.shape_cast %198 : vector<1x8x16xbf16> to vector<8x16xbf16>
    %cst_261 = arith.constant dense<0.000000e+00> : vector<20x16xf32>
    %200 = tpu.matmul %197, %199, %cst_261 {dimension_numbers = #tpu.dot_dimension_numbers<[1], [0], [0], [1], [0, 0, 1, 1], [], []>} : vector<20x8xbf16>, vector<8x16xbf16>, vector<20x16xf32> -> vector<20x16xf32>
    %201 = arith.addf %195, %200 : vector<20x16xf32>
    %c0_262 = arith.constant 0 : index
    %c2_263 = arith.constant 2 : index
    %c6_264 = arith.constant 6 : index
    %c0_265 = arith.constant 0 : index
    %202 = vector.load %arg1[%c0_262, %c2_263, %c6_264, %c0_265] : memref<1x4x30x8xbf16, #tpu.memory_space<vmem>>, vector<1x1x20x8xbf16>
    %203 = vector.shape_cast %202 : vector<1x1x20x8xbf16> to vector<20x8xbf16>
    %c7_266 = arith.constant 7 : index
    %c0_267 = arith.constant 0 : index
    %c0_268 = arith.constant 0 : index
    %204 = vector.load %arg2[%c7_266, %c0_267, %c0_268] : memref<9x8x16xbf16, #tpu.memory_space<vmem>>, vector<1x8x16xbf16>
    %205 = vector.shape_cast %204 : vector<1x8x16xbf16> to vector<8x16xbf16>
    %cst_269 = arith.constant dense<0.000000e+00> : vector<20x16xf32>
    %206 = tpu.matmul %203, %205, %cst_269 {dimension_numbers = #tpu.dot_dimension_numbers<[1], [0], [0], [1], [0, 0, 1, 1], [], []>} : vector<20x8xbf16>, vector<8x16xbf16>, vector<20x16xf32> -> vector<20x16xf32>
    %207 = arith.addf %201, %206 : vector<20x16xf32>
    %c0_270 = arith.constant 0 : index
    %c3_271 = arith.constant 3 : index
    %c6_272 = arith.constant 6 : index
    %c0_273 = arith.constant 0 : index
    %208 = vector.load %arg1[%c0_270, %c3_271, %c6_272, %c0_273] : memref<1x4x30x8xbf16, #tpu.memory_space<vmem>>, vector<1x1x20x8xbf16>
    %209 = vector.shape_cast %208 : vector<1x1x20x8xbf16> to vector<20x8xbf16>
    %c8_274 = arith.constant 8 : index
    %c0_275 = arith.constant 0 : index
    %c0_276 = arith.constant 0 : index
    %210 = vector.load %arg2[%c8_274, %c0_275, %c0_276] : memref<9x8x16xbf16, #tpu.memory_space<vmem>>, vector<1x8x16xbf16>
    %211 = vector.shape_cast %210 : vector<1x8x16xbf16> to vector<8x16xbf16>
    %cst_277 = arith.constant dense<0.000000e+00> : vector<20x16xf32>
    %212 = tpu.matmul %209, %211, %cst_277 {dimension_numbers = #tpu.dot_dimension_numbers<[1], [0], [0], [1], [0, 0, 1, 1], [], []>} : vector<20x8xbf16>, vector<8x16xbf16>, vector<20x16xf32> -> vector<20x16xf32>
    %213 = arith.addf %207, %212 : vector<20x16xf32>
    %214 = arith.maximumf %160, %213 : vector<20x16xf32>
    %c0_278 = arith.constant 0 : index
    %c0_279 = arith.constant 0 : index
    %215 = vector.load %arg3[%c0_278, %c0_279] : memref<1x16xf32, #tpu.memory_space<vmem>>, vector<1x16xf32>
    %216 = vector.broadcast %215 : vector<1x16xf32> to vector<20x16xf32>
    %217 = arith.addf %214, %216 : vector<20x16xf32>
    %cst_280 = arith.constant 0.000000e+00 : f32
    %218 = vector.broadcast %cst_280 : f32 to vector<20x16xf32>
    %219 = arith.maximumf %217, %218 : vector<20x16xf32>
    %220 = arith.truncf %219 : vector<20x16xf32> to vector<20x16xbf16>
    %c0_281 = arith.constant 0 : index
    %c0_282 = arith.constant 0 : index
    %c0_283 = arith.constant 0 : index
    %221 = vector.load %arg4[%c0_281, %c0_282, %c0_283] : memref<1x20x16xbf16, #tpu.memory_space<vmem>>, vector<1x20x16xbf16>
    %222 = vector.shape_cast %221 : vector<1x20x16xbf16> to vector<20x16xbf16>
    %223 = vector.shape_cast %220 : vector<20x16xbf16> to vector<1x20x16xbf16>
    tpu.vector_store %arg4[%c0_281, %c0_282, %c0_283], %223 {strides = array<i32>} : memref<1x20x16xbf16, #tpu.memory_space<vmem>>, vector<1x20x16xbf16>,
    return
  }
  func.func @transform_0(%arg0: i32) -> (i32, i32, i32, i32) {
    %c0_i32 = arith.constant 0 : i32
    %c0_i32_0 = arith.constant 0 : i32
    %c0_i32_1 = arith.constant 0 : i32
    %c0_i32_2 = arith.constant 0 : i32
    return %arg0, %c0_i32, %c0_i32_0, %c0_i32_1 : i32, i32, i32, i32
  }
  func.func @transform_1(%arg0: i32) -> (i32, i32, i32) {
    %c0_i32 = arith.constant 0 : i32
    %c0_i32_0 = arith.constant 0 : i32
    %c0_i32_1 = arith.constant 0 : i32
    %c0_i32_2 = arith.constant 0 : i32
    return %c0_i32, %c0_i32_0, %c0_i32_1 : i32, i32, i32
  }
  func.func @transform_2(%arg0: i32) -> (i32, i32) {
    %c0_i32 = arith.constant 0 : i32
    %c0_i32_0 = arith.constant 0 : i32
    %c0_i32_1 = arith.constant 0 : i32
    return %c0_i32, %c0_i32_0 : i32, i32
  }
  func.func @transform_3(%arg0: i32) -> (i32, i32, i32) {
    %c0_i32 = arith.constant 0 : i32
    %c0_i32_0 = arith.constant 0 : i32
    %c0_i32_1 = arith.constant 0 : i32
    return %arg0, %c0_i32, %c0_i32_0 : i32, i32, i32
  }
}

module attributes {stable_mosaic.version = 11 : i64} {
  func.func @_conv_block_kernel(%arg0: i32, %arg1: memref<1x4x12x16xbf16, #tpu.memory_space<vmem>>, %arg2: memref<9x16x32xbf16, #tpu.memory_space<vmem>>, %arg3: memref<1x32xf32, #tpu.memory_space<vmem>>, %arg4: memref<1x6x32xbf16, #tpu.memory_space<vmem>>) attributes {dimension_semantics = [#tpu.dimension_semantics<parallel>], iteration_bounds = array<i64: 2>, scalar_prefetch = 0 : i64, scratch_operands = 0 : i64, tpu.core_type = #tpu.core_type<tc>, window_params = [{transform_indices = @transform_0, window_bounds = array<i64: 1, 4, 12, 16>}, {pipeline_mode = #tpu.pipeline_mode<synchronous>, transform_indices = @transform_1, window_bounds = array<i64: 9, 16, 32>}, {pipeline_mode = #tpu.pipeline_mode<synchronous>, transform_indices = @transform_2, window_bounds = array<i64: 1, 32>}, {transform_indices = @transform_3, window_bounds = array<i64: 1, 6, 32>}]} {
    %c0 = arith.constant 0 : index
    %c0_0 = arith.constant 0 : index
    %c0_1 = arith.constant 0 : index
    %c0_2 = arith.constant 0 : index
    %0 = vector.load %arg1[%c0, %c0_0, %c0_1, %c0_2] : memref<1x4x12x16xbf16, #tpu.memory_space<vmem>>, vector<1x1x6x16xbf16>
    %1 = vector.shape_cast %0 : vector<1x1x6x16xbf16> to vector<6x16xbf16>
    %c0_3 = arith.constant 0 : index
    %c0_4 = arith.constant 0 : index
    %c0_5 = arith.constant 0 : index
    %2 = vector.load %arg2[%c0_3, %c0_4, %c0_5] : memref<9x16x32xbf16, #tpu.memory_space<vmem>>, vector<1x16x32xbf16>
    %3 = vector.shape_cast %2 : vector<1x16x32xbf16> to vector<16x32xbf16>
    %cst = arith.constant dense<0.000000e+00> : vector<6x32xf32>
    %4 = tpu.matmul %1, %3, %cst {dimension_numbers = #tpu.dot_dimension_numbers<[1], [0], [0], [1], [0, 0, 1, 1], [], []>} : vector<6x16xbf16>, vector<16x32xbf16>, vector<6x32xf32> -> vector<6x32xf32>
    %c0_6 = arith.constant 0 : index
    %c1 = arith.constant 1 : index
    %c0_7 = arith.constant 0 : index
    %c0_8 = arith.constant 0 : index
    %5 = vector.load %arg1[%c0_6, %c1, %c0_7, %c0_8] : memref<1x4x12x16xbf16, #tpu.memory_space<vmem>>, vector<1x1x6x16xbf16>
    %6 = vector.shape_cast %5 : vector<1x1x6x16xbf16> to vector<6x16xbf16>
    %c1_9 = arith.constant 1 : index
    %c0_10 = arith.constant 0 : index
    %c0_11 = arith.constant 0 : index
    %7 = vector.load %arg2[%c1_9, %c0_10, %c0_11] : memref<9x16x32xbf16, #tpu.memory_space<vmem>>, vector<1x16x32xbf16>
    %8 = vector.shape_cast %7 : vector<1x16x32xbf16> to vector<16x32xbf16>
    %cst_12 = arith.constant dense<0.000000e+00> : vector<6x32xf32>
    %9 = tpu.matmul %6, %8, %cst_12 {dimension_numbers = #tpu.dot_dimension_numbers<[1], [0], [0], [1], [0, 0, 1, 1], [], []>} : vector<6x16xbf16>, vector<16x32xbf16>, vector<6x32xf32> -> vector<6x32xf32>
    %10 = arith.addf %4, %9 : vector<6x32xf32>
    %c0_13 = arith.constant 0 : index
    %c0_14 = arith.constant 0 : index
    %c1_15 = arith.constant 1 : index
    %c0_16 = arith.constant 0 : index
    %11 = vector.load %arg1[%c0_13, %c0_14, %c1_15, %c0_16] : memref<1x4x12x16xbf16, #tpu.memory_space<vmem>>, vector<1x1x6x16xbf16>
    %12 = vector.shape_cast %11 : vector<1x1x6x16xbf16> to vector<6x16xbf16>
    %c2 = arith.constant 2 : index
    %c0_17 = arith.constant 0 : index
    %c0_18 = arith.constant 0 : index
    %13 = vector.load %arg2[%c2, %c0_17, %c0_18] : memref<9x16x32xbf16, #tpu.memory_space<vmem>>, vector<1x16x32xbf16>
    %14 = vector.shape_cast %13 : vector<1x16x32xbf16> to vector<16x32xbf16>
    %cst_19 = arith.constant dense<0.000000e+00> : vector<6x32xf32>
    %15 = tpu.matmul %12, %14, %cst_19 {dimension_numbers = #tpu.dot_dimension_numbers<[1], [0], [0], [1], [0, 0, 1, 1], [], []>} : vector<6x16xbf16>, vector<16x32xbf16>, vector<6x32xf32> -> vector<6x32xf32>
    %16 = arith.addf %10, %15 : vector<6x32xf32>
    %c0_20 = arith.constant 0 : index
    %c2_21 = arith.constant 2 : index
    %c0_22 = arith.constant 0 : index
    %c0_23 = arith.constant 0 : index
    %17 = vector.load %arg1[%c0_20, %c2_21, %c0_22, %c0_23] : memref<1x4x12x16xbf16, #tpu.memory_space<vmem>>, vector<1x1x6x16xbf16>
    %18 = vector.shape_cast %17 : vector<1x1x6x16xbf16> to vector<6x16xbf16>
    %c3 = arith.constant 3 : index
    %c0_24 = arith.constant 0 : index
    %c0_25 = arith.constant 0 : index
    %19 = vector.load %arg2[%c3, %c0_24, %c0_25] : memref<9x16x32xbf16, #tpu.memory_space<vmem>>, vector<1x16x32xbf16>
    %20 = vector.shape_cast %19 : vector<1x16x32xbf16> to vector<16x32xbf16>
    %cst_26 = arith.constant dense<0.000000e+00> : vector<6x32xf32>
    %21 = tpu.matmul %18, %20, %cst_26 {dimension_numbers = #tpu.dot_dimension_numbers<[1], [0], [0], [1], [0, 0, 1, 1], [], []>} : vector<6x16xbf16>, vector<16x32xbf16>, vector<6x32xf32> -> vector<6x32xf32>
    %22 = arith.addf %16, %21 : vector<6x32xf32>
    %c0_27 = arith.constant 0 : index
    %c3_28 = arith.constant 3 : index
    %c0_29 = arith.constant 0 : index
    %c0_30 = arith.constant 0 : index
    %23 = vector.load %arg1[%c0_27, %c3_28, %c0_29, %c0_30] : memref<1x4x12x16xbf16, #tpu.memory_space<vmem>>, vector<1x1x6x16xbf16>
    %24 = vector.shape_cast %23 : vector<1x1x6x16xbf16> to vector<6x16xbf16>
    %c4 = arith.constant 4 : index
    %c0_31 = arith.constant 0 : index
    %c0_32 = arith.constant 0 : index
    %25 = vector.load %arg2[%c4, %c0_31, %c0_32] : memref<9x16x32xbf16, #tpu.memory_space<vmem>>, vector<1x16x32xbf16>
    %26 = vector.shape_cast %25 : vector<1x16x32xbf16> to vector<16x32xbf16>
    %cst_33 = arith.constant dense<0.000000e+00> : vector<6x32xf32>
    %27 = tpu.matmul %24, %26, %cst_33 {dimension_numbers = #tpu.dot_dimension_numbers<[1], [0], [0], [1], [0, 0, 1, 1], [], []>} : vector<6x16xbf16>, vector<16x32xbf16>, vector<6x32xf32> -> vector<6x32xf32>
    %28 = arith.addf %22, %27 : vector<6x32xf32>
    %c0_34 = arith.constant 0 : index
    %c2_35 = arith.constant 2 : index
    %c1_36 = arith.constant 1 : index
    %c0_37 = arith.constant 0 : index
    %29 = vector.load %arg1[%c0_34, %c2_35, %c1_36, %c0_37] : memref<1x4x12x16xbf16, #tpu.memory_space<vmem>>, vector<1x1x6x16xbf16>
    %30 = vector.shape_cast %29 : vector<1x1x6x16xbf16> to vector<6x16xbf16>
    %c5 = arith.constant 5 : index
    %c0_38 = arith.constant 0 : index
    %c0_39 = arith.constant 0 : index
    %31 = vector.load %arg2[%c5, %c0_38, %c0_39] : memref<9x16x32xbf16, #tpu.memory_space<vmem>>, vector<1x16x32xbf16>
    %32 = vector.shape_cast %31 : vector<1x16x32xbf16> to vector<16x32xbf16>
    %cst_40 = arith.constant dense<0.000000e+00> : vector<6x32xf32>
    %33 = tpu.matmul %30, %32, %cst_40 {dimension_numbers = #tpu.dot_dimension_numbers<[1], [0], [0], [1], [0, 0, 1, 1], [], []>} : vector<6x16xbf16>, vector<16x32xbf16>, vector<6x32xf32> -> vector<6x32xf32>
    %34 = arith.addf %28, %33 : vector<6x32xf32>
    %c0_41 = arith.constant 0 : index
    %c0_42 = arith.constant 0 : index
    %c3_43 = arith.constant 3 : index
    %c0_44 = arith.constant 0 : index
    %35 = vector.load %arg1[%c0_41, %c0_42, %c3_43, %c0_44] : memref<1x4x12x16xbf16, #tpu.memory_space<vmem>>, vector<1x1x6x16xbf16>
    %36 = vector.shape_cast %35 : vector<1x1x6x16xbf16> to vector<6x16xbf16>
    %c6 = arith.constant 6 : index
    %c0_45 = arith.constant 0 : index
    %c0_46 = arith.constant 0 : index
    %37 = vector.load %arg2[%c6, %c0_45, %c0_46] : memref<9x16x32xbf16, #tpu.memory_space<vmem>>, vector<1x16x32xbf16>
    %38 = vector.shape_cast %37 : vector<1x16x32xbf16> to vector<16x32xbf16>
    %cst_47 = arith.constant dense<0.000000e+00> : vector<6x32xf32>
    %39 = tpu.matmul %36, %38, %cst_47 {dimension_numbers = #tpu.dot_dimension_numbers<[1], [0], [0], [1], [0, 0, 1, 1], [], []>} : vector<6x16xbf16>, vector<16x32xbf16>, vector<6x32xf32> -> vector<6x32xf32>
    %40 = arith.addf %34, %39 : vector<6x32xf32>
    %c0_48 = arith.constant 0 : index
    %c1_49 = arith.constant 1 : index
    %c3_50 = arith.constant 3 : index
    %c0_51 = arith.constant 0 : index
    %41 = vector.load %arg1[%c0_48, %c1_49, %c3_50, %c0_51] : memref<1x4x12x16xbf16, #tpu.memory_space<vmem>>, vector<1x1x6x16xbf16>
    %42 = vector.shape_cast %41 : vector<1x1x6x16xbf16> to vector<6x16xbf16>
    %c7 = arith.constant 7 : index
    %c0_52 = arith.constant 0 : index
    %c0_53 = arith.constant 0 : index
    %43 = vector.load %arg2[%c7, %c0_52, %c0_53] : memref<9x16x32xbf16, #tpu.memory_space<vmem>>, vector<1x16x32xbf16>
    %44 = vector.shape_cast %43 : vector<1x16x32xbf16> to vector<16x32xbf16>
    %cst_54 = arith.constant dense<0.000000e+00> : vector<6x32xf32>
    %45 = tpu.matmul %42, %44, %cst_54 {dimension_numbers = #tpu.dot_dimension_numbers<[1], [0], [0], [1], [0, 0, 1, 1], [], []>} : vector<6x16xbf16>, vector<16x32xbf16>, vector<6x32xf32> -> vector<6x32xf32>
    %46 = arith.addf %40, %45 : vector<6x32xf32>
    %c0_55 = arith.constant 0 : index
    %c0_56 = arith.constant 0 : index
    %c4_57 = arith.constant 4 : index
    %c0_58 = arith.constant 0 : index
    %47 = vector.load %arg1[%c0_55, %c0_56, %c4_57, %c0_58] : memref<1x4x12x16xbf16, #tpu.memory_space<vmem>>, vector<1x1x6x16xbf16>
    %48 = vector.shape_cast %47 : vector<1x1x6x16xbf16> to vector<6x16xbf16>
    %c8 = arith.constant 8 : index
    %c0_59 = arith.constant 0 : index
    %c0_60 = arith.constant 0 : index
    %49 = vector.load %arg2[%c8, %c0_59, %c0_60] : memref<9x16x32xbf16, #tpu.memory_space<vmem>>, vector<1x16x32xbf16>
    %50 = vector.shape_cast %49 : vector<1x16x32xbf16> to vector<16x32xbf16>
    %cst_61 = arith.constant dense<0.000000e+00> : vector<6x32xf32>
    %51 = tpu.matmul %48, %50, %cst_61 {dimension_numbers = #tpu.dot_dimension_numbers<[1], [0], [0], [1], [0, 0, 1, 1], [], []>} : vector<6x16xbf16>, vector<16x32xbf16>, vector<6x32xf32> -> vector<6x32xf32>
    %52 = arith.addf %46, %51 : vector<6x32xf32>
    %c0_62 = arith.constant 0 : index
    %c1_63 = arith.constant 1 : index
    %c0_64 = arith.constant 0 : index
    %c0_65 = arith.constant 0 : index
    %53 = vector.load %arg1[%c0_62, %c1_63, %c0_64, %c0_65] : memref<1x4x12x16xbf16, #tpu.memory_space<vmem>>, vector<1x1x6x16xbf16>
    %54 = vector.shape_cast %53 : vector<1x1x6x16xbf16> to vector<6x16xbf16>
    %c0_66 = arith.constant 0 : index
    %c0_67 = arith.constant 0 : index
    %c0_68 = arith.constant 0 : index
    %55 = vector.load %arg2[%c0_66, %c0_67, %c0_68] : memref<9x16x32xbf16, #tpu.memory_space<vmem>>, vector<1x16x32xbf16>
    %56 = vector.shape_cast %55 : vector<1x16x32xbf16> to vector<16x32xbf16>
    %cst_69 = arith.constant dense<0.000000e+00> : vector<6x32xf32>
    %57 = tpu.matmul %54, %56, %cst_69 {dimension_numbers = #tpu.dot_dimension_numbers<[1], [0], [0], [1], [0, 0, 1, 1], [], []>} : vector<6x16xbf16>, vector<16x32xbf16>, vector<6x32xf32> -> vector<6x32xf32>
    %c0_70 = arith.constant 0 : index
    %c0_71 = arith.constant 0 : index
    %c1_72 = arith.constant 1 : index
    %c0_73 = arith.constant 0 : index
    %58 = vector.load %arg1[%c0_70, %c0_71, %c1_72, %c0_73] : memref<1x4x12x16xbf16, #tpu.memory_space<vmem>>, vector<1x1x6x16xbf16>
    %59 = vector.shape_cast %58 : vector<1x1x6x16xbf16> to vector<6x16xbf16>
    %c1_74 = arith.constant 1 : index
    %c0_75 = arith.constant 0 : index
    %c0_76 = arith.constant 0 : index
    %60 = vector.load %arg2[%c1_74, %c0_75, %c0_76] : memref<9x16x32xbf16, #tpu.memory_space<vmem>>, vector<1x16x32xbf16>
    %61 = vector.shape_cast %60 : vector<1x16x32xbf16> to vector<16x32xbf16>
    %cst_77 = arith.constant dense<0.000000e+00> : vector<6x32xf32>
    %62 = tpu.matmul %59, %61, %cst_77 {dimension_numbers = #tpu.dot_dimension_numbers<[1], [0], [0], [1], [0, 0, 1, 1], [], []>} : vector<6x16xbf16>, vector<16x32xbf16>, vector<6x32xf32> -> vector<6x32xf32>
    %63 = arith.addf %57, %62 : vector<6x32xf32>
    %c0_78 = arith.constant 0 : index
    %c1_79 = arith.constant 1 : index
    %c1_80 = arith.constant 1 : index
    %c0_81 = arith.constant 0 : index
    %64 = vector.load %arg1[%c0_78, %c1_79, %c1_80, %c0_81] : memref<1x4x12x16xbf16, #tpu.memory_space<vmem>>, vector<1x1x6x16xbf16>
    %65 = vector.shape_cast %64 : vector<1x1x6x16xbf16> to vector<6x16xbf16>
    %c2_82 = arith.constant 2 : index
    %c0_83 = arith.constant 0 : index
    %c0_84 = arith.constant 0 : index
    %66 = vector.load %arg2[%c2_82, %c0_83, %c0_84] : memref<9x16x32xbf16, #tpu.memory_space<vmem>>, vector<1x16x32xbf16>
    %67 = vector.shape_cast %66 : vector<1x16x32xbf16> to vector<16x32xbf16>
    %cst_85 = arith.constant dense<0.000000e+00> : vector<6x32xf32>
    %68 = tpu.matmul %65, %67, %cst_85 {dimension_numbers = #tpu.dot_dimension_numbers<[1], [0], [0], [1], [0, 0, 1, 1], [], []>} : vector<6x16xbf16>, vector<16x32xbf16>, vector<6x32xf32> -> vector<6x32xf32>
    %69 = arith.addf %63, %68 : vector<6x32xf32>
    %c0_86 = arith.constant 0 : index
    %c3_87 = arith.constant 3 : index
    %c0_88 = arith.constant 0 : index
    %c0_89 = arith.constant 0 : index
    %70 = vector.load %arg1[%c0_86, %c3_87, %c0_88, %c0_89] : memref<1x4x12x16xbf16, #tpu.memory_space<vmem>>, vector<1x1x6x16xbf16>
    %71 = vector.shape_cast %70 : vector<1x1x6x16xbf16> to vector<6x16xbf16>
    %c3_90 = arith.constant 3 : index
    %c0_91 = arith.constant 0 : index
    %c0_92 = arith.constant 0 : index
    %72 = vector.load %arg2[%c3_90, %c0_91, %c0_92] : memref<9x16x32xbf16, #tpu.memory_space<vmem>>, vector<1x16x32xbf16>
    %73 = vector.shape_cast %72 : vector<1x16x32xbf16> to vector<16x32xbf16>
    %cst_93 = arith.constant dense<0.000000e+00> : vector<6x32xf32>
    %74 = tpu.matmul %71, %73, %cst_93 {dimension_numbers = #tpu.dot_dimension_numbers<[1], [0], [0], [1], [0, 0, 1, 1], [], []>} : vector<6x16xbf16>, vector<16x32xbf16>, vector<6x32xf32> -> vector<6x32xf32>
    %75 = arith.addf %69, %74 : vector<6x32xf32>
    %c0_94 = arith.constant 0 : index
    %c2_95 = arith.constant 2 : index
    %c1_96 = arith.constant 1 : index
    %c0_97 = arith.constant 0 : index
    %76 = vector.load %arg1[%c0_94, %c2_95, %c1_96, %c0_97] : memref<1x4x12x16xbf16, #tpu.memory_space<vmem>>, vector<1x1x6x16xbf16>
    %77 = vector.shape_cast %76 : vector<1x1x6x16xbf16> to vector<6x16xbf16>
    %c4_98 = arith.constant 4 : index
    %c0_99 = arith.constant 0 : index
    %c0_100 = arith.constant 0 : index
    %78 = vector.load %arg2[%c4_98, %c0_99, %c0_100] : memref<9x16x32xbf16, #tpu.memory_space<vmem>>, vector<1x16x32xbf16>
    %79 = vector.shape_cast %78 : vector<1x16x32xbf16> to vector<16x32xbf16>
    %cst_101 = arith.constant dense<0.000000e+00> : vector<6x32xf32>
    %80 = tpu.matmul %77, %79, %cst_101 {dimension_numbers = #tpu.dot_dimension_numbers<[1], [0], [0], [1], [0, 0, 1, 1], [], []>} : vector<6x16xbf16>, vector<16x32xbf16>, vector<6x32xf32> -> vector<6x32xf32>
    %81 = arith.addf %75, %80 : vector<6x32xf32>
    %c0_102 = arith.constant 0 : index
    %c3_103 = arith.constant 3 : index
    %c1_104 = arith.constant 1 : index
    %c0_105 = arith.constant 0 : index
    %82 = vector.load %arg1[%c0_102, %c3_103, %c1_104, %c0_105] : memref<1x4x12x16xbf16, #tpu.memory_space<vmem>>, vector<1x1x6x16xbf16>
    %83 = vector.shape_cast %82 : vector<1x1x6x16xbf16> to vector<6x16xbf16>
    %c5_106 = arith.constant 5 : index
    %c0_107 = arith.constant 0 : index
    %c0_108 = arith.constant 0 : index
    %84 = vector.load %arg2[%c5_106, %c0_107, %c0_108] : memref<9x16x32xbf16, #tpu.memory_space<vmem>>, vector<1x16x32xbf16>
    %85 = vector.shape_cast %84 : vector<1x16x32xbf16> to vector<16x32xbf16>
    %cst_109 = arith.constant dense<0.000000e+00> : vector<6x32xf32>
    %86 = tpu.matmul %83, %85, %cst_109 {dimension_numbers = #tpu.dot_dimension_numbers<[1], [0], [0], [1], [0, 0, 1, 1], [], []>} : vector<6x16xbf16>, vector<16x32xbf16>, vector<6x32xf32> -> vector<6x32xf32>
    %87 = arith.addf %81, %86 : vector<6x32xf32>
    %c0_110 = arith.constant 0 : index
    %c1_111 = arith.constant 1 : index
    %c3_112 = arith.constant 3 : index
    %c0_113 = arith.constant 0 : index
    %88 = vector.load %arg1[%c0_110, %c1_111, %c3_112, %c0_113] : memref<1x4x12x16xbf16, #tpu.memory_space<vmem>>, vector<1x1x6x16xbf16>
    %89 = vector.shape_cast %88 : vector<1x1x6x16xbf16> to vector<6x16xbf16>
    %c6_114 = arith.constant 6 : index
    %c0_115 = arith.constant 0 : index
    %c0_116 = arith.constant 0 : index
    %90 = vector.load %arg2[%c6_114, %c0_115, %c0_116] : memref<9x16x32xbf16, #tpu.memory_space<vmem>>, vector<1x16x32xbf16>
    %91 = vector.shape_cast %90 : vector<1x16x32xbf16> to vector<16x32xbf16>
    %cst_117 = arith.constant dense<0.000000e+00> : vector<6x32xf32>
    %92 = tpu.matmul %89, %91, %cst_117 {dimension_numbers = #tpu.dot_dimension_numbers<[1], [0], [0], [1], [0, 0, 1, 1], [], []>} : vector<6x16xbf16>, vector<16x32xbf16>, vector<6x32xf32> -> vector<6x32xf32>
    %93 = arith.addf %87, %92 : vector<6x32xf32>
    %c0_118 = arith.constant 0 : index
    %c0_119 = arith.constant 0 : index
    %c4_120 = arith.constant 4 : index
    %c0_121 = arith.constant 0 : index
    %94 = vector.load %arg1[%c0_118, %c0_119, %c4_120, %c0_121] : memref<1x4x12x16xbf16, #tpu.memory_space<vmem>>, vector<1x1x6x16xbf16>
    %95 = vector.shape_cast %94 : vector<1x1x6x16xbf16> to vector<6x16xbf16>
    %c7_122 = arith.constant 7 : index
    %c0_123 = arith.constant 0 : index
    %c0_124 = arith.constant 0 : index
    %96 = vector.load %arg2[%c7_122, %c0_123, %c0_124] : memref<9x16x32xbf16, #tpu.memory_space<vmem>>, vector<1x16x32xbf16>
    %97 = vector.shape_cast %96 : vector<1x16x32xbf16> to vector<16x32xbf16>
    %cst_125 = arith.constant dense<0.000000e+00> : vector<6x32xf32>
    %98 = tpu.matmul %95, %97, %cst_125 {dimension_numbers = #tpu.dot_dimension_numbers<[1], [0], [0], [1], [0, 0, 1, 1], [], []>} : vector<6x16xbf16>, vector<16x32xbf16>, vector<6x32xf32> -> vector<6x32xf32>
    %99 = arith.addf %93, %98 : vector<6x32xf32>
    %c0_126 = arith.constant 0 : index
    %c1_127 = arith.constant 1 : index
    %c4_128 = arith.constant 4 : index
    %c0_129 = arith.constant 0 : index
    %100 = vector.load %arg1[%c0_126, %c1_127, %c4_128, %c0_129] : memref<1x4x12x16xbf16, #tpu.memory_space<vmem>>, vector<1x1x6x16xbf16>
    %101 = vector.shape_cast %100 : vector<1x1x6x16xbf16> to vector<6x16xbf16>
    %c8_130 = arith.constant 8 : index
    %c0_131 = arith.constant 0 : index
    %c0_132 = arith.constant 0 : index
    %102 = vector.load %arg2[%c8_130, %c0_131, %c0_132] : memref<9x16x32xbf16, #tpu.memory_space<vmem>>, vector<1x16x32xbf16>
    %103 = vector.shape_cast %102 : vector<1x16x32xbf16> to vector<16x32xbf16>
    %cst_133 = arith.constant dense<0.000000e+00> : vector<6x32xf32>
    %104 = tpu.matmul %101, %103, %cst_133 {dimension_numbers = #tpu.dot_dimension_numbers<[1], [0], [0], [1], [0, 0, 1, 1], [], []>} : vector<6x16xbf16>, vector<16x32xbf16>, vector<6x32xf32> -> vector<6x32xf32>
    %105 = arith.addf %99, %104 : vector<6x32xf32>
    %106 = arith.maximumf %52, %105 : vector<6x32xf32>
    %c0_134 = arith.constant 0 : index
    %c2_135 = arith.constant 2 : index
    %c0_136 = arith.constant 0 : index
    %c0_137 = arith.constant 0 : index
    %107 = vector.load %arg1[%c0_134, %c2_135, %c0_136, %c0_137] : memref<1x4x12x16xbf16, #tpu.memory_space<vmem>>, vector<1x1x6x16xbf16>
    %108 = vector.shape_cast %107 : vector<1x1x6x16xbf16> to vector<6x16xbf16>
    %c0_138 = arith.constant 0 : index
    %c0_139 = arith.constant 0 : index
    %c0_140 = arith.constant 0 : index
    %109 = vector.load %arg2[%c0_138, %c0_139, %c0_140] : memref<9x16x32xbf16, #tpu.memory_space<vmem>>, vector<1x16x32xbf16>
    %110 = vector.shape_cast %109 : vector<1x16x32xbf16> to vector<16x32xbf16>
    %cst_141 = arith.constant dense<0.000000e+00> : vector<6x32xf32>
    %111 = tpu.matmul %108, %110, %cst_141 {dimension_numbers = #tpu.dot_dimension_numbers<[1], [0], [0], [1], [0, 0, 1, 1], [], []>} : vector<6x16xbf16>, vector<16x32xbf16>, vector<6x32xf32> -> vector<6x32xf32>
    %c0_142 = arith.constant 0 : index
    %c3_143 = arith.constant 3 : index
    %c0_144 = arith.constant 0 : index
    %c0_145 = arith.constant 0 : index
    %112 = vector.load %arg1[%c0_142, %c3_143, %c0_144, %c0_145] : memref<1x4x12x16xbf16, #tpu.memory_space<vmem>>, vector<1x1x6x16xbf16>
    %113 = vector.shape_cast %112 : vector<1x1x6x16xbf16> to vector<6x16xbf16>
    %c1_146 = arith.constant 1 : index
    %c0_147 = arith.constant 0 : index
    %c0_148 = arith.constant 0 : index
    %114 = vector.load %arg2[%c1_146, %c0_147, %c0_148] : memref<9x16x32xbf16, #tpu.memory_space<vmem>>, vector<1x16x32xbf16>
    %115 = vector.shape_cast %114 : vector<1x16x32xbf16> to vector<16x32xbf16>
    %cst_149 = arith.constant dense<0.000000e+00> : vector<6x32xf32>
    %116 = tpu.matmul %113, %115, %cst_149 {dimension_numbers = #tpu.dot_dimension_numbers<[1], [0], [0], [1], [0, 0, 1, 1], [], []>} : vector<6x16xbf16>, vector<16x32xbf16>, vector<6x32xf32> -> vector<6x32xf32>
    %117 = arith.addf %111, %116 : vector<6x32xf32>
    %c0_150 = arith.constant 0 : index
    %c2_151 = arith.constant 2 : index
    %c1_152 = arith.constant 1 : index
    %c0_153 = arith.constant 0 : index
    %118 = vector.load %arg1[%c0_150, %c2_151, %c1_152, %c0_153] : memref<1x4x12x16xbf16, #tpu.memory_space<vmem>>, vector<1x1x6x16xbf16>
    %119 = vector.shape_cast %118 : vector<1x1x6x16xbf16> to vector<6x16xbf16>
    %c2_154 = arith.constant 2 : index
    %c0_155 = arith.constant 0 : index
    %c0_156 = arith.constant 0 : index
    %120 = vector.load %arg2[%c2_154, %c0_155, %c0_156] : memref<9x16x32xbf16, #tpu.memory_space<vmem>>, vector<1x16x32xbf16>
    %121 = vector.shape_cast %120 : vector<1x16x32xbf16> to vector<16x32xbf16>
    %cst_157 = arith.constant dense<0.000000e+00> : vector<6x32xf32>
    %122 = tpu.matmul %119, %121, %cst_157 {dimension_numbers = #tpu.dot_dimension_numbers<[1], [0], [0], [1], [0, 0, 1, 1], [], []>} : vector<6x16xbf16>, vector<16x32xbf16>, vector<6x32xf32> -> vector<6x32xf32>
    %123 = arith.addf %117, %122 : vector<6x32xf32>
    %c0_158 = arith.constant 0 : index
    %c0_159 = arith.constant 0 : index
    %c3_160 = arith.constant 3 : index
    %c0_161 = arith.constant 0 : index
    %124 = vector.load %arg1[%c0_158, %c0_159, %c3_160, %c0_161] : memref<1x4x12x16xbf16, #tpu.memory_space<vmem>>, vector<1x1x6x16xbf16>
    %125 = vector.shape_cast %124 : vector<1x1x6x16xbf16> to vector<6x16xbf16>
    %c3_162 = arith.constant 3 : index
    %c0_163 = arith.constant 0 : index
    %c0_164 = arith.constant 0 : index
    %126 = vector.load %arg2[%c3_162, %c0_163, %c0_164] : memref<9x16x32xbf16, #tpu.memory_space<vmem>>, vector<1x16x32xbf16>
    %127 = vector.shape_cast %126 : vector<1x16x32xbf16> to vector<16x32xbf16>
    %cst_165 = arith.constant dense<0.000000e+00> : vector<6x32xf32>
    %128 = tpu.matmul %125, %127, %cst_165 {dimension_numbers = #tpu.dot_dimension_numbers<[1], [0], [0], [1], [0, 0, 1, 1], [], []>} : vector<6x16xbf16>, vector<16x32xbf16>, vector<6x32xf32> -> vector<6x32xf32>
    %129 = arith.addf %123, %128 : vector<6x32xf32>
    %c0_166 = arith.constant 0 : index
    %c1_167 = arith.constant 1 : index
    %c3_168 = arith.constant 3 : index
    %c0_169 = arith.constant 0 : index
    %130 = vector.load %arg1[%c0_166, %c1_167, %c3_168, %c0_169] : memref<1x4x12x16xbf16, #tpu.memory_space<vmem>>, vector<1x1x6x16xbf16>
    %131 = vector.shape_cast %130 : vector<1x1x6x16xbf16> to vector<6x16xbf16>
    %c4_170 = arith.constant 4 : index
    %c0_171 = arith.constant 0 : index
    %c0_172 = arith.constant 0 : index
    %132 = vector.load %arg2[%c4_170, %c0_171, %c0_172] : memref<9x16x32xbf16, #tpu.memory_space<vmem>>, vector<1x16x32xbf16>
    %133 = vector.shape_cast %132 : vector<1x16x32xbf16> to vector<16x32xbf16>
    %cst_173 = arith.constant dense<0.000000e+00> : vector<6x32xf32>
    %134 = tpu.matmul %131, %133, %cst_173 {dimension_numbers = #tpu.dot_dimension_numbers<[1], [0], [0], [1], [0, 0, 1, 1], [], []>} : vector<6x16xbf16>, vector<16x32xbf16>, vector<6x32xf32> -> vector<6x32xf32>
    %135 = arith.addf %129, %134 : vector<6x32xf32>
    %c0_174 = arith.constant 0 : index
    %c0_175 = arith.constant 0 : index
    %c4_176 = arith.constant 4 : index
    %c0_177 = arith.constant 0 : index
    %136 = vector.load %arg1[%c0_174, %c0_175, %c4_176, %c0_177] : memref<1x4x12x16xbf16, #tpu.memory_space<vmem>>, vector<1x1x6x16xbf16>
    %137 = vector.shape_cast %136 : vector<1x1x6x16xbf16> to vector<6x16xbf16>
    %c5_178 = arith.constant 5 : index
    %c0_179 = arith.constant 0 : index
    %c0_180 = arith.constant 0 : index
    %138 = vector.load %arg2[%c5_178, %c0_179, %c0_180] : memref<9x16x32xbf16, #tpu.memory_space<vmem>>, vector<1x16x32xbf16>
    %139 = vector.shape_cast %138 : vector<1x16x32xbf16> to vector<16x32xbf16>
    %cst_181 = arith.constant dense<0.000000e+00> : vector<6x32xf32>
    %140 = tpu.matmul %137, %139, %cst_181 {dimension_numbers = #tpu.dot_dimension_numbers<[1], [0], [0], [1], [0, 0, 1, 1], [], []>} : vector<6x16xbf16>, vector<16x32xbf16>, vector<6x32xf32> -> vector<6x32xf32>
    %141 = arith.addf %135, %140 : vector<6x32xf32>
    %c0_182 = arith.constant 0 : index
    %c2_183 = arith.constant 2 : index
    %c3_184 = arith.constant 3 : index
    %c0_185 = arith.constant 0 : index
    %142 = vector.load %arg1[%c0_182, %c2_183, %c3_184, %c0_185] : memref<1x4x12x16xbf16, #tpu.memory_space<vmem>>, vector<1x1x6x16xbf16>
    %143 = vector.shape_cast %142 : vector<1x1x6x16xbf16> to vector<6x16xbf16>
    %c6_186 = arith.constant 6 : index
    %c0_187 = arith.constant 0 : index
    %c0_188 = arith.constant 0 : index
    %144 = vector.load %arg2[%c6_186, %c0_187, %c0_188] : memref<9x16x32xbf16, #tpu.memory_space<vmem>>, vector<1x16x32xbf16>
    %145 = vector.shape_cast %144 : vector<1x16x32xbf16> to vector<16x32xbf16>
    %cst_189 = arith.constant dense<0.000000e+00> : vector<6x32xf32>
    %146 = tpu.matmul %143, %145, %cst_189 {dimension_numbers = #tpu.dot_dimension_numbers<[1], [0], [0], [1], [0, 0, 1, 1], [], []>} : vector<6x16xbf16>, vector<16x32xbf16>, vector<6x32xf32> -> vector<6x32xf32>
    %147 = arith.addf %141, %146 : vector<6x32xf32>
    %c0_190 = arith.constant 0 : index
    %c3_191 = arith.constant 3 : index
    %c3_192 = arith.constant 3 : index
    %c0_193 = arith.constant 0 : index
    %148 = vector.load %arg1[%c0_190, %c3_191, %c3_192, %c0_193] : memref<1x4x12x16xbf16, #tpu.memory_space<vmem>>, vector<1x1x6x16xbf16>
    %149 = vector.shape_cast %148 : vector<1x1x6x16xbf16> to vector<6x16xbf16>
    %c7_194 = arith.constant 7 : index
    %c0_195 = arith.constant 0 : index
    %c0_196 = arith.constant 0 : index
    %150 = vector.load %arg2[%c7_194, %c0_195, %c0_196] : memref<9x16x32xbf16, #tpu.memory_space<vmem>>, vector<1x16x32xbf16>
    %151 = vector.shape_cast %150 : vector<1x16x32xbf16> to vector<16x32xbf16>
    %cst_197 = arith.constant dense<0.000000e+00> : vector<6x32xf32>
    %152 = tpu.matmul %149, %151, %cst_197 {dimension_numbers = #tpu.dot_dimension_numbers<[1], [0], [0], [1], [0, 0, 1, 1], [], []>} : vector<6x16xbf16>, vector<16x32xbf16>, vector<6x32xf32> -> vector<6x32xf32>
    %153 = arith.addf %147, %152 : vector<6x32xf32>
    %c0_198 = arith.constant 0 : index
    %c2_199 = arith.constant 2 : index
    %c4_200 = arith.constant 4 : index
    %c0_201 = arith.constant 0 : index
    %154 = vector.load %arg1[%c0_198, %c2_199, %c4_200, %c0_201] : memref<1x4x12x16xbf16, #tpu.memory_space<vmem>>, vector<1x1x6x16xbf16>
    %155 = vector.shape_cast %154 : vector<1x1x6x16xbf16> to vector<6x16xbf16>
    %c8_202 = arith.constant 8 : index
    %c0_203 = arith.constant 0 : index
    %c0_204 = arith.constant 0 : index
    %156 = vector.load %arg2[%c8_202, %c0_203, %c0_204] : memref<9x16x32xbf16, #tpu.memory_space<vmem>>, vector<1x16x32xbf16>
    %157 = vector.shape_cast %156 : vector<1x16x32xbf16> to vector<16x32xbf16>
    %cst_205 = arith.constant dense<0.000000e+00> : vector<6x32xf32>
    %158 = tpu.matmul %155, %157, %cst_205 {dimension_numbers = #tpu.dot_dimension_numbers<[1], [0], [0], [1], [0, 0, 1, 1], [], []>} : vector<6x16xbf16>, vector<16x32xbf16>, vector<6x32xf32> -> vector<6x32xf32>
    %159 = arith.addf %153, %158 : vector<6x32xf32>
    %160 = arith.maximumf %106, %159 : vector<6x32xf32>
    %c0_206 = arith.constant 0 : index
    %c3_207 = arith.constant 3 : index
    %c0_208 = arith.constant 0 : index
    %c0_209 = arith.constant 0 : index
    %161 = vector.load %arg1[%c0_206, %c3_207, %c0_208, %c0_209] : memref<1x4x12x16xbf16, #tpu.memory_space<vmem>>, vector<1x1x6x16xbf16>
    %162 = vector.shape_cast %161 : vector<1x1x6x16xbf16> to vector<6x16xbf16>
    %c0_210 = arith.constant 0 : index
    %c0_211 = arith.constant 0 : index
    %c0_212 = arith.constant 0 : index
    %163 = vector.load %arg2[%c0_210, %c0_211, %c0_212] : memref<9x16x32xbf16, #tpu.memory_space<vmem>>, vector<1x16x32xbf16>
    %164 = vector.shape_cast %163 : vector<1x16x32xbf16> to vector<16x32xbf16>
    %cst_213 = arith.constant dense<0.000000e+00> : vector<6x32xf32>
    %165 = tpu.matmul %162, %164, %cst_213 {dimension_numbers = #tpu.dot_dimension_numbers<[1], [0], [0], [1], [0, 0, 1, 1], [], []>} : vector<6x16xbf16>, vector<16x32xbf16>, vector<6x32xf32> -> vector<6x32xf32>
    %c0_214 = arith.constant 0 : index
    %c2_215 = arith.constant 2 : index
    %c1_216 = arith.constant 1 : index
    %c0_217 = arith.constant 0 : index
    %166 = vector.load %arg1[%c0_214, %c2_215, %c1_216, %c0_217] : memref<1x4x12x16xbf16, #tpu.memory_space<vmem>>, vector<1x1x6x16xbf16>
    %167 = vector.shape_cast %166 : vector<1x1x6x16xbf16> to vector<6x16xbf16>
    %c1_218 = arith.constant 1 : index
    %c0_219 = arith.constant 0 : index
    %c0_220 = arith.constant 0 : index
    %168 = vector.load %arg2[%c1_218, %c0_219, %c0_220] : memref<9x16x32xbf16, #tpu.memory_space<vmem>>, vector<1x16x32xbf16>
    %169 = vector.shape_cast %168 : vector<1x16x32xbf16> to vector<16x32xbf16>
    %cst_221 = arith.constant dense<0.000000e+00> : vector<6x32xf32>
    %170 = tpu.matmul %167, %169, %cst_221 {dimension_numbers = #tpu.dot_dimension_numbers<[1], [0], [0], [1], [0, 0, 1, 1], [], []>} : vector<6x16xbf16>, vector<16x32xbf16>, vector<6x32xf32> -> vector<6x32xf32>
    %171 = arith.addf %165, %170 : vector<6x32xf32>
    %c0_222 = arith.constant 0 : index
    %c3_223 = arith.constant 3 : index
    %c1_224 = arith.constant 1 : index
    %c0_225 = arith.constant 0 : index
    %172 = vector.load %arg1[%c0_222, %c3_223, %c1_224, %c0_225] : memref<1x4x12x16xbf16, #tpu.memory_space<vmem>>, vector<1x1x6x16xbf16>
    %173 = vector.shape_cast %172 : vector<1x1x6x16xbf16> to vector<6x16xbf16>
    %c2_226 = arith.constant 2 : index
    %c0_227 = arith.constant 0 : index
    %c0_228 = arith.constant 0 : index
    %174 = vector.load %arg2[%c2_226, %c0_227, %c0_228] : memref<9x16x32xbf16, #tpu.memory_space<vmem>>, vector<1x16x32xbf16>
    %175 = vector.shape_cast %174 : vector<1x16x32xbf16> to vector<16x32xbf16>
    %cst_229 = arith.constant dense<0.000000e+00> : vector<6x32xf32>
    %176 = tpu.matmul %173, %175, %cst_229 {dimension_numbers = #tpu.dot_dimension_numbers<[1], [0], [0], [1], [0, 0, 1, 1], [], []>} : vector<6x16xbf16>, vector<16x32xbf16>, vector<6x32xf32> -> vector<6x32xf32>
    %177 = arith.addf %171, %176 : vector<6x32xf32>
    %c0_230 = arith.constant 0 : index
    %c1_231 = arith.constant 1 : index
    %c3_232 = arith.constant 3 : index
    %c0_233 = arith.constant 0 : index
    %178 = vector.load %arg1[%c0_230, %c1_231, %c3_232, %c0_233] : memref<1x4x12x16xbf16, #tpu.memory_space<vmem>>, vector<1x1x6x16xbf16>
    %179 = vector.shape_cast %178 : vector<1x1x6x16xbf16> to vector<6x16xbf16>
    %c3_234 = arith.constant 3 : index
    %c0_235 = arith.constant 0 : index
    %c0_236 = arith.constant 0 : index
    %180 = vector.load %arg2[%c3_234, %c0_235, %c0_236] : memref<9x16x32xbf16, #tpu.memory_space<vmem>>, vector<1x16x32xbf16>
    %181 = vector.shape_cast %180 : vector<1x16x32xbf16> to vector<16x32xbf16>
    %cst_237 = arith.constant dense<0.000000e+00> : vector<6x32xf32>
    %182 = tpu.matmul %179, %181, %cst_237 {dimension_numbers = #tpu.dot_dimension_numbers<[1], [0], [0], [1], [0, 0, 1, 1], [], []>} : vector<6x16xbf16>, vector<16x32xbf16>, vector<6x32xf32> -> vector<6x32xf32>
    %183 = arith.addf %177, %182 : vector<6x32xf32>
    %c0_238 = arith.constant 0 : index
    %c0_239 = arith.constant 0 : index
    %c4_240 = arith.constant 4 : index
    %c0_241 = arith.constant 0 : index
    %184 = vector.load %arg1[%c0_238, %c0_239, %c4_240, %c0_241] : memref<1x4x12x16xbf16, #tpu.memory_space<vmem>>, vector<1x1x6x16xbf16>
    %185 = vector.shape_cast %184 : vector<1x1x6x16xbf16> to vector<6x16xbf16>
    %c4_242 = arith.constant 4 : index
    %c0_243 = arith.constant 0 : index
    %c0_244 = arith.constant 0 : index
    %186 = vector.load %arg2[%c4_242, %c0_243, %c0_244] : memref<9x16x32xbf16, #tpu.memory_space<vmem>>, vector<1x16x32xbf16>
    %187 = vector.shape_cast %186 : vector<1x16x32xbf16> to vector<16x32xbf16>
    %cst_245 = arith.constant dense<0.000000e+00> : vector<6x32xf32>
    %188 = tpu.matmul %185, %187, %cst_245 {dimension_numbers = #tpu.dot_dimension_numbers<[1], [0], [0], [1], [0, 0, 1, 1], [], []>} : vector<6x16xbf16>, vector<16x32xbf16>, vector<6x32xf32> -> vector<6x32xf32>
    %189 = arith.addf %183, %188 : vector<6x32xf32>
    %c0_246 = arith.constant 0 : index
    %c1_247 = arith.constant 1 : index
    %c4_248 = arith.constant 4 : index
    %c0_249 = arith.constant 0 : index
    %190 = vector.load %arg1[%c0_246, %c1_247, %c4_248, %c0_249] : memref<1x4x12x16xbf16, #tpu.memory_space<vmem>>, vector<1x1x6x16xbf16>
    %191 = vector.shape_cast %190 : vector<1x1x6x16xbf16> to vector<6x16xbf16>
    %c5_250 = arith.constant 5 : index
    %c0_251 = arith.constant 0 : index
    %c0_252 = arith.constant 0 : index
    %192 = vector.load %arg2[%c5_250, %c0_251, %c0_252] : memref<9x16x32xbf16, #tpu.memory_space<vmem>>, vector<1x16x32xbf16>
    %193 = vector.shape_cast %192 : vector<1x16x32xbf16> to vector<16x32xbf16>
    %cst_253 = arith.constant dense<0.000000e+00> : vector<6x32xf32>
    %194 = tpu.matmul %191, %193, %cst_253 {dimension_numbers = #tpu.dot_dimension_numbers<[1], [0], [0], [1], [0, 0, 1, 1], [], []>} : vector<6x16xbf16>, vector<16x32xbf16>, vector<6x32xf32> -> vector<6x32xf32>
    %195 = arith.addf %189, %194 : vector<6x32xf32>
    %c0_254 = arith.constant 0 : index
    %c3_255 = arith.constant 3 : index
    %c3_256 = arith.constant 3 : index
    %c0_257 = arith.constant 0 : index
    %196 = vector.load %arg1[%c0_254, %c3_255, %c3_256, %c0_257] : memref<1x4x12x16xbf16, #tpu.memory_space<vmem>>, vector<1x1x6x16xbf16>
    %197 = vector.shape_cast %196 : vector<1x1x6x16xbf16> to vector<6x16xbf16>
    %c6_258 = arith.constant 6 : index
    %c0_259 = arith.constant 0 : index
    %c0_260 = arith.constant 0 : index
    %198 = vector.load %arg2[%c6_258, %c0_259, %c0_260] : memref<9x16x32xbf16, #tpu.memory_space<vmem>>, vector<1x16x32xbf16>
    %199 = vector.shape_cast %198 : vector<1x16x32xbf16> to vector<16x32xbf16>
    %cst_261 = arith.constant dense<0.000000e+00> : vector<6x32xf32>
    %200 = tpu.matmul %197, %199, %cst_261 {dimension_numbers = #tpu.dot_dimension_numbers<[1], [0], [0], [1], [0, 0, 1, 1], [], []>} : vector<6x16xbf16>, vector<16x32xbf16>, vector<6x32xf32> -> vector<6x32xf32>
    %201 = arith.addf %195, %200 : vector<6x32xf32>
    %c0_262 = arith.constant 0 : index
    %c2_263 = arith.constant 2 : index
    %c4_264 = arith.constant 4 : index
    %c0_265 = arith.constant 0 : index
    %202 = vector.load %arg1[%c0_262, %c2_263, %c4_264, %c0_265] : memref<1x4x12x16xbf16, #tpu.memory_space<vmem>>, vector<1x1x6x16xbf16>
    %203 = vector.shape_cast %202 : vector<1x1x6x16xbf16> to vector<6x16xbf16>
    %c7_266 = arith.constant 7 : index
    %c0_267 = arith.constant 0 : index
    %c0_268 = arith.constant 0 : index
    %204 = vector.load %arg2[%c7_266, %c0_267, %c0_268] : memref<9x16x32xbf16, #tpu.memory_space<vmem>>, vector<1x16x32xbf16>
    %205 = vector.shape_cast %204 : vector<1x16x32xbf16> to vector<16x32xbf16>
    %cst_269 = arith.constant dense<0.000000e+00> : vector<6x32xf32>
    %206 = tpu.matmul %203, %205, %cst_269 {dimension_numbers = #tpu.dot_dimension_numbers<[1], [0], [0], [1], [0, 0, 1, 1], [], []>} : vector<6x16xbf16>, vector<16x32xbf16>, vector<6x32xf32> -> vector<6x32xf32>
    %207 = arith.addf %201, %206 : vector<6x32xf32>
    %c0_270 = arith.constant 0 : index
    %c3_271 = arith.constant 3 : index
    %c4_272 = arith.constant 4 : index
    %c0_273 = arith.constant 0 : index
    %208 = vector.load %arg1[%c0_270, %c3_271, %c4_272, %c0_273] : memref<1x4x12x16xbf16, #tpu.memory_space<vmem>>, vector<1x1x6x16xbf16>
    %209 = vector.shape_cast %208 : vector<1x1x6x16xbf16> to vector<6x16xbf16>
    %c8_274 = arith.constant 8 : index
    %c0_275 = arith.constant 0 : index
    %c0_276 = arith.constant 0 : index
    %210 = vector.load %arg2[%c8_274, %c0_275, %c0_276] : memref<9x16x32xbf16, #tpu.memory_space<vmem>>, vector<1x16x32xbf16>
    %211 = vector.shape_cast %210 : vector<1x16x32xbf16> to vector<16x32xbf16>
    %cst_277 = arith.constant dense<0.000000e+00> : vector<6x32xf32>
    %212 = tpu.matmul %209, %211, %cst_277 {dimension_numbers = #tpu.dot_dimension_numbers<[1], [0], [0], [1], [0, 0, 1, 1], [], []>} : vector<6x16xbf16>, vector<16x32xbf16>, vector<6x32xf32> -> vector<6x32xf32>
    %213 = arith.addf %207, %212 : vector<6x32xf32>
    %214 = arith.maximumf %160, %213 : vector<6x32xf32>
    %c0_278 = arith.constant 0 : index
    %c0_279 = arith.constant 0 : index
    %215 = vector.load %arg3[%c0_278, %c0_279] : memref<1x32xf32, #tpu.memory_space<vmem>>, vector<1x32xf32>
    %216 = vector.broadcast %215 : vector<1x32xf32> to vector<6x32xf32>
    %217 = arith.addf %214, %216 : vector<6x32xf32>
    %cst_280 = arith.constant 0.000000e+00 : f32
    %218 = vector.broadcast %cst_280 : f32 to vector<6x32xf32>
    %219 = arith.maximumf %217, %218 : vector<6x32xf32>
    %220 = arith.truncf %219 : vector<6x32xf32> to vector<6x32xbf16>
    %c0_281 = arith.constant 0 : index
    %c0_282 = arith.constant 0 : index
    %c0_283 = arith.constant 0 : index
    %221 = vector.load %arg4[%c0_281, %c0_282, %c0_283] : memref<1x6x32xbf16, #tpu.memory_space<vmem>>, vector<1x6x32xbf16>
    %222 = vector.shape_cast %221 : vector<1x6x32xbf16> to vector<6x32xbf16>
    %223 = vector.shape_cast %220 : vector<6x32xbf16> to vector<1x6x32xbf16>
    tpu.vector_store %arg4[%c0_281, %c0_282, %c0_283], %223 {strides = array<i32>} : memref<1x6x32xbf16, #tpu.memory_space<vmem>>, vector<1x6x32xbf16>,
    return
  }
  func.func @transform_0(%arg0: i32) -> (i32, i32, i32, i32) {
    %c0_i32 = arith.constant 0 : i32
    %c0_i32_0 = arith.constant 0 : i32
    %c0_i32_1 = arith.constant 0 : i32
    %c0_i32_2 = arith.constant 0 : i32
    return %arg0, %c0_i32, %c0_i32_0, %c0_i32_1 : i32, i32, i32, i32
  }
  func.func @transform_1(%arg0: i32) -> (i32, i32, i32) {
    %c0_i32 = arith.constant 0 : i32
    %c0_i32_0 = arith.constant 0 : i32
    %c0_i32_1 = arith.constant 0 : i32
    %c0_i32_2 = arith.constant 0 : i32
    return %c0_i32, %c0_i32_0, %c0_i32_1 : i32, i32, i32
  }
  func.func @transform_2(%arg0: i32) -> (i32, i32) {
    %c0_i32 = arith.constant 0 : i32
    %c0_i32_0 = arith.constant 0 : i32
    %c0_i32_1 = arith.constant 0 : i32
    return %c0_i32, %c0_i32_0 : i32, i32
  }
  func.func @transform_3(%arg0: i32) -> (i32, i32, i32) {
    %c0_i32 = arith.constant 0 : i32
    %c0_i32_0 = arith.constant 0 : i32
    %c0_i32_1 = arith.constant 0 : i32
    return %arg0, %c0_i32, %c0_i32_0 : i32, i32, i32
  }
}

module attributes {stable_mosaic.version = 11 : i64} {
  func.func @_classifier_kernel(%arg0: i32, %arg1: memref<8x128xbf16, #tpu.memory_space<vmem>>, %arg2: memref<128x128xbf16, #tpu.memory_space<vmem>>, %arg3: memref<1x128xf32, #tpu.memory_space<vmem>>, %arg4: memref<128x128xbf16, #tpu.memory_space<vmem>>, %arg5: memref<1x128xf32, #tpu.memory_space<vmem>>, %arg6: memref<128x128xbf16, #tpu.memory_space<vmem>>, %arg7: memref<1x128xf32, #tpu.memory_space<vmem>>, %arg8: memref<128x128xbf16, #tpu.memory_space<vmem>>, %arg9: memref<1x128xf32, #tpu.memory_space<vmem>>, %arg10: memref<8x128xf32, #tpu.memory_space<vmem>>, %arg11: memref<8x128xf32, #tpu.memory_space<vmem>>) attributes {dimension_semantics = [#tpu.dimension_semantics<parallel>], iteration_bounds = array<i64: 1>, scalar_prefetch = 0 : i64, scratch_operands = 0 : i64, tpu.core_type = #tpu.core_type<tc>, window_params = [{transform_indices = @transform_0, window_bounds = array<i64: 8, 128>}, {pipeline_mode = #tpu.pipeline_mode<synchronous>, transform_indices = @transform_1, window_bounds = array<i64: 128, 128>}, {pipeline_mode = #tpu.pipeline_mode<synchronous>, transform_indices = @transform_2, window_bounds = array<i64: 1, 128>}, {pipeline_mode = #tpu.pipeline_mode<synchronous>, transform_indices = @transform_3, window_bounds = array<i64: 128, 128>}, {pipeline_mode = #tpu.pipeline_mode<synchronous>, transform_indices = @transform_4, window_bounds = array<i64: 1, 128>}, {pipeline_mode = #tpu.pipeline_mode<synchronous>, transform_indices = @transform_5, window_bounds = array<i64: 128, 128>}, {pipeline_mode = #tpu.pipeline_mode<synchronous>, transform_indices = @transform_6, window_bounds = array<i64: 1, 128>}, {pipeline_mode = #tpu.pipeline_mode<synchronous>, transform_indices = @transform_7, window_bounds = array<i64: 128, 128>}, {pipeline_mode = #tpu.pipeline_mode<synchronous>, transform_indices = @transform_8, window_bounds = array<i64: 1, 128>}, {transform_indices = @transform_9, window_bounds = array<i64: 8, 128>}, {transform_indices = @transform_10, window_bounds = array<i64: 8, 128>}]} {
    %c0 = arith.constant 0 : index
    %c0_0 = arith.constant 0 : index
    %0 = vector.load %arg1[%c0, %c0_0] : memref<8x128xbf16, #tpu.memory_space<vmem>>, vector<8x128xbf16>
    %c0_1 = arith.constant 0 : index
    %c0_2 = arith.constant 0 : index
    %1 = vector.load %arg2[%c0_1, %c0_2] : memref<128x128xbf16, #tpu.memory_space<vmem>>, vector<128x128xbf16>
    %cst = arith.constant dense<0.000000e+00> : vector<8x128xf32>
    %2 = tpu.matmul %0, %1, %cst {dimension_numbers = #tpu.dot_dimension_numbers<[1], [0], [0], [1], [0, 0, 1, 1], [], []>} : vector<8x128xbf16>, vector<128x128xbf16>, vector<8x128xf32> -> vector<8x128xf32>
    %c0_3 = arith.constant 0 : index
    %c0_4 = arith.constant 0 : index
    %3 = vector.load %arg3[%c0_3, %c0_4] : memref<1x128xf32, #tpu.memory_space<vmem>>, vector<1x128xf32>
    %4 = vector.broadcast %3 : vector<1x128xf32> to vector<8x128xf32>
    %5 = arith.addf %2, %4 : vector<8x128xf32>
    %cst_5 = arith.constant 0.000000e+00 : f32
    %6 = vector.broadcast %cst_5 : f32 to vector<8x128xf32>
    %7 = arith.maximumf %5, %6 : vector<8x128xf32>
    %8 = arith.truncf %7 : vector<8x128xf32> to vector<8x128xbf16>
    %c0_6 = arith.constant 0 : index
    %c0_7 = arith.constant 0 : index
    %9 = vector.load %arg4[%c0_6, %c0_7] : memref<128x128xbf16, #tpu.memory_space<vmem>>, vector<128x128xbf16>
    %cst_8 = arith.constant dense<0.000000e+00> : vector<8x128xf32>
    %10 = tpu.matmul %8, %9, %cst_8 {dimension_numbers = #tpu.dot_dimension_numbers<[1], [0], [0], [1], [0, 0, 1, 1], [], []>} : vector<8x128xbf16>, vector<128x128xbf16>, vector<8x128xf32> -> vector<8x128xf32>
    %c0_9 = arith.constant 0 : index
    %c0_10 = arith.constant 0 : index
    %11 = vector.load %arg5[%c0_9, %c0_10] : memref<1x128xf32, #tpu.memory_space<vmem>>, vector<1x128xf32>
    %12 = vector.broadcast %11 : vector<1x128xf32> to vector<8x128xf32>
    %13 = arith.addf %10, %12 : vector<8x128xf32>
    %cst_11 = arith.constant 0.000000e+00 : f32
    %14 = vector.broadcast %cst_11 : f32 to vector<8x128xf32>
    %15 = arith.maximumf %13, %14 : vector<8x128xf32>
    %16 = arith.truncf %15 : vector<8x128xf32> to vector<8x128xbf16>
    %c0_12 = arith.constant 0 : index
    %c0_13 = arith.constant 0 : index
    %17 = vector.load %arg6[%c0_12, %c0_13] : memref<128x128xbf16, #tpu.memory_space<vmem>>, vector<128x128xbf16>
    %cst_14 = arith.constant dense<0.000000e+00> : vector<8x128xf32>
    %18 = tpu.matmul %16, %17, %cst_14 {dimension_numbers = #tpu.dot_dimension_numbers<[1], [0], [0], [1], [0, 0, 1, 1], [], []>} : vector<8x128xbf16>, vector<128x128xbf16>, vector<8x128xf32> -> vector<8x128xf32>
    %c0_15 = arith.constant 0 : index
    %c0_16 = arith.constant 0 : index
    %19 = vector.load %arg7[%c0_15, %c0_16] : memref<1x128xf32, #tpu.memory_space<vmem>>, vector<1x128xf32>
    %20 = vector.broadcast %19 : vector<1x128xf32> to vector<8x128xf32>
    %21 = arith.addf %18, %20 : vector<8x128xf32>
    %22 = arith.truncf %21 : vector<8x128xf32> to vector<8x128xbf16>
    %c0_17 = arith.constant 0 : index
    %c0_18 = arith.constant 0 : index
    %23 = vector.load %arg8[%c0_17, %c0_18] : memref<128x128xbf16, #tpu.memory_space<vmem>>, vector<128x128xbf16>
    %cst_19 = arith.constant dense<0.000000e+00> : vector<8x128xf32>
    %24 = tpu.matmul %22, %23, %cst_19 {dimension_numbers = #tpu.dot_dimension_numbers<[1], [0], [0], [1], [0, 0, 1, 1], [], []>} : vector<8x128xbf16>, vector<128x128xbf16>, vector<8x128xf32> -> vector<8x128xf32>
    %c0_20 = arith.constant 0 : index
    %c0_21 = arith.constant 0 : index
    %25 = vector.load %arg9[%c0_20, %c0_21] : memref<1x128xf32, #tpu.memory_space<vmem>>, vector<1x128xf32>
    %26 = vector.broadcast %25 : vector<1x128xf32> to vector<8x128xf32>
    %27 = arith.addf %24, %26 : vector<8x128xf32>
    %c0_22 = arith.constant 0 : index
    %c0_23 = arith.constant 0 : index
    %28 = vector.load %arg10[%c0_22, %c0_23] : memref<8x128xf32, #tpu.memory_space<vmem>>, vector<8x128xf32>
    tpu.vector_store %arg10[%c0_22, %c0_23], %21 {strides = array<i32>} : memref<8x128xf32, #tpu.memory_space<vmem>>, vector<8x128xf32>,
    %c0_24 = arith.constant 0 : index
    %c0_25 = arith.constant 0 : index
    %29 = vector.load %arg11[%c0_24, %c0_25] : memref<8x128xf32, #tpu.memory_space<vmem>>, vector<8x128xf32>
    tpu.vector_store %arg11[%c0_24, %c0_25], %27 {strides = array<i32>} : memref<8x128xf32, #tpu.memory_space<vmem>>, vector<8x128xf32>,
    return
  }
  func.func @transform_0(%arg0: i32) -> (i32, i32) {
    %c0_i32 = arith.constant 0 : i32
    %c0_i32_0 = arith.constant 0 : i32
    return %arg0, %c0_i32 : i32, i32
  }
  func.func @transform_1(%arg0: i32) -> (i32, i32) {
    %c0_i32 = arith.constant 0 : i32
    %c0_i32_0 = arith.constant 0 : i32
    %c0_i32_1 = arith.constant 0 : i32
    return %c0_i32, %c0_i32_0 : i32, i32
  }
  func.func @transform_2(%arg0: i32) -> (i32, i32) {
    %c0_i32 = arith.constant 0 : i32
    %c0_i32_0 = arith.constant 0 : i32
    %c0_i32_1 = arith.constant 0 : i32
    return %c0_i32, %c0_i32_0 : i32, i32
  }
  func.func @transform_3(%arg0: i32) -> (i32, i32) {
    %c0_i32 = arith.constant 0 : i32
    %c0_i32_0 = arith.constant 0 : i32
    %c0_i32_1 = arith.constant 0 : i32
    return %c0_i32, %c0_i32_0 : i32, i32
  }
  func.func @transform_4(%arg0: i32) -> (i32, i32) {
    %c0_i32 = arith.constant 0 : i32
    %c0_i32_0 = arith.constant 0 : i32
    %c0_i32_1 = arith.constant 0 : i32
    return %c0_i32, %c0_i32_0 : i32, i32
  }
  func.func @transform_5(%arg0: i32) -> (i32, i32) {
    %c0_i32 = arith.constant 0 : i32
    %c0_i32_0 = arith.constant 0 : i32
    %c0_i32_1 = arith.constant 0 : i32
    return %c0_i32, %c0_i32_0 : i32, i32
  }
  func.func @transform_6(%arg0: i32) -> (i32, i32) {
    %c0_i32 = arith.constant 0 : i32
    %c0_i32_0 = arith.constant 0 : i32
    %c0_i32_1 = arith.constant 0 : i32
    return %c0_i32, %c0_i32_0 : i32, i32
  }
  func.func @transform_7(%arg0: i32) -> (i32, i32) {
    %c0_i32 = arith.constant 0 : i32
    %c0_i32_0 = arith.constant 0 : i32
    %c0_i32_1 = arith.constant 0 : i32
    return %c0_i32, %c0_i32_0 : i32, i32
  }
  func.func @transform_8(%arg0: i32) -> (i32, i32) {
    %c0_i32 = arith.constant 0 : i32
    %c0_i32_0 = arith.constant 0 : i32
    %c0_i32_1 = arith.constant 0 : i32
    return %c0_i32, %c0_i32_0 : i32, i32
  }
  func.func @transform_9(%arg0: i32) -> (i32, i32) {
    %c0_i32 = arith.constant 0 : i32
    %c0_i32_0 = arith.constant 0 : i32
    return %arg0, %c0_i32 : i32, i32
  }
  func.func @transform_10(%arg0: i32) -> (i32, i32) {
    %c0_i32 = arith.constant 0 : i32
    %c0_i32_0 = arith.constant 0 : i32
    return %arg0, %c0_i32 : i32, i32
  }
}

</mosaic_0001>

<bundles_post_ra>
// kernel: vggfc_forward.6
= control target key start
LH: loop header
LB: loop body
LE: loop exit
PB: predicated region body
PF: predicated region fallthrough
CT: control target
= control target key end

     0   :  { %s2543_s12 = smov 0   ;;  %s2834_s0 = inlined_call_operand.vmem [shape: bf16[2,4,12,16], index: 0, kind: input, shape index: {}]   ;;  %s2835_s1 = inlined_call_operand.vmem [shape: bf16[9,16,32], index: 1, kind: input, shape index: {}]   ;;  %s2836_s2 = inlined_call_operand.vmem [shape: f32[1,32], index: 2, kind: input, shape index: {}]   ;;  %s2837_s3 = inlined_call_operand.vmem [shape: bf16[2,6,32], index: 3, kind: output, shape index: {}]  }
   0x1 LB: > { %s1966_s13 = sadd.s32 4294967295, %s2519_s12   ;;  %p1970_p0 = scmp.ge.s32.totalorder %s2519_s12, 1  ;;  %s2519_s12 = sphi %s2543_s12, %s13_s12  }
   0x2   : > { %p137_p1 = scmp.lt.s32.totalorder %s2519_s12, 3 }
   0x4   : > { %p138_p2 = pnand %p1970_p0, %p137_p1 }
   0x5   : > { %v2554_v0 = vld [vmem:[%s2835_s1 + $0x8] sm:$0xff] (!%p138_p2)   ;;  %v2521_v1 = vmov (!%p138_p2), 0.0   ;;  %p160_p3 = scmp.lt.s32.totalorder (!%p138_p2), %s1966_s13, 1  ;;  %vm2522_vm0 = vmmov (!%p138_p2), 0   ;;  %vm184_vm1 = vcmask (!%p138_p2), 130048   ;;  %v2572_v2 = vld [vmem:[%s2835_s1] sm:$0xff] (!%p138_p2)  }
   0x6   : > { %141 = sbr.rel (%p138_p2) target bundleno = 444 (0x1bc), region = 32  ;;  %2138 = vmatprep.subr.bf16.mxu0 (!%p138_p2), %v2521_v1  ;;  %2192 = vmatprep.subr.bf16.mxu1 (!%p138_p2), %v2521_v1  ;;  %v2594_v10 = vld [vmem:[%s2835_s1 + $0x10] sm:$0xff] (!%p138_p2)   ;;  %v2610_v13 = vld [vmem:[%s2835_s1 + $0x18] sm:$0xff] (!%p138_p2)   ;;  %v2628_v18 = vld [vmem:[%s2835_s1 + $0x20] sm:$0xff] (!%p138_p2)   ;;  %vm1911_vm2 = vcmask (!%p138_p2), 256000  }
   0x7   : > { %2139 = vmatpush3.bf16.msra.mxu0 (!%p138_p2), %v2554_v0  ;;  %2140 = vmatprep.mubr.msk.bf16.mxu0 (!%p138_p2), %vm2522_vm0, %v2521_v1  ;;  %v2649_v22 = vld [vmem:[%s2835_s1 + $0x28] sm:$0xff] (!%p138_p2)   ;;  %v2671_v31 = vld [vmem:[%s2835_s1 + $0x30] sm:$0xff] (!%p138_p2)   ;;  %v2692_v45 = vld [vmem:[%s2835_s1 + $0x38] sm:$0xff] (!%p138_p2)  }
   0x8   : > { %2193 = vmatpush3.bf16.msra.mxu1 (!%p138_p2), %v2554_v0  ;;  %2144 = vmatprep.subr.bf16.mxu0 (!%p138_p2), %v2521_v1  ;;  %v2708_v50 = vld [vmem:[%s2835_s1 + $0x40] sm:$0xff] (!%p138_p2)  }
   0x9   : > { %2194 = vmatprep.mubr.msk.bf16.mxu1 (!%p138_p2), %vm2522_vm0, %v2521_v1  ;;  %2198 = vmatprep.subr.bf16.mxu1 (!%p138_p2), %v2521_v1 }
   0xd   : > { %s2839_s13 = smov (!%p160_p3, %s1966_s13), 1 }
   0xe   : > { %s2065_s16 = sshll.u32 %s2839_s13, 5  ;;  %s1973_s11 = sshll.u32 %s2839_s13, 2 }
   0xf   : > { %s2577_s21 = scalar_lea.vmem %s2834_s0, %s2065_s16  ;;  %s168_s16 = scalar_lea.vmem %s2837_s3, %s1973_s11 }
  0x10   : > { %v1974_v3 = vld [vmem:[%s2577_s21 + $0x8] sm:$0x7]  ;;  %v2494_v4 = vld [vmem:[%s2577_s21] ss:$0 sps:$4 sm:$0xff]   ;;  %v2623_v17 = vld [vmem:[%s2577_s21 + $0x10] sm:$0x7] }
  0x11   : > { %2141 = vmatmul.mubr.msk.bf16.vlgmr.msra.gmra.mrb[0].mxu0 %vm184_vm1, %v1974_v3  ;;  %v285_v5 = vshrl.u32 %v2494_v4, 16  ;;  %v287_v6 = vshll.u32 %v2494_v4, 16  ;;  %v170_v9 = vld [vmem:[%s2577_s21] sm:$0x7]  ;;  %v2497_v11 = vld [vmem:[%s2577_s21 + $0x8] ss:$0 sps:$4 sm:$0xff]  }
  0x12   : > { %2145 = vmatpush3.bf16.msra.mxu0 %v2572_v2  ;;  %2146 = vmatprep.mubr.msk.bf16.mxu0 %vm2522_vm0, %v2521_v1  ;;  %v796_v12 = vshll.u32 %v2497_v11, 16  ;;  %v794_v14 = vshrl.u32 %v2497_v11, 16  ;;  %v2500_v19 = vld [vmem:[%s2577_s21 + $0x10] ss:$0 sps:$4 sm:$0xff]   ;;  %v2639_v20 = vld [vmem:[%s2577_s21 + $0x18] sm:$0x7] }
  0x13   : > { %2150 = vmatprep.subr.bf16.mxu0 %v2521_v1  ;;  %v289_v7 = vrot.slane %v287_v6, 1  ;;  %v461_v21 = vshll.u32 %v2500_v19, 16  ;;  %v459_v23 = vshrl.u32 %v2500_v19, 16  ;;  %v2502_v26 = vld [vmem:[%s2577_s21 + $0x18] ss:$0 sps:$4 sm:$0xff]  }
  0x14   : > { %v798_v15 = vrot.slane %v796_v12, 1  ;;  %v515_v27 = vld [vmem:[%s2577_s21] sm:$0xe]  ;;  %v516_v28 = vld [vmem:[%s2577_s21 + $0x4] sm:$0x1]  ;;  %v933_v29 = vshll.u32 %v2502_v26, 16 }
  0x15   : > { %v290_v8 = vor.u32 %v289_v7, %v285_v5  ;;  %v463_v24 = vrot.slane %v461_v21, 1  ;;  %v2004_v30 = vcombine.low %v515_v27, %v516_v28  ;;  %v931_v32 = vshrl.u32 %v2502_v26, 16  ;;  %v2007_v36 = vld [vmem:[%s2577_s21 + $0x8] sm:$0xe]  ;;  %v2008_v37 = vld [vmem:[%s2577_s21 + $0xc] sm:$0x1] }
  0x16   : > { %v799_v16 = vor.u32 %v798_v15, %v794_v14  ;;  %v935_v33 = vrot.slane %v933_v29, 1  ;;  %v2011_v39 = vcombine.low %v2007_v36, %v2008_v37  ;;  %v651_v49 = vld [vmem:[%s2577_s21] sm:$0xc]  ;;  %v2031_v53 = vld [vmem:[%s2577_s21 + $0x8] sm:$0xc] }
  0x17   : > { %2195 = vmatmul.mubr.msk.bf16.vlgmr.msra.gmra.mrb[0].mxu1 %vm184_vm1, %v290_v8  ;;  %v2658_v25 = vor.u32 %v463_v24, %v459_v23  ;;  %v526_v34 = vshrl.u32 %v2004_v30, 16  ;;  %v529_v35 = vshll.u32 %v2004_v30, 16  ;;  %v2016_v51 = vcombine.low %v651_v49, %v516_v28  ;;  %v2040_v56 = vld [vmem:[%s2577_s21 + $0x10] sm:$0xe]  ;;  %v2041_v57 = vld [vmem:[%s2577_s21 + $0x14] sm:$0x1] }
  0x18   : > { %2199 = vmatpush3.bf16.msra.mxu1 %v2572_v2  ;;  %2200 = vmatprep.mubr.msk.bf16.mxu1 %vm2522_vm0, %v2521_v1  ;;  %v2682_v38 = vor.u32 %v935_v33, %v931_v32  ;;  %v594_v42 = vshrl.u32 %v2011_v39, 16  ;;  %v597_v43 = vshll.u32 %v2011_v39, 16  ;;  %v2032_v54 = vcombine.low %v2031_v53, %v2008_v37  ;;  %v2044_v61 = vld [vmem:[%s2577_s21 + $0x18] sm:$0xe]  ;;  %v2045_v62 = vld [vmem:[%s2577_s21 + $0x1c] sm:$0x1] }
  0x19   : > { %2204 = vmatprep.subr.bf16.mxu1 %v2521_v1  ;;  %v528_v40 = vrot.slane %v526_v34, 1  ;;  %v531_v41 = vrot.slane %v529_v35, 2  ;;  %v658_v52 = vrot.slane %v2016_v51, 2  ;;  %v2042_v58 = vcombine.low %v2040_v56, %v2041_v57  ;;  %v2059_v12 = vld [vmem:[%s2577_s21 + $0x18] sm:$0xc] }
  0x1a   : > { %v596_v46 = vrot.slane %v594_v42, 1  ;;  %v599_v47 = vrot.slane %v597_v43, 2  ;;  %v1067_v55 = vrot.slane %v2032_v54, 2  ;;  %v2046_v63 = vcombine.low %v2044_v61, %v2045_v62  ;;  %v2062_v29 = vld [vmem:[%s2836_s2] ss:$0 sm:$0xff] }
  0x1b   : > { %v532_v44 = vor.u32 %v531_v41, %v528_v40  ;;  %v1365_v59 = vshrl.u32 %v2042_v58, 16  ;;  %v1368_v60 = vshll.u32 %v2042_v58, 16 }
  0x1c   : > { %v600_v48 = vor.u32 %v599_v47, %v596_v46  ;;  %v1427_v4 = vshll.u32 %v2046_v63, 16 }
  0x1d   : > { %2147 = vmatmul.mubr.msk.bf16.vlgmr.msra.gmra.mrb[0].mxu0 %vm184_vm1, %v170_v9  ;;  %v2048_v9 = vld [vmem:[%s2577_s21 + $0x10] sm:$0xc] }
  0x1e   : > { %2151 = vmatpush3.bf16.msra.mxu0 %v2594_v10  ;;  %2152 = vmatprep.mubr.msk.bf16.mxu0 %vm2522_vm0, %v2521_v1  ;;  %v1429_v7 = vrot.slane %v1427_v4, 2 }
  0x1f   : > { %2156 = vmatprep.subr.bf16.mxu0 %v2521_v1 }
  0x23   : > { %2201 = vmatmul.mubr.msk.bf16.vlgmr.msra.gmra.mrb[0].mxu1 %vm184_vm1, %v1974_v3  ;;  %v1424_v3 = vshrl.u32 %v2046_v63, 16 }
  0x24   : > { %2205 = vmatpush3.bf16.msra.mxu1 %v2594_v10  ;;  %2206 = vmatprep.mubr.msk.bf16.mxu1 %vm2522_vm0, %v2521_v1 }
  0x25   : > { %2210 = vmatprep.subr.bf16.mxu1 %v2521_v1  ;;  %v1426_v6 = vrot.slane %v1424_v3, 1 }
  0x29   : > { %2153 = vmatmul.mubr.msk.bf16.vlgmr.msra.gmra.mrb[0].mxu0 %vm184_vm1, %v290_v8  ;;  %v1430_v8 = vor.u32 %v1429_v7, %v1426_v6 }
  0x2a   : > { %2157 = vmatpush3.bf16.msra.mxu0 %v2610_v13  ;;  %2158 = vmatprep.mubr.msk.bf16.mxu0 %vm2522_vm0, %v2521_v1 }
  0x2b   : > { %2162 = vmatprep.subr.bf16.mxu0 %v2521_v1 }
  0x2f   : > { %2207 = vmatmul.mubr.msk.bf16.vlgmr.msra.gmra.mrb[0].mxu1 %vm184_vm1, %v799_v16 }
  0x30   : > { %2211 = vmatpush3.bf16.msra.mxu1 %v2610_v13  ;;  %2212 = vmatprep.mubr.msk.bf16.mxu1 %vm2522_vm0, %v2521_v1 }
  0x31   : > { %2216 = vmatprep.subr.bf16.mxu1 %v2521_v1 }
  0x35   : > { %2159 = vmatmul.mubr.msk.bf16.vlgmr.msra.gmra.mrb[0].mxu0 %vm184_vm1, %v2623_v17 }
  0x36   : > { %2163 = vmatpush3.bf16.msra.mxu0 %v2628_v18  ;;  %2164 = vmatprep.mubr.msk.bf16.mxu0 %vm2522_vm0, %v2521_v1 }
  0x37   : > { %2168 = vmatprep.subr.bf16.mxu0 %v2521_v1 }
  0x3b   : > { %2213 = vmatmul.mubr.msk.bf16.vlgmr.msra.gmra.mrb[0].mxu1 %vm184_vm1, %v2639_v20 }
  0x3c   : > { %2217 = vmatpush3.bf16.msra.mxu1 %v2628_v18  ;;  %2218 = vmatprep.mubr.msk.bf16.mxu1 %vm2522_vm0, %v2521_v1 }
  0x3d   : > { %2222 = vmatprep.subr.bf16.mxu1 %v2521_v1 }
  0x41   : > { %2165 = vmatmul.mubr.msk.bf16.vlgmr.msra.gmra.mrb[0].mxu0 %vm184_vm1, %v2639_v20 }
  0x42   : > { %2169 = vmatpush3.bf16.msra.mxu0 %v2649_v22  ;;  %2170 = vmatprep.mubr.msk.bf16.mxu0 %vm2522_vm0, %v2521_v1 }
  0x43   : > { %2174 = vmatprep.subr.bf16.mxu0 %v2521_v1 }
  0x47   : > { %2219 = vmatmul.mubr.msk.bf16.vlgmr.msra.gmra.mrb[0].mxu1 %vm184_vm1, %v2658_v25 }
  0x48   : > { %2223 = vmatpush3.bf16.msra.mxu1 %v2649_v22  ;;  %2224 = vmatprep.mubr.msk.bf16.mxu1 %vm2522_vm0, %v2521_v1 }
  0x49   : > { %2228 = vmatprep.subr.bf16.mxu1 %v2521_v1 }
  0x4d   : > { %2171 = vmatmul.mubr.msk.bf16.vlgmr.msra.gmra.mrb[0].mxu0 %vm184_vm1, %v2658_v25 }
  0x4e   : > { %2175 = vmatpush3.bf16.msra.mxu0 %v2671_v31  ;;  %2176 = vmatprep.mubr.msk.bf16.mxu0 %vm2522_vm0, %v2521_v1 }
  0x4f   : > { %2180 = vmatprep.subr.bf16.mxu0 %v2521_v1 }
  0x53   : > { %2225 = vmatmul.mubr.msk.bf16.vlgmr.msra.gmra.mrb[0].mxu1 %vm184_vm1, %v2682_v38 }
  0x54   : > { %2229 = vmatpush3.bf16.msra.mxu1 %v2671_v31  ;;  %2230 = vmatprep.mubr.msk.bf16.mxu1 %vm2522_vm0, %v2521_v1 }
  0x55   : > { %2234 = vmatprep.subr.bf16.mxu1 %v2521_v1 }
  0x59   : > { %2177 = vmatmul.mubr.msk.bf16.vlgmr.msra.gmra.mrb[0].mxu0 %vm184_vm1, %v532_v44 }
  0x5a   : > { %2181 = vmatpush3.bf16.msra.mxu0 %v2692_v45  ;;  %2182 = vmatprep.mubr.msk.bf16.mxu0 %vm2522_vm0, %v2521_v1 }
  0x5b   : > { %2186 = vmatprep.subr.bf16.mxu0 %v2521_v1 }
  0x5f   : > { %2231 = vmatmul.mubr.msk.bf16.vlgmr.msra.gmra.mrb[0].mxu1 %vm184_vm1, %v600_v48 }
  0x60   : > { %2235 = vmatpush3.bf16.msra.mxu1 %v2692_v45  ;;  %2236 = vmatprep.mubr.msk.bf16.mxu1 %vm2522_vm0, %v2521_v1 }
  0x61   : > { %2240 = vmatprep.subr.bf16.mxu1 %v2521_v1 }
  0x65   : > { %2183 = vmatmul.mubr.msk.bf16.vlgmr.msra.gmra.mrb[0].mxu0 %vm184_vm1, %v600_v48 }
  0x66   : > { %2187 = vmatpush3.bf16.msra.mxu0 %v2708_v50  ;;  %2188 = vmatprep.mubr.msk.bf16.mxu0 %vm2522_vm0, %v2521_v1 }
  0x67   : > { %2246 = vmatprep.subr.bf16.mxu0 %v2521_v1 }
  0x6b   : > { %2237 = vmatmul.mubr.msk.bf16.vlgmr.msra.gmra.mrb[0].mxu1 %vm184_vm1, %v658_v52 }
  0x6c   : > { %2241 = vmatpush3.bf16.msra.mxu1 %v2708_v50  ;;  %2242 = vmatprep.mubr.msk.bf16.mxu1 %vm2522_vm0, %v2521_v1 }
  0x6d   : > { %2300 = vmatprep.subr.bf16.mxu1 %v2521_v1 }
  0x71   : > { %2189 = vmatmul.mubr.msk.bf16.vlgmr.msra.gmra.mrb[0].mxu0 %vm184_vm1, %v658_v52 }
  0x72   : > { %2247 = vmatpush3.bf16.msra.mxu0 %v2554_v0  ;;  %2248 = vmatprep.mubr.msk.bf16.mxu0 %vm2522_vm0, %v2521_v1 }
  0x73   : > { %2252 = vmatprep.subr.bf16.mxu0 %v2521_v1 }
  0x77   : > { %2243 = vmatmul.mubr.msk.bf16.vlgmr.msra.gmra.mrb[0].mxu1 %vm184_vm1, %v1067_v55 }
  0x78   : > { %2301 = vmatpush3.bf16.msra.mxu1 %v2554_v0  ;;  %2302 = vmatprep.mubr.msk.bf16.mxu1 %vm2522_vm0, %v2521_v1  ;;  %v1367_v0 = vrot.slane %v1365_v59, 1 }
  0x79   : > { %2249 = vmatmul.mubr.msk.bf16.vlgmr.msra.gmra.mrb[4].mxu0 %vm184_vm1, %v2639_v20  ;;  %2306 = vmatprep.subr.bf16.mxu1 %v2521_v1 }
  0x7a   : > { %2253 = vmatpush3.bf16.msra.mxu0 %v2572_v2  ;;  %2254 = vmatprep.mubr.msk.bf16.mxu0 %vm2522_vm0, %v2521_v1 }
  0x7b   : > { %2258 = vmatprep.subr.bf16.mxu0 %v2521_v1 }
  0x7f   : > { %2303 = vmatmul.mubr.msk.bf16.vlgmr.msra.gmra.mrb[4].mxu1 %vm184_vm1, %v2658_v25 }
  0x80   : > { %2307 = vmatpush3.bf16.msra.mxu1 %v2572_v2  ;;  %2308 = vmatprep.mubr.msk.bf16.mxu1 %vm2522_vm0, %v2521_v1  ;;  %v1370_v2 = vrot.slane %v1368_v60, 2 }
  0x81   : > { %2312 = vmatprep.subr.bf16.mxu1 %v2521_v1 }
  0x82   : > { %v1371_v5 = vor.u32 %v1370_v2, %v1367_v0 }
  0x85   : > { %2255 = vmatmul.mubr.msk.bf16.vlgmr.msra.gmra.mrb[4].mxu0 %vm184_vm1, %v2623_v17 }
  0x86   : > { %2259 = vmatpush3.bf16.msra.mxu0 %v2594_v10  ;;  %2260 = vmatprep.mubr.msk.bf16.mxu0 %vm2522_vm0, %v2521_v1 }
  0x87   : > { %2264 = vmatprep.subr.bf16.mxu0 %v2521_v1 }
  0x8b   : > { %2309 = vmatmul.mubr.msk.bf16.vlgmr.msra.gmra.mrb[4].mxu1 %vm184_vm1, %v2639_v20 }
  0x8c   : > { %2313 = vmatpush3.bf16.msra.mxu1 %v2594_v10  ;;  %2314 = vmatprep.mubr.msk.bf16.mxu1 %vm2522_vm0, %v2521_v1  ;;  %v2049_v10 = vcombine.low %v2048_v9, %v2041_v57 }
  0x8d   : > { %2318 = vmatprep.subr.bf16.mxu1 %v2521_v1 }
  0x8e   : > { %v1479_v11 = vrot.slane %v2049_v10, 2 }
  0x91   : > { %2261 = vmatmul.mubr.msk.bf16.vlgmr.msra.gmra.mrb[4].mxu0 %vm184_vm1, %v2658_v25 }
  0x92   : > { %2265 = vmatpush3.bf16.msra.mxu0 %v2610_v13  ;;  %2266 = vmatprep.mubr.msk.bf16.mxu0 %vm2522_vm0, %v2521_v1 }
  0x93   : > { %2270 = vmatprep.subr.bf16.mxu0 %v2521_v1 }
  0x97   : > { %2315 = vmatmul.mubr.msk.bf16.vlgmr.msra.gmra.mrb[4].mxu1 %vm184_vm1, %v2682_v38 }
  0x98   : > { %2319 = vmatpush3.bf16.msra.mxu1 %v2610_v13  ;;  %2320 = vmatprep.mubr.msk.bf16.mxu1 %vm2522_vm0, %v2521_v1  ;;  %v2060_v13 = vcombine.low %v2059_v12, %v2045_v62 }
  0x99   : > { %2324 = vmatprep.subr.bf16.mxu1 %v2521_v1 }
  0x9a   : > { %v1855_v14 = vrot.slane %v2060_v13, 2 }
  0x9d   : > { %2267 = vmatmul.mubr.msk.bf16.vlgmr.msra.gmra.mrb[4].mxu0 %vm184_vm1, %v532_v44 }
  0x9e   : > { %2271 = vmatpush3.bf16.msra.mxu0 %v2628_v18  ;;  %2272 = vmatprep.mubr.msk.bf16.mxu0 %vm2522_vm0, %v2521_v1 }
  0x9f   : > { %2276 = vmatprep.subr.bf16.mxu0 %v2521_v1 }
  0xa3   : > { %2321 = vmatmul.mubr.msk.bf16.vlgmr.msra.gmra.mrb[4].mxu1 %vm184_vm1, %v600_v48 }
  0xa4   : > { %2325 = vmatpush3.bf16.msra.mxu1 %v2628_v18  ;;  %2326 = vmatprep.mubr.msk.bf16.mxu1 %vm2522_vm0, %v2521_v1 }
  0xa5   : > { %2330 = vmatprep.subr.bf16.mxu1 %v2521_v1 }
  0xa9   : > { %2273 = vmatmul.mubr.msk.bf16.vlgmr.msra.gmra.mrb[4].mxu0 %vm184_vm1, %v600_v48 }
  0xaa   : > { %2277 = vmatpush3.bf16.msra.mxu0 %v2649_v22  ;;  %2278 = vmatprep.mubr.msk.bf16.mxu0 %vm2522_vm0, %v2521_v1 }
  0xab   : > { %2282 = vmatprep.subr.bf16.mxu0 %v2521_v1 }
  0xaf   : > { %2327 = vmatmul.mubr.msk.bf16.vlgmr.msra.gmra.mrb[4].mxu1 %vm184_vm1, %v658_v52 }
  0xb0   : > { %2331 = vmatpush3.bf16.msra.mxu1 %v2649_v22  ;;  %2332 = vmatprep.mubr.msk.bf16.mxu1 %vm2522_vm0, %v2521_v1 }
  0xb1   : > { %2336 = vmatprep.subr.bf16.mxu1 %v2521_v1 }
  0xb5   : > { %2279 = vmatmul.mubr.msk.bf16.vlgmr.msra.gmra.mrb[4].mxu0 %vm184_vm1, %v658_v52 }
  0xb6   : > { %2283 = vmatpush3.bf16.msra.mxu0 %v2671_v31  ;;  %2284 = vmatprep.mubr.msk.bf16.mxu0 %vm2522_vm0, %v2521_v1 }
  0xb7   : > { %2288 = vmatprep.subr.bf16.mxu0 %v2521_v1 }
  0xbb   : > { %2333 = vmatmul.mubr.msk.bf16.vlgmr.msra.gmra.mrb[4].mxu1 %vm184_vm1, %v1067_v55 }
  0xbc   : > { %2337 = vmatpush3.bf16.msra.mxu1 %v2671_v31  ;;  %2338 = vmatprep.mubr.msk.bf16.mxu1 %vm2522_vm0, %v2521_v1 }
  0xbd   : > { %2342 = vmatprep.subr.bf16.mxu1 %v2521_v1 }
  0xc1   : > { %2285 = vmatmul.mubr.msk.bf16.vlgmr.msra.gmra.mrb[4].mxu0 %vm184_vm1, %v1371_v5 }
  0xc2   : > { %2289 = vmatpush3.bf16.msra.mxu0 %v2692_v45  ;;  %2290 = vmatprep.mubr.msk.bf16.mxu0 %vm2522_vm0, %v2521_v1 }
  0xc3   : > { %2294 = vmatprep.subr.bf16.mxu0 %v2521_v1 }
  0xc7   : > { %2339 = vmatmul.mubr.msk.bf16.vlgmr.msra.gmra.mrb[4].mxu1 %vm184_vm1, %v1430_v8 }
  0xc8   : > { %2343 = vmatpush3.bf16.msra.mxu1 %v2692_v45  ;;  %2344 = vmatprep.mubr.msk.bf16.mxu1 %vm2522_vm0, %v2521_v1 }
  0xc9   : > { %2348 = vmatprep.subr.bf16.mxu1 %v2521_v1 }
  0xcd   : > { %2291 = vmatmul.mubr.msk.bf16.vlgmr.msra.gmra.mrb[4].mxu0 %vm184_vm1, %v1430_v8 }
  0xce   : > { %2295 = vmatpush3.bf16.msra.mxu0 %v2708_v50  ;;  %2296 = vmatprep.mubr.msk.bf16.mxu0 %vm2522_vm0, %v2521_v1 }
  0xd3   : > { %2345 = vmatmul.mubr.msk.bf16.vlgmr.msra.gmra.mrb[4].mxu1 %vm184_vm1, %v1479_v11 }
  0xd4   : > { %2349 = vmatpush3.bf16.msra.mxu1 %v2708_v50  ;;  %2350 = vmatprep.mubr.msk.bf16.mxu1 %vm2522_vm0, %v2521_v1 }
  0xd9   : > { %2297 = vmatmul.mubr.msk.bf16.vlgmr.msra.gmra.mrb[4].mxu0 %vm184_vm1, %v1479_v11 }
  0xdf   : > { %2351 = vmatmul.mubr.msk.bf16.vlgmr.msra.gmra.mrb[4].mxu1 %vm184_vm1, %v1855_v14 }
 0x144   : > { %v702_v15 = vpop.f32.mrb[0].mxu0 }
 0x145   : > { %v2190_v16 = vpop.f32.mrb[1].mxu0 }
 0x146   : > { %v705_v17 = vpop.f32.mrb[2].mxu0 }
 0x147   : > { %v2191_v18 = vpop.f32.mrb[3].mxu0 }
 0x14a   : > { %v1105_v19 = vpop.f32.mrb[0].mxu1 }
 0x14b   : > { %v1112_v20 = vmax.f32 %v702_v15, %v1105_v19  ;;  %v2244_v21 = vpop.f32.mrb[1].mxu1 }
 0x14c   : > { %v1108_v22 = vpop.f32.mrb[2].mxu1 }
 0x14d   : > { %v2245_v23 = vpop.f32.mrb[3].mxu1 }
 0x1ac   : > { %v1517_v24 = vpop.f32.mrb[4].mxu0 }
 0x1ad   : > { %v1524_v25 = vmax.f32 %v1112_v20, %v1517_v24  ;;  %v2298_v1 = vpop.f32.mrb[5].mxu0 }
 0x1ae   : > { %v1520_v26 = vpop.f32.mrb[6].mxu0 }
 0x1af   : > { %v2299_v27 = vpop.f32.mrb[7].mxu0 }
 0x1b2   : > { %v1893_v28 = vpop.f32.mrb[4].mxu1 }
 0x1b3   : > { %v1900_v30 = vmax.f32 %v1524_v25, %v1893_v28  ;;  %v2352_v31 = vpop.f32.mrb[5].mxu1 }
 0x1b4   : > { %v1896_v32 = vpop.f32.mrb[6].mxu1 }
 0x1b5   : > { %v1908_v33 = vadd.f32 %v2062_v29, %v1900_v30  ;;  %v2353_v34 = vpop.f32.mrb[7].mxu1 }
 0x1b7   : > { %v1909_v35 = vmax.f32 %v1908_v33, 0.0 }
 0x1b9   : > { %v1910_v36 = vpack.c.bf16 %v1909_v35, %v1909_v35 }
 0x1bb   : > { %1912 = vst.msk [vmem:[%s168_s16] sm:$0x7] %vm1911_vm2, %v1910_v36 }
 0x1bc PF: > { %s13_s12 = sadd.s32 1, %s2519_s12  }
 0x1bd   : > { %p10_p4 = scmp.ge.s32.totalorder %s13_s12, 4  }
 0x1bf   :  { %12 = sbr.rel (!%p10_p4) target bundleno = 1 (0x1), region = 73 }

// kernel: vggfc_forward.5
= control target key start
LH: loop header
LB: loop body
LE: loop exit
PB: predicated region body
PF: predicated region fallthrough
CT: control target
= control target key end

     0   :  { %s3193_s12 = smov 0   ;;  %s3621_s0 = inlined_call_operand.vmem [shape: bf16[2,4,30,8], index: 0, kind: input, shape index: {}]   ;;  %s3622_s1 = inlined_call_operand.vmem [shape: bf16[9,8,16], index: 1, kind: input, shape index: {}]   ;;  %s3623_s2 = inlined_call_operand.vmem [shape: f32[1,16], index: 2, kind: input, shape index: {}]   ;;  %s3624_s3 = inlined_call_operand.vmem [shape: bf16[2,20,16], index: 3, kind: output, shape index: {}]  }
   0x1 LB: > { %s2495_s13 = sadd.s32 4294967295, %s3171_s12   ;;  %p2499_p0 = scmp.ge.s32.totalorder %s3171_s12, 1  ;;  %s3171_s12 = sphi %s3193_s12, %s13_s12  }
   0x2   : > { %p137_p1 = scmp.lt.s32.totalorder %s3171_s12, 3 }
   0x4   : > { %p138_p2 = pnand %p2499_p0, %p137_p1 }
   0x5   : > { %v3204_v0 = vld [vmem:[%s3622_s1 + $0x4] sm:$0xf] (!%p138_p2)  ;;  %vm197_vm0 = vcmask (!%p138_p2), 1043456   ;;  %p161_p3 = scmp.lt.s32.totalorder (!%p138_p2), %s2495_s13, 1  ;;  %v3217_v2 = vld [vmem:[%s3622_s1] sm:$0xf] (!%p138_p2) }
   0x6   : > { %141 = sbr.rel (%p138_p2) target bundleno = 449 (0x1c1), region = 32  ;;  %3096 = vmatprep.subr.msk.bf16.mxu0 (!%p138_p2), %vm197_vm0, %v3204_v0  ;;  %v3210_v1 = vsel (!%p138_p2), %vm197_vm0, %v3204_v0, 0  ;;  %3105 = vmatprep.subr.msk.bf16.mxu1 (!%p138_p2), %vm197_vm0, %v3204_v0  ;;  %vm190_vm1 = vcmask (!%p138_p2), 64512   ;;  %v3236_v4 = vsel (!%p138_p2), %vm197_vm0, %v3217_v2, 0  ;;  %v3241_v5 = vld [vmem:[%s3622_s1 + $0x8] sm:$0xf] (!%p138_p2) }
   0x7   : > { %2753 = vmatpush3.bf16.msra.mxu0 (!%p138_p2), %v3210_v1  ;;  %2807 = vmatpush3.bf16.msra.mxu1 (!%p138_p2), %v3210_v1  ;;  %vm320_vm2 = vsmask.f32 (!%p138_p2), 7424  ;;  %v3261_v21 = vsel (!%p138_p2), %vm197_vm0, %v3241_v5, 0  ;;  %v3268_v25 = vld [vmem:[%s3622_s1 + $0xc] sm:$0xf] (!%p138_p2)  ;;  %vm816_vm4 = vcmask (!%p138_p2), 1044480  }
   0x8   : > { %3097 = vmatprep.subr.msk.bf16.mxu0 (!%p138_p2), %vm197_vm0, %v3217_v2  ;;  %3106 = vmatprep.subr.msk.bf16.mxu1 (!%p138_p2), %vm197_vm0, %v3217_v2  ;;  %v3284_v30 = vsel (!%p138_p2), %vm197_vm0, %v3268_v25, 0  ;;  %v3291_v31 = vld [vmem:[%s3622_s1 + $0x10] sm:$0xf] (!%p138_p2)  ;;  %v3321_v42 = vld [vmem:[%s3622_s1 + $0x14] sm:$0xf] (!%p138_p2)  ;;  %vm2438_vm5 = vcmask (!%p138_p2), 123904  }
   0x9   : > { %v3313_v38 = vsel (!%p138_p2), %vm197_vm0, %v3291_v31, 0  ;;  %v3354_v57 = vsel (!%p138_p2), %vm197_vm0, %v3321_v42, 0  ;;  %v3363_v61 = vld [vmem:[%s3622_s1 + $0x18] sm:$0xf] (!%p138_p2)  ;;  %vm639_vm3 = vsmask.f32 (!%p138_p2), 5376 }
   0xa   : > { %vm2435_vm6 = vcmask (!%p138_p2), 125952  }
   0xd   : > { %s3626_s13 = smov (!%p161_p3, %s2495_s13), 1 }
   0xe   : > { %s2640_s18 = sshll.u32 %s3626_s13, 6  ;;  %s3132_s11 = smul.u32 12, %s3626_s13 }
   0xf   : > { %s3231_s21 = scalar_lea.vmem %s3621_s0, %s2640_s18 }
  0x10   : > { %v3141_v3 = vld [vmem:[%s3231_s21 + $0x10] sm:$0xff]   ;;  %v3142_v6 = vld [vmem:[%s3231_s21 + $0x18] ss:$0 sps:$4 sm:$0x33]   ;;  %v3143_v7 = vld [vmem:[%s3231_s21] sm:$0xff]   ;;  %s170_s16 = scalar_lea.vmem %s3624_s3, %s3132_s11 }
  0x11   : > { %2754 = vmatprep.mubr.msk.bf16.mxu0 %vm190_vm1, %v3141_v3  ;;  %v3144_v8 = vld [vmem:[%s3231_s21 + $0x8] ss:$0 sps:$4 sm:$0x77]   ;;  %v321_v9 = vshrl.u32 %v3143_v7, 16  ;;  %v323_v10 = vshll.u32 %v3143_v7, 16  ;;  %v982_v17 = vshll.u32 %v3141_v3, 16 }
  0x12   : > { %2755 = vmatmul.mubr.msk.bf16.vlgmr.msra.gmra.mrb[0].mxu0 %vm190_vm1, %v3142_v6  ;;  %v328_v12 = vshll.u32 %v3144_v8, 16  ;;  %v332_v13 = vshrl.u32 %v3144_v8, 16  ;;  %v3146_v16 = vld [vmem:[%s3231_s21 + $0x18] ss:$0 sps:$4 sm:$0x77]   ;;  %v980_v22 = vshrl.u32 %v3141_v3, 16 }
  0x13   : > { %2759 = vmatpush3.bf16.msra.mxu0 %v3236_v4  ;;  %2760 = vmatprep.mubr.msk.bf16.mxu0 %vm190_vm1, %v3143_v7  ;;  %v325_v11 = vrot.slane %v323_v10, 1  ;;  %v3145_v20 = vld [vmem:[%s3231_s21 + $0x8] ss:$0 sps:$4 sm:$0x33]   ;;  %v984_v23 = vrot.slane %v982_v17, 1  ;;  %v987_v24 = vshll.u32 %v3146_v16, 16 }
  0x14   : > { %3098 = vmatprep.subr.msk.bf16.mxu0 %vm197_vm0, %v3241_v5  ;;  %v330_v15 = vrot.slane %v328_v12, 1  ;;  %v3280_v29 = vld [vmem:[%s3231_s21 + $0x20] sm:$0xff]   ;;  %v991_v32 = vshrl.u32 %v3146_v16, 16  ;;  %v3300_v34 = vld [vmem:[%s3231_s21 + $0x30] sm:$0xff]   ;;  %v3344_v52 = vld [vmem:[%s3231_s21 + $0x8] sm:$0x1f]  }
  0x15   : > { %v326_v14 = vor.u32 %v325_v11, %v321_v9  ;;  %v985_v26 = vor.u32 %v984_v23, %v980_v22  ;;  %v989_v27 = vrot.slane %v987_v24, 1  ;;  %v3151_v35 = vld [vmem:[%s3231_s21 + $0x28] ss:$0 sps:$4 sm:$0x77]   ;;  %v551_v36 = vshll.u32 %v3280_v29, 16 }
  0x16   : > { %v334_v19 = vor.u32 %v332_v13, %v330_v15  ;;  %v3306_v37 = vld [vmem:[%s3231_s21 + $0x28] ss:$0 sps:$4 sm:$0x33]   ;;  %v549_v39 = vshrl.u32 %v3280_v29, 16  ;;  %v556_v41 = vshll.u32 %v3151_v35, 16  ;;  %v1159_v49 = vshll.u32 %v3300_v34, 16 }
  0x17   : > { %v331_v18 = vsel %vm320_vm2, %v326_v14, %v330_v15  ;;  %v990_v28 = vsel %vm320_vm2, %v985_v26, %v989_v27  ;;  %v993_v33 = vor.u32 %v991_v32, %v989_v27  ;;  %v553_v40 = vrot.slane %v551_v36, 1  ;;  %v623_v45 = vld [vmem:[%s3231_s21] sm:$0xc]  ;;  %v3332_v46 = vld [vmem:[%s3231_s21 + $0x4] sm:$0xf] }
  0x18   : > { %2808 = vmatprep.mubr.msk.bf16.mxu1 %vm190_vm1, %v331_v18  ;;  %v558_v44 = vrot.slane %v556_v41, 1  ;;  %v3335_v47 = vld [vmem:[%s3231_s21 + $0x38] ss:$0 sps:$4 sm:$0x33]   ;;  %v2541_v50 = vcombine.low %v623_v45, %v3332_v46  ;;  %v1157_v53 = vshrl.u32 %v3300_v34, 16  ;;  %v1161_v54 = vrot.slane %v1159_v49, 1 }
  0x19   : > { %2809 = vmatmul.mubr.msk.bf16.vlgmr.msra.gmra.mrb[0].mxu1 %vm190_vm1, %v334_v19  ;;  %v554_v43 = vor.u32 %v553_v40, %v549_v39  ;;  %v3152_v48 = vld [vmem:[%s3231_s21 + $0x38] ss:$0 sps:$4 sm:$0x77]   ;;  %v649_v59 = vshrl.u32 %v3344_v52, 16  ;;  %v652_v60 = vshll.u32 %v3344_v52, 16  ;;  %v3390_v23 = vsel %vm197_vm0, %v3363_v61, 0 }
  0x1a   : > { %2813 = vmatpush3.bf16.msra.mxu1 %v3236_v4  ;;  %2814 = vmatprep.mubr.msk.bf16.mxu1 %vm190_vm1, %v3141_v3  ;;  %v1164_v55 = vshll.u32 %v3152_v48, 16  ;;  %v641_v56 = vshrl.u32 %v2541_v50, 16  ;;  %v644_v58 = vshll.u32 %v2541_v50, 16  ;;  %v2545_v62 = vld [vmem:[%s3231_s21 + $0x10] sm:$0xc]  ;;  %v560_v3 = vshrl.u32 %v3151_v35, 16 }
  0x1b   : > { %3107 = vmatprep.subr.msk.bf16.mxu1 %vm197_vm0, %v3241_v5  ;;  %v3341_v51 = vsel %vm320_vm2, %v554_v43, %v558_v44  ;;  %v3367_v63 = vld [vmem:[%s3231_s21 + $0x14] sm:$0xf]  ;;  %v3156_v9 = vld [vmem:[%s3231_s21 + $0x18] sm:$0x1f]   ;;  %v651_v11 = vrot.slane %v649_v59, 2  ;;  %v654_v12 = vrot.slane %v652_v60, 3 }
  0x1c   : > { %v1166_v7 = vrot.slane %v1164_v55, 1  ;;  %v643_v8 = vrot.slane %v641_v56, 2  ;;  %v646_v10 = vrot.slane %v644_v58, 3  ;;  %v2550_v13 = vcombine.low %v2545_v62, %v3367_v63  ;;  %v810_v43 = vld [vmem:[%s3231_s21] sm:$0x8] }
  0x1d   : > { %v3378_v14 = vor.u32 %v560_v3, %v558_v44  ;;  %v742_v16 = vshrl.u32 %v3156_v9, 16  ;;  %v745_v17 = vshll.u32 %v3156_v9, 16  ;;  %v1168_v35 = vshrl.u32 %v3152_v48, 16  ;;  %v3436_v48 = vld [vmem:[%s3622_s1 + $0x20] sm:$0xf] }
  0x1e   : > { %2761 = vmatmul.mubr.msk.bf16.vlgmr.msra.gmra.mrb[0].mxu0 %vm190_vm1, %v3145_v20  ;;  %v734_v20 = vshrl.u32 %v2550_v13, 16  ;;  %v737_v22 = vshll.u32 %v2550_v13, 16  ;;  %v2555_v45 = vcombine.low %v810_v43, %v3332_v46  ;;  %v3446_v50 = vrot.slane %v3344_v52, 3  ;;  %v3162_v59 = vld [vmem:[%s3231_s21 + $0x38] sm:$0x1f]  }
  0x1f   : > { %2765 = vmatpush3.bf16.msra.mxu0 %v3261_v21  ;;  %2766 = vmatprep.mubr.msk.bf16.mxu0 %vm190_vm1, %v331_v18  ;;  %v647_v18 = vor.u32 %v646_v10, %v643_v8  ;;  %v744_v24 = vrot.slane %v742_v16, 2  ;;  %v747_v32 = vrot.slane %v745_v17, 3  ;;  %v3414_v40 = vor.u32 %v1168_v35, %v1166_v7 }
  0x20   : > { %3099 = vmatprep.subr.msk.bf16.mxu0 %vm197_vm0, %v3268_v25  ;;  %v736_v27 = vrot.slane %v734_v20, 2  ;;  %v817_v49 = vrot.slane %v2555_v45, 3  ;;  %v3472_v56 = vrot.slane %v3156_v9, 3  ;;  %v1808_v3 = vshrl.u32 %v3162_v59, 16 }
  0x21   : > { %v3412_v39 = vor.u32 %v747_v32, %v744_v24 }
  0x22   : > { %v3450_v46 = vsel %vm816_vm4, %v817_v49, %v3446_v50  ;;  %v1810_v10 = vrot.slane %v1808_v3, 2 }
  0x25   : > { %2815 = vmatmul.mubr.msk.bf16.vlgmr.msra.gmra.mrb[0].mxu1 %vm190_vm1, %v3142_v6  ;;  %v1162_v6 = vor.u32 %v1161_v54, %v1157_v53  ;;  %v2578_v53 = vld [vmem:[%s3231_s21 + $0x10] sm:$0x8]  ;;  %v3460_v54 = vsel %vm197_vm0, %v3436_v48, 0 }
  0x26   : > { %2819 = vmatpush3.bf16.msra.mxu1 %v3261_v21  ;;  %2820 = vmatprep.mubr.msk.bf16.mxu1 %vm190_vm1, %v990_v28  ;;  %v739_v28 = vrot.slane %v737_v22, 3  ;;  %v2579_v52 = vcombine.low %v2578_v53, %v3367_v63  ;;  %v2347_v22 = vrot.slane %v3162_v59, 3 }
  0x27   : > { %3108 = vmatprep.subr.msk.bf16.mxu1 %vm197_vm0, %v3268_v25  ;;  %v3381_v15 = vsel %vm320_vm2, %v1162_v6, %v1166_v7  ;;  %v1811_v6 = vshll.u32 %v3162_v59, 16 }
  0x28   : > { %v740_v36 = vor.u32 %v739_v28, %v736_v27  ;;  %v1334_v55 = vrot.slane %v2579_v52, 3 }
  0x2a   : > { %2767 = vmatmul.mubr.msk.bf16.vlgmr.msra.gmra.mrb[0].mxu0 %vm190_vm1, %v334_v19  ;;  %v3383_v19 = vor.u32 %v654_v12, %v651_v11  ;;  %v3418_v41 = vsel %vm639_vm3, %v740_v36, %v3412_v39  ;;  %v3476_v58 = vsel %vm816_vm4, %v1334_v55, %v3472_v56  ;;  %v1813_v11 = vrot.slane %v1811_v6, 3 }
  0x2b   : > { %2771 = vmatpush3.bf16.msra.mxu0 %v3284_v30  ;;  %2772 = vmatprep.mubr.msk.bf16.mxu0 %vm190_vm1, %v3280_v29 }
  0x2c   : > { %3100 = vmatprep.subr.msk.bf16.mxu0 %vm197_vm0, %v3291_v31  ;;  %v3398_v26 = vsel %vm639_vm3, %v647_v18, %v3383_v19  ;;  %v1814_v12 = vor.u32 %v1813_v11, %v1810_v10  ;;  %v2630_v18 = vld [vmem:[%s3231_s21 + $0x30] sm:$0x8] }
  0x31   : > { %2821 = vmatmul.mubr.msk.bf16.vlgmr.msra.gmra.mrb[0].mxu1 %vm190_vm1, %v993_v33  ;;  %v3403_v33 = vld [vmem:[%s3622_s1 + $0x1c] sm:$0xf] }
  0x32   : > { %2825 = vmatpush3.bf16.msra.mxu1 %v3284_v30  ;;  %2826 = vmatprep.mubr.msk.bf16.mxu1 %vm190_vm1, %v3300_v34  ;;  %v3428_v44 = vsel %vm197_vm0, %v3403_v33, 0 }
  0x33   : > { %3109 = vmatprep.subr.msk.bf16.mxu1 %vm197_vm0, %v3291_v31 }
  0x36   : > { %2773 = vmatmul.mubr.msk.bf16.vlgmr.msra.gmra.mrb[0].mxu0 %vm190_vm1, %v3306_v37 }
  0x37   : > { %2777 = vmatpush3.bf16.msra.mxu0 %v3313_v38  ;;  %2778 = vmatprep.mubr.msk.bf16.mxu0 %vm190_vm1, %v3300_v34 }
  0x38   : > { %3101 = vmatprep.subr.msk.bf16.mxu0 %vm197_vm0, %v3321_v42 }
  0x3d   : > { %2827 = vmatmul.mubr.msk.bf16.vlgmr.msra.gmra.mrb[0].mxu1 %vm190_vm1, %v3335_v47 }
  0x3e   : > { %2831 = vmatpush3.bf16.msra.mxu1 %v3313_v38  ;;  %2832 = vmatprep.mubr.msk.bf16.mxu1 %vm190_vm1, %v3341_v51 }
  0x3f   : > { %3110 = vmatprep.subr.msk.bf16.mxu1 %vm197_vm0, %v3321_v42 }
  0x42   : > { %2779 = vmatmul.mubr.msk.bf16.vlgmr.msra.gmra.mrb[0].mxu0 %vm190_vm1, %v3335_v47 }
  0x43   : > { %2783 = vmatpush3.bf16.msra.mxu0 %v3354_v57  ;;  %2784 = vmatprep.mubr.msk.bf16.mxu0 %vm190_vm1, %v3341_v51 }
  0x44   : > { %3102 = vmatprep.subr.msk.bf16.mxu0 %vm197_vm0, %v3363_v61 }
  0x49   : > { %2833 = vmatmul.mubr.msk.bf16.vlgmr.msra.gmra.mrb[0].mxu1 %vm190_vm1, %v3378_v14 }
  0x4a   : > { %2837 = vmatpush3.bf16.msra.mxu1 %v3354_v57  ;;  %2838 = vmatprep.mubr.msk.bf16.mxu1 %vm190_vm1, %v3381_v15 }
  0x4b   : > { %3111 = vmatprep.subr.msk.bf16.mxu1 %vm197_vm0, %v3363_v61 }
  0x4e   : > { %2785 = vmatmul.mubr.msk.bf16.vlgmr.msra.gmra.mrb[0].mxu0 %vm190_vm1, %v3378_v14 }
  0x4f   : > { %2789 = vmatpush3.bf16.msra.mxu0 %v3390_v23  ;;  %2790 = vmatprep.mubr.msk.bf16.mxu0 %vm190_vm1, %v3398_v26 }
  0x50   : > { %3103 = vmatprep.subr.msk.bf16.mxu0 %vm197_vm0, %v3403_v33 }
  0x55   : > { %2839 = vmatmul.mubr.msk.bf16.vlgmr.msra.gmra.mrb[0].mxu1 %vm190_vm1, %v3414_v40 }
  0x56   : > { %2843 = vmatpush3.bf16.msra.mxu1 %v3390_v23  ;;  %2844 = vmatprep.mubr.msk.bf16.mxu1 %vm190_vm1, %v3418_v41 }
  0x57   : > { %3112 = vmatprep.subr.msk.bf16.mxu1 %vm197_vm0, %v3403_v33 }
  0x5a   : > { %2791 = vmatmul.mubr.msk.bf16.vlgmr.msra.gmra.mrb[0].mxu0 %vm190_vm1, %v3383_v19 }
  0x5b   : > { %2795 = vmatpush3.bf16.msra.mxu0 %v3428_v44  ;;  %2796 = vmatprep.mubr.msk.bf16.mxu0 %vm190_vm1, %v3418_v41 }
  0x5c   : > { %3104 = vmatprep.subr.msk.bf16.mxu0 %vm197_vm0, %v3436_v48 }
  0x61   : > { %2845 = vmatmul.mubr.msk.bf16.vlgmr.msra.gmra.mrb[0].mxu1 %vm190_vm1, %v3412_v39 }
  0x62   : > { %2849 = vmatpush3.bf16.msra.mxu1 %v3428_v44  ;;  %2850 = vmatprep.mubr.msk.bf16.mxu1 %vm190_vm1, %v3450_v46 }
  0x63   : > { %3113 = vmatprep.subr.msk.bf16.mxu1 %vm197_vm0, %v3436_v48 }
  0x66   : > { %2797 = vmatmul.mubr.msk.bf16.vlgmr.msra.gmra.mrb[0].mxu0 %vm190_vm1, %v3412_v39 }
  0x67   : > { %2801 = vmatpush3.bf16.msra.mxu0 %v3460_v54  ;;  %2802 = vmatprep.mubr.msk.bf16.mxu0 %vm190_vm1, %v3450_v46 }
  0x68   : > { %3114 = vmatprep.subr.msk.bf16.mxu0 %vm197_vm0, %v3204_v0 }
  0x6d   : > { %2851 = vmatmul.mubr.msk.bf16.vlgmr.msra.gmra.mrb[0].mxu1 %vm190_vm1, %v3446_v50 }
  0x6e   : > { %2855 = vmatpush3.bf16.msra.mxu1 %v3460_v54  ;;  %2856 = vmatprep.mubr.msk.bf16.mxu1 %vm190_vm1, %v3476_v58 }
  0x6f   : > { %3123 = vmatprep.subr.msk.bf16.mxu1 %vm197_vm0, %v3204_v0  ;;  %v2594_v0 = vld [vmem:[%s3231_s21 + $0x20] sm:$0xc] }
  0x72   : > { %2803 = vmatmul.mubr.msk.bf16.vlgmr.msra.gmra.mrb[0].mxu0 %vm190_vm1, %v3446_v50 }
  0x73   : > { %2861 = vmatpush3.bf16.msra.mxu0 %v3210_v1  ;;  %2862 = vmatprep.mubr.msk.bf16.mxu0 %vm190_vm1, %v3300_v34 }
  0x74   : > { %3115 = vmatprep.subr.msk.bf16.mxu0 %vm197_vm0, %v3217_v2 }
  0x79   : > { %2857 = vmatmul.mubr.msk.bf16.vlgmr.msra.gmra.mrb[0].mxu1 %vm190_vm1, %v3472_v56 }
  0x7a   : > { %2863 = vmatmul.mubr.msk.bf16.vlgmr.msra.gmra.mrb[4].mxu0 %vm190_vm1, %v3335_v47  ;;  %2915 = vmatpush3.bf16.msra.mxu1 %v3210_v1  ;;  %v2595_v1 = vld [vmem:[%s3231_s21 + $0x24] sm:$0xf] }
  0x7b   : > { %2867 = vmatpush3.bf16.msra.mxu0 %v3236_v4  ;;  %2916 = vmatprep.mubr.msk.bf16.mxu1 %vm190_vm1, %v3341_v51 }
  0x7c   : > { %3124 = vmatprep.subr.msk.bf16.mxu1 %vm197_vm0, %v3217_v2  ;;  %2868 = vmatprep.mubr.msk.bf16.mxu0 %vm190_vm1, %v3280_v29  ;;  %v2598_v2 = vcombine.low %v2594_v0, %v2595_v1 }
  0x7d   : > { %3116 = vmatprep.subr.msk.bf16.mxu0 %vm197_vm0, %v3241_v5 }
  0x81   : > { %2917 = vmatmul.mubr.msk.bf16.vlgmr.msra.gmra.mrb[4].mxu1 %vm190_vm1, %v3378_v14 }
  0x82   : > { %2921 = vmatpush3.bf16.msra.mxu1 %v3236_v4  ;;  %2922 = vmatprep.mubr.msk.bf16.mxu1 %vm190_vm1, %v3300_v34  ;;  %v3160_v4 = vld [vmem:[%s3231_s21 + $0x28] sm:$0x1f]  }
  0x83   : > { %3125 = vmatprep.subr.msk.bf16.mxu1 %vm197_vm0, %v3241_v5  ;;  %v1712_v5 = vshrl.u32 %v2598_v2, 16  ;;  %v1723_v29 = vshll.u32 %v3160_v4, 16  ;;  %v1878_v16 = vrot.slane %v3160_v4, 3 }
  0x85   : > { %v1714_v34 = vrot.slane %v1712_v5, 2 }
  0x86   : > { %2869 = vmatmul.mubr.msk.bf16.vlgmr.msra.gmra.mrb[4].mxu0 %vm190_vm1, %v3306_v37 }
  0x87   : > { %2873 = vmatpush3.bf16.msra.mxu0 %v3261_v21  ;;  %2874 = vmatprep.mubr.msk.bf16.mxu0 %vm190_vm1, %v3341_v51 }
  0x88   : > { %3117 = vmatprep.subr.msk.bf16.mxu0 %vm197_vm0, %v3268_v25 }
  0x8d   : > { %2923 = vmatmul.mubr.msk.bf16.vlgmr.msra.gmra.mrb[4].mxu1 %vm190_vm1, %v3335_v47  ;;  %v1725_v47 = vrot.slane %v1723_v29, 3 }
  0x8e   : > { %2927 = vmatpush3.bf16.msra.mxu1 %v3261_v21  ;;  %2928 = vmatprep.mubr.msk.bf16.mxu1 %vm190_vm1, %v3381_v15  ;;  %v1715_v21 = vshll.u32 %v2598_v2, 16 }
  0x8f   : > { %3126 = vmatprep.subr.msk.bf16.mxu1 %vm197_vm0, %v3268_v25  ;;  %v1720_v25 = vshrl.u32 %v3160_v4, 16 }
  0x90   : > { %v1717_v37 = vrot.slane %v1715_v21, 3 }
  0x92   : > { %2875 = vmatmul.mubr.msk.bf16.vlgmr.msra.gmra.mrb[4].mxu0 %vm190_vm1, %v3378_v14 }
  0x93   : > { %2879 = vmatpush3.bf16.msra.mxu0 %v3284_v30  ;;  %2880 = vmatprep.mubr.msk.bf16.mxu0 %vm190_vm1, %v3398_v26 }
  0x94   : > { %3118 = vmatprep.subr.msk.bf16.mxu0 %vm197_vm0, %v3291_v31 }
  0x99   : > { %2929 = vmatmul.mubr.msk.bf16.vlgmr.msra.gmra.mrb[4].mxu1 %vm190_vm1, %v3414_v40 }
  0x9a   : > { %2933 = vmatpush3.bf16.msra.mxu1 %v3284_v30  ;;  %2934 = vmatprep.mubr.msk.bf16.mxu1 %vm190_vm1, %v3418_v41  ;;  %v2602_v30 = vld [vmem:[%s3231_s21 + $0x30] sm:$0xc] }
  0x9b   : > { %3127 = vmatprep.subr.msk.bf16.mxu1 %vm197_vm0, %v3291_v31  ;;  %v2603_v31 = vld [vmem:[%s3231_s21 + $0x34] sm:$0xf] }
  0x9c   : > { %v2606_v51 = vcombine.low %v2602_v30, %v2603_v31 }
  0x9e   : > { %2881 = vmatmul.mubr.msk.bf16.vlgmr.msra.gmra.mrb[4].mxu0 %vm190_vm1, %v3383_v19  ;;  %v1800_v62 = vshrl.u32 %v2606_v51, 16  ;;  %v1803_v63 = vshll.u32 %v2606_v51, 16  ;;  %v2631_v19 = vcombine.low %v2630_v18, %v2603_v31 }
  0x9f   : > { %2885 = vmatpush3.bf16.msra.mxu0 %v3313_v38  ;;  %2886 = vmatprep.mubr.msk.bf16.mxu0 %vm190_vm1, %v3418_v41 }
  0xa0   : > { %3119 = vmatprep.subr.msk.bf16.mxu0 %vm197_vm0, %v3321_v42  ;;  %v1802_v8 = vrot.slane %v1800_v62, 2  ;;  %v1805_v9 = vrot.slane %v1803_v63, 3  ;;  %v2346_v20 = vrot.slane %v2631_v19, 3 }
  0xa5   : > { %2935 = vmatmul.mubr.msk.bf16.vlgmr.msra.gmra.mrb[4].mxu1 %vm190_vm1, %v3412_v39 }
  0xa6   : > { %2939 = vmatpush3.bf16.msra.mxu1 %v3313_v38  ;;  %2940 = vmatprep.mubr.msk.bf16.mxu1 %vm190_vm1, %v3450_v46  ;;  %v1722_v38 = vrot.slane %v1720_v25, 2 }
  0xa7   : > { %3128 = vmatprep.subr.msk.bf16.mxu1 %vm197_vm0, %v3321_v42  ;;  %v1718_v42 = vor.u32 %v1717_v37, %v1714_v34 }
  0xa8   : > { %v1726_v60 = vor.u32 %v1725_v47, %v1722_v38 }
  0xaa   : > { %2887 = vmatmul.mubr.msk.bf16.vlgmr.msra.gmra.mrb[4].mxu0 %vm190_vm1, %v3412_v39  ;;  %v1727_v7 = vsel %vm639_vm3, %v1718_v42, %v1726_v60 }
  0xab   : > { %2891 = vmatpush3.bf16.msra.mxu0 %v3354_v57  ;;  %2892 = vmatprep.mubr.msk.bf16.mxu0 %vm190_vm1, %v3450_v46 }
  0xac   : > { %3120 = vmatprep.subr.msk.bf16.mxu0 %vm197_vm0, %v3363_v61 }
  0xb1   : > { %2941 = vmatmul.mubr.msk.bf16.vlgmr.msra.gmra.mrb[4].mxu1 %vm190_vm1, %v3446_v50 }
  0xb2   : > { %2945 = vmatpush3.bf16.msra.mxu1 %v3354_v57  ;;  %2946 = vmatprep.mubr.msk.bf16.mxu1 %vm190_vm1, %v3476_v58  ;;  %v1806_v57 = vor.u32 %v1805_v9, %v1802_v8 }
  0xb3   : > { %3129 = vmatprep.subr.msk.bf16.mxu1 %vm197_vm0, %v3363_v61  ;;  %v2610_v61 = vld [vmem:[%s3231_s21 + $0x20] sm:$0x8] }
  0xb4   : > { %v1815_v13 = vsel %vm639_vm3, %v1806_v57, %v1814_v12  ;;  %v2611_v14 = vcombine.low %v2610_v61, %v2595_v1 }
  0xb6   : > { %2893 = vmatmul.mubr.msk.bf16.vlgmr.msra.gmra.mrb[4].mxu0 %vm190_vm1, %v3446_v50  ;;  %v1877_v15 = vrot.slane %v2611_v14, 3 }
  0xb7   : > { %2897 = vmatpush3.bf16.msra.mxu0 %v3390_v23  ;;  %2898 = vmatprep.mubr.msk.bf16.mxu0 %vm190_vm1, %v1727_v7 }
  0xb8   : > { %3121 = vmatprep.subr.msk.bf16.mxu0 %vm197_vm0, %v3403_v33  ;;  %v1879_v17 = vsel %vm816_vm4, %v1877_v15, %v1878_v16 }
  0xbd   : > { %2947 = vmatmul.mubr.msk.bf16.vlgmr.msra.gmra.mrb[4].mxu1 %vm190_vm1, %v3472_v56 }
  0xbe   : > { %2951 = vmatpush3.bf16.msra.mxu1 %v3390_v23  ;;  %2952 = vmatprep.mubr.msk.bf16.mxu1 %vm190_vm1, %v1815_v13  ;;  %v2348_v23 = vsel %vm816_vm4, %v2346_v20, %v2347_v22 }
  0xbf   : > { %3130 = vmatprep.subr.msk.bf16.mxu1 %vm197_vm0, %v3403_v33 }
  0xc2   : > { %2899 = vmatmul.mubr.msk.bf16.vlgmr.msra.gmra.mrb[4].mxu0 %vm190_vm1, %v1726_v60 }
  0xc3   : > { %2903 = vmatpush3.bf16.msra.mxu0 %v3428_v44  ;;  %2904 = vmatprep.mubr.msk.bf16.mxu0 %vm190_vm1, %v1815_v13 }
  0xc4   : > { %3122 = vmatprep.subr.msk.bf16.mxu0 %vm197_vm0, %v3436_v48 }
  0xc9   : > { %2953 = vmatmul.mubr.msk.bf16.vlgmr.msra.gmra.mrb[4].mxu1 %vm190_vm1, %v1814_v12 }
  0xca   : > { %2957 = vmatpush3.bf16.msra.mxu1 %v3428_v44  ;;  %2958 = vmatprep.mubr.msk.bf16.mxu1 %vm190_vm1, %v1879_v17 }
  0xcb   : > { %3131 = vmatprep.subr.msk.bf16.mxu1 %vm197_vm0, %v3436_v48 }
  0xce   : > { %2905 = vmatmul.mubr.msk.bf16.vlgmr.msra.gmra.mrb[4].mxu0 %vm190_vm1, %v1814_v12 }
  0xcf   : > { %2909 = vmatpush3.bf16.msra.mxu0 %v3460_v54  ;;  %2910 = vmatprep.mubr.msk.bf16.mxu0 %vm190_vm1, %v1879_v17 }
  0xd5   : > { %2959 = vmatmul.mubr.msk.bf16.vlgmr.msra.gmra.mrb[4].mxu1 %vm190_vm1, %v1878_v16 }
  0xd6   : > { %2963 = vmatpush3.bf16.msra.mxu1 %v3460_v54  ;;  %2964 = vmatprep.mubr.msk.bf16.mxu1 %vm190_vm1, %v2348_v23  ;;  %v2634_v54 = vld [vmem:[%s3623_s2] ss:$0 sm:$0xff] }
  0xda   : > { %2911 = vmatmul.mubr.msk.bf16.vlgmr.msra.gmra.mrb[4].mxu0 %vm190_vm1, %v1878_v16 }
  0xe1   : > { %2965 = vmatmul.mubr.msk.bf16.vlgmr.msra.gmra.mrb[4].mxu1 %vm190_vm1, %v2347_v22 }
 0x145   : > { %v2804_v24 = vpop.f32.mrb[0].mxu0 }
 0x146   : > { %v863_v26 = vpop.f32.mrb[1].mxu0 }
 0x147   : > { %v2805_v27 = vpop.f32.mrb[2].mxu0 }
 0x148   : > { %v866_v28 = vpop.f32.mrb[3].mxu0 }
 0x14c   : > { %v2858_v32 = vpop.f32.mrb[0].mxu1 }
 0x14d   : > { %v1396_v33 = vmax.f32 %v2804_v24, %v2858_v32  ;;  %v1377_v35 = vpop.f32.mrb[1].mxu1 }
 0x14e   : > { %v1394_v36 = vmax.f32 %v863_v26, %v1377_v35  ;;  %v2859_v39 = vpop.f32.mrb[2].mxu1 }
 0x14f   : > { %v1380_v40 = vpop.f32.mrb[3].mxu1 }
 0x150   : > { %v1395_v41 = vmax.f32 %v866_v28, %v1380_v40 }
 0x1ad   : > { %v2912_v43 = vpop.f32.mrb[4].mxu0 }
 0x1ae   : > { %v1939_v44 = vmax.f32 %v1396_v33, %v2912_v43  ;;  %v1920_v45 = vpop.f32.mrb[5].mxu0 }
 0x1af   : > { %v1937_v48 = vmax.f32 %v1394_v36, %v1920_v45  ;;  %v2913_v49 = vpop.f32.mrb[6].mxu0 }
 0x1b0   : > { %v1923_v50 = vpop.f32.mrb[7].mxu0 }
 0x1b1   : > { %v1938_v46 = vmax.f32 %v1395_v41, %v1923_v50 }
 0x1b4   : > { %v2966_v53 = vpop.f32.mrb[4].mxu1 }
 0x1b5   : > { %v2408_v52 = vmax.f32 %v1939_v44, %v2966_v53  ;;  %v2389_v55 = vpop.f32.mrb[5].mxu1 }
 0x1b6   : > { %v2406_v56 = vmax.f32 %v1937_v48, %v2389_v55  ;;  %v2967_v58 = vpop.f32.mrb[6].mxu1 }
 0x1b7   : > { %v2418_v0 = vadd.f32 %v2634_v54, %v2408_v52  ;;  %v2392_v1 = vpop.f32.mrb[7].mxu1 }
 0x1b8   : > { %v2416_v2 = vadd.f32 %v2634_v54, %v2406_v56  ;;  %v2407_v4 = vmax.f32 %v1938_v46, %v2392_v1 }
 0x1b9   : > { %v2421_v5 = vmax.f32 %v2418_v0, 0.0 }
 0x1ba   : > { %v2419_v21 = vmax.f32 %v2416_v2, 0.0  ;;  %v2417_v25 = vadd.f32 %v2634_v54, %v2407_v4 }
 0x1bb   : > { %v2643_v29 = vpack.c.bf16 %v2421_v5, %v2421_v5 }
 0x1bc   : > { %v2641_v30 = vpack.c.bf16 %v2419_v21, %v2419_v21  ;;  %v2420_v31 = vmax.f32 %v2417_v25, 0.0 }
 0x1bd   : > { %2439 = vst.msk [vmem:[%s170_s16 + $0x8] sm:$0x3] %vm2438_vm5, %v2643_v29 }
 0x1be   : > { %2436 = vst.msk [vmem:[%s170_s16] sm:$0xf] %vm2435_vm6, %v2641_v30  ;;  %v2642_v34 = vpack.c.bf16 %v2420_v31, %v2420_v31 }
 0x1c0   : > { %2437 = vst.msk [vmem:[%s170_s16 + $0x4] sm:$0xf] %vm2435_vm6, %v2642_v34 }
 0x1c1 PF: > { %s13_s12 = sadd.s32 1, %s3171_s12  }
 0x1c2   : > { %p10_p4 = scmp.ge.s32.totalorder %s13_s12, 4  }
 0x1c4   :  { %12 = sbr.rel (!%p10_p4) target bundleno = 1 (0x1), region = 73 }

// kernel: vggfc_forward.4
= control target key start
LH: loop header
LB: loop body
LE: loop exit
PB: predicated region body
PF: predicated region fallthrough
CT: control target
= control target key end

     0   :  { %s6357_s12 = smov 0   ;;  %s7599_s0 = inlined_call_operand.vmem [shape: bf16[2,4,90,8], index: 0, kind: input, shape index: {}]   ;;  %s7600_s1 = inlined_call_operand.vmem [shape: bf16[9,8,8], index: 1, kind: input, shape index: {}]   ;;  %s7601_s2 = inlined_call_operand.vmem [shape: f32[1,8], index: 2, kind: input, shape index: {}]   ;;  %s7602_s3 = inlined_call_operand.vmem [shape: bf16[2,72,8], index: 3, kind: output, shape index: {}]  }
   0x1 LB: > { %s4233_s13 = sadd.s32 4294967295, %s6333_s12   ;;  %p4237_p0 = scmp.ge.s32.totalorder %s6333_s12, 1  ;;  %s6333_s12 = sphi %s6357_s12, %s13_s12  }
   0x2   : > { %p137_p1 = scmp.lt.s32.totalorder %s6333_s12, 3 }
   0x4   : > { %p138_p2 = pnand %p4237_p0, %p137_p1 }
   0x5   : > { %v4249_v0 = vld [vmem:[%s7600_s1 + $0x4] sm:$0xf] (!%p138_p2)  ;;  %vm233_vm0 = vcmask (!%p138_p2), 1043456   ;;  %p161_p3 = scmp.lt.s32.totalorder (!%p138_p2), %s4233_s13, 1  ;;  %v6335_v1 = vmov (!%p138_p2), 0.0   ;;  %vm6336_vm1 = vmmov (!%p138_p2), 0  }
   0x6   : > { %141 = sbr.rel (%p138_p2) target bundleno = 958 (0x3be), region = 32  ;;  %4819 = vmatprep.subr.bf16.mxu0 (!%p138_p2), %v6335_v1  ;;  %v6370_v2 = vsel (!%p138_p2), %vm233_vm0, %v4249_v0, 0  ;;  %4821 = vmatprep.mubr.msk.bf16.mxu0 (!%p138_p2), %vm6336_vm1, %v6335_v1  ;;  %v181_v3 = vld [vmem:[%s7600_s1] sm:$0xf] (!%p138_p2)  ;;  %vm217_vm2 = vcmask (!%p138_p2), 64512   ;;  %vm1397_vm4 = vcmask (!%p138_p2), 1046528  }
   0x7   : > { %4820 = vmatpush3.bf16.msra.mxu0 (!%p138_p2), %v6370_v2  ;;  %5017 = vmatprep.subr.bf16.mxu1 (!%p138_p2), %v6335_v1  ;;  %v6396_v5 = vsel (!%p138_p2), %vm233_vm0, %v181_v3, 0  ;;  %vm459_vm3 = vsmask.f32 (!%p138_p2), 7424  ;;  %v4270_v38 = vld [vmem:[%s7600_s1 + $0x8] sm:$0xf] (!%p138_p2)  ;;  %vm4168_vm5 = vcmask (!%p138_p2), 60416  }
   0x8   : > { %5018 = vmatpush3.bf16.msra.mxu1 (!%p138_p2), %v6370_v2  ;;  %4841 = vmatprep.subr.bf16.mxu0 (!%p138_p2), %v6335_v1  ;;  %v6462_v41 = vsel (!%p138_p2), %vm233_vm0, %v4270_v38, 0  ;;  %v4290_v49 = vld [vmem:[%s7600_s1 + $0xc] sm:$0xf] (!%p138_p2) }
   0x9   : > { %5019 = vmatprep.mubr.msk.bf16.mxu1 (!%p138_p2), %vm6336_vm1, %v6335_v1  ;;  %5039 = vmatprep.subr.bf16.mxu1 (!%p138_p2), %v6335_v1  ;;  %v6510_v50 = vsel (!%p138_p2), %vm233_vm0, %v4290_v49, 0 }
   0xd   : > { %s7604_s13 = smov (!%p161_p3, %s4233_s13), 1 }
   0xe   : > { %s6251_s16 = smul.u32 192, %s7604_s13 }
   0xf   : > { %s6252_s11 = smul.u32 36, %s7604_s13 }
  0x10   : > { %s6390_s21 = scalar_lea.vmem %s7599_s0, %s6251_s16 }
  0x11   : > { %v6393_v4 = vld [vmem:[%s6390_s21 + $0x30] sm:$0xff]   ;;  %v6264_v6 = vld [vmem:[%s6390_s21] sm:$0xff]   ;;  %v6265_v7 = vld [vmem:[%s6390_s21 + $0x8] sm:$0xff]   ;;  %s7554_s16 = scalar_lea.vmem %s7602_s3, %s6252_s11 }
  0x12   : > { %4822 = vmatmul.mubr.msk.bf16.vlgmr.msra.gmra.mrb[0].mxu0 %vm217_vm2, %v6393_v4  ;;  %v461_v8 = vshrl.u32 %v6264_v6, 16  ;;  %v463_v9 = vshll.u32 %v6264_v6, 16  ;;  %v468_v10 = vshll.u32 %v6265_v7, 16  ;;  %v6267_v11 = vld [vmem:[%s6390_s21 + $0x10] sm:$0xff]   ;;  %v6266_v14 = vld [vmem:[%s6390_s21 + $0x38] sm:$0xff]   ;;  %v472_v17 = vshrl.u32 %v6265_v7, 16 }
  0x13   : > { %4842 = vmatpush3.bf16.msra.mxu0 %v6396_v5  ;;  %4825 = vmatprep.mubr.msk.bf16.mxu0 %vm6336_vm1, %v6335_v1  ;;  %v476_v15 = vshll.u32 %v6267_v11, 16  ;;  %v6269_v20 = vld [vmem:[%s6390_s21 + $0x18] sm:$0xff]   ;;  %v6268_v22 = vld [vmem:[%s6390_s21 + $0x40] sm:$0xff]   ;;  %v480_v23 = vshrl.u32 %v6267_v11, 16  ;;  %v6270_v29 = vld [vmem:[%s6390_s21 + $0x48] sm:$0xff]  }
  0x14   : > { %4863 = vmatprep.subr.bf16.mxu0 %v6335_v1  ;;  %v465_v12 = vrot.slane %v463_v9, 1  ;;  %v470_v13 = vrot.slane %v468_v10, 1  ;;  %v484_v24 = vshll.u32 %v6269_v20, 16  ;;  %v6271_v28 = vld [vmem:[%s6390_s21 + $0x20] sm:$0x1f]   ;;  %v488_v31 = vshrl.u32 %v6269_v20, 16 }
  0x15   : > { %v478_v19 = vrot.slane %v476_v15, 1  ;;  %v492_v32 = vshll.u32 %v6271_v28, 16  ;;  %v6272_v35 = vld [vmem:[%s6390_s21 + $0x50] ss:$0 sps:$4 sm:$0xff]   ;;  %v496_v37 = vshrl.u32 %v6271_v28, 16  ;;  %v6273_v39 = vld [vmem:[%s6390_s21] sm:$0xff]  }
  0x16   : > { %v466_v16 = vor.u32 %v465_v12, %v461_v8  ;;  %v474_v21 = vor.u32 %v472_v17, %v470_v13  ;;  %v486_v27 = vrot.slane %v484_v24, 1  ;;  %v6274_v42 = vld [vmem:[%s6390_s21 + $0x8] sm:$0xff]   ;;  %v6275_v43 = vld [vmem:[%s6390_s21 + $0x10] sm:$0xff]   ;;  %v6276_v44 = vld [vmem:[%s6390_s21 + $0x18] sm:$0xff]  }
  0x17   : > { %v482_v26 = vor.u32 %v480_v23, %v478_v19  ;;  %v494_v34 = vrot.slane %v492_v32, 1  ;;  %v6277_v45 = vld [vmem:[%s6390_s21 + $0x20] ss:$0 sps:$4 sm:$0xff]   ;;  %v6278_v46 = vld [vmem:[%s6390_s21 + $0x30] sm:$0xff]   ;;  %v6279_v47 = vld [vmem:[%s6390_s21 + $0x38] sm:$0xff]  }
  0x18   : > { %v6409_v18 = vsel %vm459_vm3, %v466_v16, %v470_v13  ;;  %v6423_v25 = vsel %vm459_vm3, %v474_v21, %v478_v19  ;;  %v490_v33 = vor.u32 %v488_v31, %v486_v27  ;;  %v1688_v48 = vshll.u32 %v6278_v46, 16  ;;  %v6280_v56 = vld [vmem:[%s6390_s21 + $0x40] sm:$0xff]   ;;  %v6281_v62 = vld [vmem:[%s6390_s21 + $0x48] sm:$0xff]   ;;  %v6282_v7 = vld [vmem:[%s6390_s21 + $0x50] sm:$0x1f]  }
  0x19   : > { %5020 = vmatmul.mubr.msk.bf16.vlgmr.msra.gmra.mrb[0].mxu1 %vm217_vm2, %v6409_v18  ;;  %v6435_v30 = vsel %vm459_vm3, %v482_v26, %v486_v27  ;;  %v6459_v40 = vor.u32 %v496_v37, %v494_v34  ;;  %v1686_v51 = vshrl.u32 %v6278_v46, 16  ;;  %v1693_v53 = vshll.u32 %v6279_v47, 16  ;;  %v4310_v15 = vld [vmem:[%s7600_s1 + $0x10] sm:$0xf]  ;;  %v6562_v16 = vld [vmem:[%s6390_s21 + $0x60] sm:$0xff]   ;;  %v6577_v19 = vld [vmem:[%s6390_s21 + $0x68] sm:$0xff]  }
  0x1a   : > { %4826 = vmatmul.mubr.msk.bf16.gmra.mrb[4].mxu0 %vm217_vm2, %v6266_v14  ;;  %5040 = vmatpush3.bf16.msra.mxu1 %v6396_v5  ;;  %v6446_v36 = vsel %vm459_vm3, %v490_v33, %v494_v34  ;;  %v1690_v52 = vrot.slane %v1688_v48, 1  ;;  %v1697_v58 = vshrl.u32 %v6279_v47, 16  ;;  %v1701_v59 = vshll.u32 %v6280_v56, 16  ;;  %v6580_v20 = vld [vmem:[%s6390_s21 + $0x90] sm:$0xff]   ;;  %v6607_v23 = vld [vmem:[%s6390_s21 + $0x78] sm:$0xff]   ;;  %v6610_v24 = vld [vmem:[%s6390_s21 + $0xa0] sm:$0xff]  }
  0x1b   : > { %4829 = vmatprep.mubr.msk.bf16.mxu0 %vm6336_vm1, %v6335_v1  ;;  %5023 = vmatprep.mubr.msk.bf16.mxu1 %vm6336_vm1, %v6335_v1  ;;  %v1695_v55 = vrot.slane %v1693_v53, 1  ;;  %v1705_v0 = vshrl.u32 %v6280_v56, 16  ;;  %v1709_v3 = vshll.u32 %v6281_v62, 16  ;;  %v1713_v9 = vshrl.u32 %v6281_v62, 16  ;;  %v6593_v21 = vld [vmem:[%s6390_s21 + $0x70] sm:$0xff]   ;;  %v6624_v26 = vld [vmem:[%s6390_s21 + $0xa8] sm:$0xff]  }
  0x1c   : > { %5061 = vmatprep.subr.bf16.mxu1 %v6335_v1  ;;  %v1691_v54 = vor.u32 %v1690_v52, %v1686_v51  ;;  %v1703_v61 = vrot.slane %v1701_v59, 1  ;;  %v1717_v10 = vshll.u32 %v6282_v7, 16  ;;  %v6293_v27 = vld [vmem:[%s6390_s21 + $0x60] sm:$0xff]   ;;  %v6294_v28 = vld [vmem:[%s6390_s21 + $0x68] sm:$0xff]   ;;  %v6640_v31 = vld [vmem:[%s6390_s21 + $0xb0] ss:$0 sps:$4 sm:$0xff]  }
  0x1d   : > { %v1699_v60 = vor.u32 %v1697_v58, %v1695_v55  ;;  %v1711_v6 = vrot.slane %v1709_v3, 1  ;;  %v904_v33 = vshrl.u32 %v6293_v27, 16  ;;  %v6295_v38 = vld [vmem:[%s6390_s21 + $0x70] sm:$0xff]   ;;  %v6297_v52 = vld [vmem:[%s6390_s21 + $0x80] sm:$0x1f]  }
  0x1e   : > { %v1696_v57 = vsel %vm459_vm3, %v1691_v54, %v1695_v55  ;;  %v1719_v12 = vrot.slane %v1717_v10, 1  ;;  %v923_v47 = vshrl.u32 %v6295_v38, 16  ;;  %v935_v55 = vshll.u32 %v6297_v52, 16  ;;  %v6298_v59 = vld [vmem:[%s6390_s21 + $0x90] sm:$0xff]   ;;  %v6300_v10 = vld [vmem:[%s6390_s21 + $0xa0] sm:$0xff]  }
  0x1f   : > { %v1704_v63 = vsel %vm459_vm3, %v1699_v60, %v1703_v61  ;;  %v1715_v11 = vor.u32 %v1713_v9, %v1711_v6  ;;  %v939_v60 = vshrl.u32 %v6297_v52, 16  ;;  %v2020_v62 = vshll.u32 %v6298_v59, 16 }
  0x21   : > { %5024 = vmatmul.mubr.msk.bf16.gmra.mrb[4].mxu1 %vm217_vm2, %v6423_v25  ;;  %v1720_v13 = vsel %vm459_vm3, %v1715_v11, %v1719_v12 }
  0x22   : > { %4830 = vmatmul.mubr.msk.bf16.gmra.mrb[8].mxu0 %vm217_vm2, %v6268_v22  ;;  %5027 = vmatprep.mubr.msk.bf16.mxu1 %vm6336_vm1, %v6335_v1 }
  0x23   : > { %4833 = vmatprep.mubr.msk.bf16.mxu0 %vm6336_vm1, %v6335_v1 }
  0x29   : > { %5028 = vmatmul.mubr.msk.bf16.gmra.mrb[8].mxu1 %vm217_vm2, %v6435_v30 }
  0x2a   : > { %4834 = vmatmul.mubr.msk.bf16.gmra.mrb[12].mxu0 %vm217_vm2, %v6270_v29  ;;  %5031 = vmatprep.mubr.msk.bf16.mxu1 %vm6336_vm1, %v6335_v1 }
  0x2b   : > { %4837 = vmatprep.mubr.msk.bf16.mxu0 %vm6336_vm1, %v6335_v1 }
  0x31   : > { %5032 = vmatmul.mubr.msk.bf16.gmra.mrb[12].mxu1 %vm217_vm2, %v6446_v36 }
  0x32   : > { %4838 = vmatmul.mubr.msk.bf16.gmra.mrb[16].mxu0 %vm217_vm2, %v6272_v35  ;;  %5035 = vmatprep.mubr.msk.bf16.mxu1 %vm6336_vm1, %v6335_v1 }
  0x33   : > { %4843 = vmatprep.mubr.msk.bf16.mxu0 %vm6336_vm1, %v6335_v1 }
  0x39   : > { %5036 = vmatmul.mubr.msk.bf16.gmra.mrb[16].mxu1 %vm217_vm2, %v6459_v40 }
  0x3a   : > { %4844 = vmatmul.mubr.msk.bf16.vlgmr.msra.gmra.mrb[0].mxu0 %vm217_vm2, %v6273_v39  ;;  %5041 = vmatprep.mubr.msk.bf16.mxu1 %vm6336_vm1, %v6335_v1 }
  0x3b   : > { %4864 = vmatpush3.bf16.msra.mxu0 %v6462_v41  ;;  %4847 = vmatprep.mubr.msk.bf16.mxu0 %vm6336_vm1, %v6335_v1 }
  0x3c   : > { %4885 = vmatprep.subr.bf16.mxu0 %v6335_v1 }
  0x41   : > { %5042 = vmatmul.mubr.msk.bf16.vlgmr.msra.gmra.mrb[0].mxu1 %vm217_vm2, %v6393_v4  ;;  %v1707_v4 = vor.u32 %v1705_v0, %v1703_v61  ;;  %v6299_v61 = vld [vmem:[%s6390_s21 + $0x98] sm:$0xff]  }
  0x42   : > { %4848 = vmatmul.mubr.msk.bf16.gmra.mrb[4].mxu0 %vm217_vm2, %v6274_v42  ;;  %5062 = vmatpush3.bf16.msra.mxu1 %v6462_v41  ;;  %v919_v42 = vshll.u32 %v6295_v38, 16 }
  0x43   : > { %4851 = vmatprep.mubr.msk.bf16.mxu0 %vm6336_vm1, %v6335_v1  ;;  %5045 = vmatprep.mubr.msk.bf16.mxu1 %vm6336_vm1, %v6335_v1  ;;  %v1712_v8 = vsel %vm459_vm3, %v1707_v4, %v1711_v6  ;;  %v2018_v4 = vshrl.u32 %v6298_v59, 16  ;;  %v2022_v6 = vrot.slane %v2020_v62, 1  ;;  %v6791_v62 = vld [vmem:[%s6390_s21 + $0x3c] sm:$0xff]  }
  0x44   : > { %5083 = vmatprep.subr.bf16.mxu1 %v6335_v1 }
  0x49   : > { %5046 = vmatmul.mubr.msk.bf16.gmra.mrb[4].mxu1 %vm217_vm2, %v6266_v14  ;;  %v1721_v14 = vshrl.u32 %v6282_v7, 16  ;;  %v2025_v7 = vshll.u32 %v6299_v61, 16 }
  0x4a   : > { %4852 = vmatmul.mubr.msk.bf16.gmra.mrb[8].mxu0 %vm217_vm2, %v6275_v43  ;;  %5049 = vmatprep.mubr.msk.bf16.mxu1 %vm6336_vm1, %v6335_v1 }
  0x4b   : > { %4855 = vmatprep.mubr.msk.bf16.mxu0 %vm6336_vm1, %v6335_v1  ;;  %v1723_v17 = vor.u32 %v1721_v14, %v1719_v12  ;;  %v2027_v9 = vrot.slane %v2025_v7, 1  ;;  %v2029_v12 = vshrl.u32 %v6299_v61, 16  ;;  %v6301_v14 = vld [vmem:[%s6390_s21 + $0xa8] sm:$0xff]   ;;  %v6786_v61 = vld [vmem:[%s6390_s21 + $0x14] sm:$0xff]  }
  0x51   : > { %5050 = vmatmul.mubr.msk.bf16.gmra.mrb[8].mxu1 %vm217_vm2, %v6268_v22  ;;  %v6596_v22 = vld [vmem:[%s6390_s21 + $0x98] sm:$0xff]  }
  0x52   : > { %4856 = vmatmul.mubr.msk.bf16.gmra.mrb[12].mxu0 %vm217_vm2, %v6276_v44  ;;  %5053 = vmatprep.mubr.msk.bf16.mxu1 %vm6336_vm1, %v6335_v1  ;;  %v921_v44 = vrot.slane %v919_v42, 1 }
  0x53   : > { %4859 = vmatprep.mubr.msk.bf16.mxu0 %vm6336_vm1, %v6335_v1 }
  0x54   : > { %v925_v49 = vor.u32 %v923_v47, %v921_v44 }
  0x59   : > { %5054 = vmatmul.mubr.msk.bf16.gmra.mrb[12].mxu1 %vm217_vm2, %v6270_v29  ;;  %v906_v29 = vshll.u32 %v6293_v27, 16  ;;  %v2041_v27 = vshll.u32 %v6301_v14, 16 }
  0x5a   : > { %4860 = vmatmul.mubr.msk.bf16.gmra.mrb[16].mxu0 %vm217_vm2, %v6277_v45  ;;  %5057 = vmatprep.mubr.msk.bf16.mxu1 %vm6336_vm1, %v6335_v1  ;;  %v6296_v45 = vld [vmem:[%s6390_s21 + $0x78] sm:$0xff]  }
  0x5b   : > { %4865 = vmatprep.mubr.msk.bf16.mxu0 %vm6336_vm1, %v6335_v1  ;;  %v908_v34 = vrot.slane %v906_v29, 1  ;;  %v927_v48 = vshll.u32 %v6296_v45, 16  ;;  %v931_v54 = vshrl.u32 %v6296_v45, 16  ;;  %v2037_v29 = vshrl.u32 %v6300_v10, 16 }
  0x5d   : > { %v929_v51 = vrot.slane %v927_v48, 1  ;;  %v4353_v48 = vld [vmem:[%s6390_s21 + $0x34] sm:$0xf] }
  0x5f   : > { %v6683_v53 = vsel %vm459_vm3, %v925_v49, %v929_v51  ;;  %v933_v56 = vor.u32 %v931_v54, %v929_v51  ;;  %v6772_v49 = vld [vmem:[%s6390_s21 + $0x38] sm:$0xf] }
  0x61   : > { %5058 = vmatmul.mubr.msk.bf16.gmra.mrb[16].mxu1 %vm217_vm2, %v6272_v35  ;;  %v911_v35 = vshll.u32 %v6294_v28, 16 }
  0x62   : > { %4866 = vmatmul.mubr.msk.bf16.vlgmr.msra.gmra.mrb[0].mxu0 %vm217_vm2, %v6409_v18  ;;  %5063 = vmatprep.mubr.msk.bf16.mxu1 %vm6336_vm1, %v6335_v1  ;;  %v6565_v18 = vsel %vm233_vm0, %v4310_v15, 0  ;;  %v2031_v15 = vor.u32 %v2029_v12, %v2027_v9 }
  0x63   : > { %4886 = vmatpush3.bf16.msra.mxu0 %v6510_v50  ;;  %4869 = vmatprep.mubr.msk.bf16.mxu0 %vm6336_vm1, %v6335_v1  ;;  %v913_v37 = vrot.slane %v911_v35, 1  ;;  %v1041_v35 = vld [vmem:[%s6390_s21 + $0x4] sm:$0xf] }
  0x64   : > { %4907 = vmatprep.subr.bf16.mxu0 %v6335_v1 }
  0x69   : > { %5064 = vmatmul.mubr.msk.bf16.vlgmr.msra.gmra.mrb[0].mxu1 %vm217_vm2, %v1696_v57  ;;  %v937_v57 = vrot.slane %v935_v55, 1 }
  0x6a   : > { %4870 = vmatmul.mubr.msk.bf16.gmra.mrb[4].mxu0 %vm217_vm2, %v6423_v25  ;;  %5084 = vmatpush3.bf16.msra.mxu1 %v6510_v50  ;;  %v6621_v25 = vld [vmem:[%s6390_s21 + $0x80] ss:$0 sps:$4 sm:$0xff]  }
  0x6b   : > { %4873 = vmatprep.mubr.msk.bf16.mxu0 %vm6336_vm1, %v6335_v1  ;;  %5067 = vmatprep.mubr.msk.bf16.mxu1 %vm6336_vm1, %v6335_v1  ;;  %v6694_v58 = vsel %vm459_vm3, %v933_v56, %v937_v57  ;;  %v6709_v0 = vor.u32 %v939_v60, %v937_v57  ;;  %v4364_v56 = vcombine.low %v4353_v48, %v6772_v49  ;;  %v6840_v48 = vld [vmem:[%s6390_s21 + $0x24] sm:$0x1f]  }
  0x6c   : > { %5105 = vmatprep.subr.bf16.mxu1 %v6335_v1 }
  0x6d   : > { %v1254_v12 = vshrl.u32 %v4364_v56, 16 }
  0x71   : > { %5068 = vmatmul.mubr.msk.bf16.gmra.mrb[4].mxu1 %vm217_vm2, %v1704_v63  ;;  %v4342_v63 = vld [vmem:[%s7600_s1 + $0x18] sm:$0xf] }
  0x72   : > { %4874 = vmatmul.mubr.msk.bf16.gmra.mrb[8].mxu0 %vm217_vm2, %v6435_v30  ;;  %5071 = vmatprep.mubr.msk.bf16.mxu1 %vm6336_vm1, %v6335_v1  ;;  %v4331_v30 = vld [vmem:[%s7600_s1 + $0x14] sm:$0xf]  ;;  %v6712_v3 = vsel %vm233_vm0, %v4342_v63, 0  ;;  %v1256_v63 = vshll.u32 %v4364_v56, 16 }
  0x73   : > { %4877 = vmatprep.mubr.msk.bf16.mxu0 %vm6336_vm1, %v6335_v1  ;;  %v6643_v32 = vsel %vm233_vm0, %v4331_v30, 0  ;;  %v2043_v30 = vrot.slane %v2041_v27, 1  ;;  %v6813_v27 = vld [vmem:[%s6390_s21 + $0x1c] sm:$0xff]  }
  0x79   : > { %5072 = vmatmul.mubr.msk.bf16.gmra.mrb[8].mxu1 %vm217_vm2, %v1712_v8  ;;  %v2023_v8 = vor.u32 %v2022_v6, %v2018_v4  ;;  %v4363_v4 = vld [vmem:[%s7600_s1 + $0x1c] sm:$0xf] }
  0x7a   : > { %4878 = vmatmul.mubr.msk.bf16.gmra.mrb[12].mxu0 %vm217_vm2, %v6446_v36  ;;  %5075 = vmatprep.mubr.msk.bf16.mxu1 %vm6336_vm1, %v6335_v1  ;;  %v909_v36 = vor.u32 %v908_v34, %v904_v33  ;;  %v6302_v34 = vld [vmem:[%s6390_s21 + $0xb0] sm:$0x1f]  }
  0x7b   : > { %4881 = vmatprep.mubr.msk.bf16.mxu0 %vm6336_vm1, %v6335_v1  ;;  %v6726_v11 = vsel %vm459_vm3, %v2023_v8, %v2027_v9  ;;  %v2049_v42 = vshll.u32 %v6302_v34, 16  ;;  %v2053_v57 = vshrl.u32 %v6302_v34, 16  ;;  %v1094_v9 = vshll.u32 %v6786_v61, 16 }
  0x7c   : > { %v6657_v39 = vsel %vm459_vm3, %v909_v36, %v913_v37  ;;  %v6753_v36 = vld [vmem:[%s6390_s21 + $0x8] sm:$0xf] }
  0x7d   : > { %v2051_v47 = vrot.slane %v2049_v42, 1  ;;  %v1265_v42 = vshrl.u32 %v6791_v62, 16 }
  0x7f   : > { %v6796_v6 = vor.u32 %v2053_v57, %v2051_v47  ;;  %v1106_v57 = vshrl.u32 %v6813_v27, 16 }
  0x81   : > { %5076 = vmatmul.mubr.msk.bf16.gmra.mrb[12].mxu1 %vm217_vm2, %v1720_v13  ;;  %v2033_v13 = vshll.u32 %v6300_v10, 16  ;;  %v6804_v10 = vsel %vm233_vm0, %v4363_v4, 0 }
  0x82   : > { %4882 = vmatmul.mubr.msk.bf16.gmra.mrb[16].mxu0 %vm217_vm2, %v6459_v40  ;;  %5079 = vmatprep.mubr.msk.bf16.mxu1 %vm6336_vm1, %v6335_v1  ;;  %v915_v40 = vshrl.u32 %v6294_v28, 16 }
  0x83   : > { %4887 = vmatprep.mubr.msk.bf16.mxu0 %vm6336_vm1, %v6335_v1 }
  0x84   : > { %v917_v43 = vor.u32 %v915_v40, %v913_v37  ;;  %v4343_v37 = vcombine.low %v1041_v35, %v6753_v36  ;;  %v2045_v40 = vshrl.u32 %v6301_v14, 16  ;;  %v1261_v14 = vshll.u32 %v6791_v62, 16 }
  0x85   : > { %v1098_v35 = vshrl.u32 %v6786_v61, 16 }
  0x86   : > { %v6671_v46 = vsel %vm459_vm3, %v917_v43, %v921_v44  ;;  %v6766_v43 = vld [vmem:[%s6390_s21 + $0xc] sm:$0xff]   ;;  %v1081_v44 = vshll.u32 %v4343_v37, 16  ;;  %v2047_v45 = vor.u32 %v2045_v40, %v2043_v30  ;;  %v1079_v51 = vshrl.u32 %v4343_v37, 16 }
  0x87   : > { %v1086_v54 = vshll.u32 %v6766_v43, 16  ;;  %v1090_v8 = vshrl.u32 %v6766_v43, 16  ;;  %v1102_v37 = vshll.u32 %v6813_v27, 16 }
  0x88   : > { %v1083_v52 = vrot.slane %v1081_v44, 1  ;;  %v6776_v55 = vsel %vm459_vm3, %v2047_v45, %v2051_v47 }
  0x89   : > { %5080 = vmatmul.mubr.msk.bf16.gmra.mrb[16].mxu1 %vm217_vm2, %v1723_v17  ;;  %v2035_v17 = vrot.slane %v2033_v13, 1  ;;  %v1088_v60 = vrot.slane %v1086_v54, 1  ;;  %v1258_v13 = vrot.slane %v1256_v63, 1  ;;  %v1104_v47 = vrot.slane %v1102_v37, 1  ;;  %v6846_v54 = vld [vmem:[%s6390_s21 + $0x4c] sm:$0xff]  }
  0x8a   : > { %4888 = vmatmul.mubr.msk.bf16.vlgmr.msra.gmra.mrb[0].mxu0 %vm217_vm2, %v6562_v16  ;;  %5085 = vmatprep.mubr.msk.bf16.mxu1 %vm6336_vm1, %v6335_v1  ;;  %v1084_v59 = vor.u32 %v1083_v52, %v1079_v51  ;;  %v1277_v4 = vshll.u32 %v6846_v54, 16 }
  0x8b   : > { %4908 = vmatpush3.bf16.msra.mxu0 %v6565_v18  ;;  %4891 = vmatprep.mubr.msk.bf16.mxu0 %vm6336_vm1, %v6335_v1  ;;  %v6740_v28 = vsel %vm459_vm3, %v2031_v15, %v2035_v17  ;;  %v2039_v33 = vor.u32 %v2037_v29, %v2035_v17  ;;  %v1092_v15 = vor.u32 %v1090_v8, %v1088_v60  ;;  %v1096_v17 = vrot.slane %v1094_v9, 1 }
  0x8c   : > { %4929 = vmatprep.subr.bf16.mxu0 %v6335_v1  ;;  %v6799_v7 = vsel %vm459_vm3, %v1084_v59, %v1088_v60  ;;  %v1259_v29 = vor.u32 %v1258_v13, %v1254_v12  ;;  %v1110_v59 = vshll.u32 %v6840_v48, 16  ;;  %v1108_v8 = vor.u32 %v1106_v57, %v1104_v47 }
  0x8d   : > { %v6757_v38 = vsel %vm459_vm3, %v2039_v33, %v2043_v30  ;;  %v1263_v30 = vrot.slane %v1261_v14, 1  ;;  %v6820_v33 = vld [vmem:[%s6390_s21 + $0x44] sm:$0xff]   ;;  %v6824_v34 = vsel %vm459_vm3, %v1092_v15, %v1096_v17  ;;  %v1100_v45 = vor.u32 %v1098_v35, %v1096_v17  ;;  %v6868_v14 = vld [vmem:[%s6390_s21 + $0x54] sm:$0x1f]  }
  0x8e   : > { %v1269_v44 = vshll.u32 %v6820_v33, 16  ;;  %v1273_v63 = vshrl.u32 %v6820_v33, 16  ;;  %v1112_v9 = vrot.slane %v1110_v59, 1  ;;  %v1279_v13 = vrot.slane %v1277_v4, 1 }
  0x8f   : > { %v6829_v40 = vsel %vm459_vm3, %v1259_v29, %v1263_v30  ;;  %v1267_v51 = vor.u32 %v1265_v42, %v1263_v30  ;;  %v6850_v56 = vsel %vm459_vm3, %v1100_v45, %v1104_v47  ;;  %v1281_v29 = vshrl.u32 %v6846_v54, 16 }
  0x90   : > { %v1271_v52 = vrot.slane %v1269_v44, 1  ;;  %v6871_v15 = vsel %vm459_vm3, %v1108_v8, %v1112_v9  ;;  %v1285_v30 = vshll.u32 %v6868_v14, 16  ;;  %v1114_v35 = vshrl.u32 %v6840_v48, 16 }
  0x91   : > { %5086 = vmatmul.mubr.msk.bf16.vlgmr.msra.gmra.mrb[0].mxu1 %vm217_vm2, %v6580_v20  ;;  %v1283_v37 = vor.u32 %v1281_v29, %v1279_v13  ;;  %v1289_v47 = vshrl.u32 %v6868_v14, 16  ;;  %v1399_v8 = vrot.slane %v6766_v43, 1  ;;  %v1401_v43 = vrot.slane %v6786_v61, 1  ;;  %v4451_v29 = vld [vmem:[%s6390_s21 + $0x34] sm:$0xe] }
  0x92   : > { %4892 = vmatmul.mubr.msk.bf16.gmra.mrb[4].mxu0 %vm217_vm2, %v6577_v19  ;;  %5106 = vmatpush3.bf16.msra.mxu1 %v6565_v18  ;;  %v6855_v60 = vsel %vm459_vm3, %v1267_v51, %v1271_v52  ;;  %v1275_v12 = vor.u32 %v1273_v63, %v1271_v52  ;;  %v1287_v42 = vrot.slane %v1285_v30, 1  ;;  %v6887_v44 = vor.u32 %v1114_v35, %v1112_v9  ;;  %v4374_v51 = vld [vmem:[%s7600_s1 + $0x20] sm:$0xf]  ;;  %v1391_v52 = vld [vmem:[%s6390_s21 + $0x4] sm:$0xe] }
  0x93   : > { %4895 = vmatprep.mubr.msk.bf16.mxu0 %vm6336_vm1, %v6335_v1  ;;  %5089 = vmatprep.mubr.msk.bf16.mxu1 %vm6336_vm1, %v6335_v1  ;;  %v6908_v59 = vsel %vm233_vm0, %v4374_v51, 0  ;;  %v4375_v63 = vcombine.low %v1391_v52, %v6753_v36  ;;  %v6937_v9 = vsel %vm1397_vm4, %v1399_v8, %v1401_v43  ;;  %v1403_v61 = vrot.slane %v6813_v27, 1 }
  0x94   : > { %5127 = vmatprep.subr.bf16.mxu1 %v6335_v1  ;;  %v6874_v17 = vsel %vm459_vm3, %v1275_v12, %v1279_v13  ;;  %v6890_v45 = vsel %vm459_vm3, %v1283_v37, %v1287_v42  ;;  %v6905_v57 = vor.u32 %v1289_v47, %v1287_v42  ;;  %v6960_v13 = vrot.slane %v6840_v48, 1 }
  0x95   : > { %v1398_v4 = vrot.slane %v4375_v63, 1  ;;  %v6949_v12 = vsel %vm1397_vm4, %v1401_v43, %v1403_v61  ;;  %v4452_v48 = vcombine.low %v4451_v29, %v6772_v49  ;;  %v2319_v35 = vrot.slane %v6791_v62, 1 }
  0x96   : > { %v6964_v27 = vsel %vm1397_vm4, %v1403_v61, %v6960_v13  ;;  %v2321_v62 = vrot.slane %v6820_v33, 1  ;;  %v7025_v42 = vrot.slane %v6868_v14, 1 }
  0x97   : > { %v6923_v36 = vsel %vm1397_vm4, %v1398_v4, %v1399_v8  ;;  %v2318_v30 = vrot.slane %v4452_v48, 1 }
  0x98   : > { %v7002_v37 = vsel %vm1397_vm4, %v2319_v35, %v2321_v62 }
  0x99   : > { %5090 = vmatmul.mubr.msk.bf16.gmra.mrb[4].mxu1 %vm217_vm2, %v6596_v22  ;;  %v6988_v49 = vsel %vm1397_vm4, %v2318_v30, %v2319_v35  ;;  %v7343_v35 = vld [vmem:[%s6390_s21 + $0x68] sm:$0xf] }
  0x9a   : > { %4896 = vmatmul.mubr.msk.bf16.gmra.mrb[8].mxu0 %vm217_vm2, %v6593_v21  ;;  %5093 = vmatprep.mubr.msk.bf16.mxu1 %vm6336_vm1, %v6335_v1 }
  0x9b   : > { %4899 = vmatprep.mubr.msk.bf16.mxu0 %vm6336_vm1, %v6335_v1 }
  0xa1   : > { %5094 = vmatmul.mubr.msk.bf16.gmra.mrb[8].mxu1 %vm217_vm2, %v6610_v24 }
  0xa2   : > { %4900 = vmatmul.mubr.msk.bf16.gmra.mrb[12].mxu0 %vm217_vm2, %v6607_v23  ;;  %5097 = vmatprep.mubr.msk.bf16.mxu1 %vm6336_vm1, %v6335_v1 }
  0xa3   : > { %4903 = vmatprep.mubr.msk.bf16.mxu0 %vm6336_vm1, %v6335_v1 }
  0xa9   : > { %5098 = vmatmul.mubr.msk.bf16.gmra.mrb[12].mxu1 %vm217_vm2, %v6624_v26 }
  0xaa   : > { %4904 = vmatmul.mubr.msk.bf16.gmra.mrb[16].mxu0 %vm217_vm2, %v6621_v25  ;;  %5101 = vmatprep.mubr.msk.bf16.mxu1 %vm6336_vm1, %v6335_v1 }
  0xab   : > { %4909 = vmatprep.mubr.msk.bf16.mxu0 %vm6336_vm1, %v6335_v1 }
  0xb1   : > { %5102 = vmatmul.mubr.msk.bf16.gmra.mrb[16].mxu1 %vm217_vm2, %v6640_v31 }
  0xb2   : > { %4910 = vmatmul.mubr.msk.bf16.vlgmr.msra.gmra.mrb[0].mxu0 %vm217_vm2, %v6580_v20  ;;  %5107 = vmatprep.mubr.msk.bf16.mxu1 %vm6336_vm1, %v6335_v1 }
  0xb3   : > { %4930 = vmatpush3.bf16.msra.mxu0 %v6643_v32  ;;  %4913 = vmatprep.mubr.msk.bf16.mxu0 %vm6336_vm1, %v6335_v1 }
  0xb4   : > { %4951 = vmatprep.subr.bf16.mxu0 %v6335_v1 }
  0xb9   : > { %5108 = vmatmul.mubr.msk.bf16.vlgmr.msra.gmra.mrb[0].mxu1 %vm217_vm2, %v6657_v39 }
  0xba   : > { %4914 = vmatmul.mubr.msk.bf16.gmra.mrb[4].mxu0 %vm217_vm2, %v6596_v22  ;;  %5128 = vmatpush3.bf16.msra.mxu1 %v6643_v32 }
  0xbb   : > { %4917 = vmatprep.mubr.msk.bf16.mxu0 %vm6336_vm1, %v6335_v1  ;;  %5111 = vmatprep.mubr.msk.bf16.mxu1 %vm6336_vm1, %v6335_v1 }
  0xbc   : > { %5149 = vmatprep.subr.bf16.mxu1 %v6335_v1 }
  0xc1   : > { %5112 = vmatmul.mubr.msk.bf16.gmra.mrb[4].mxu1 %vm217_vm2, %v6671_v46 }
  0xc2   : > { %4918 = vmatmul.mubr.msk.bf16.gmra.mrb[8].mxu0 %vm217_vm2, %v6610_v24  ;;  %5115 = vmatprep.mubr.msk.bf16.mxu1 %vm6336_vm1, %v6335_v1 }
  0xc3   : > { %4921 = vmatprep.mubr.msk.bf16.mxu0 %vm6336_vm1, %v6335_v1 }
  0xc9   : > { %5116 = vmatmul.mubr.msk.bf16.gmra.mrb[8].mxu1 %vm217_vm2, %v6683_v53 }
  0xca   : > { %4922 = vmatmul.mubr.msk.bf16.gmra.mrb[12].mxu0 %vm217_vm2, %v6624_v26  ;;  %5119 = vmatprep.mubr.msk.bf16.mxu1 %vm6336_vm1, %v6335_v1 }
  0xcb   : > { %4925 = vmatprep.mubr.msk.bf16.mxu0 %vm6336_vm1, %v6335_v1 }
  0xd1   : > { %5120 = vmatmul.mubr.msk.bf16.gmra.mrb[12].mxu1 %vm217_vm2, %v6694_v58 }
  0xd2   : > { %4926 = vmatmul.mubr.msk.bf16.gmra.mrb[16].mxu0 %vm217_vm2, %v6640_v31  ;;  %5123 = vmatprep.mubr.msk.bf16.mxu1 %vm6336_vm1, %v6335_v1 }
  0xd3   : > { %4931 = vmatprep.mubr.msk.bf16.mxu0 %vm6336_vm1, %v6335_v1 }
  0xd9   : > { %5124 = vmatmul.mubr.msk.bf16.gmra.mrb[16].mxu1 %vm217_vm2, %v6709_v0 }
  0xda   : > { %4932 = vmatmul.mubr.msk.bf16.vlgmr.msra.gmra.mrb[0].mxu0 %vm217_vm2, %v6657_v39  ;;  %5129 = vmatprep.mubr.msk.bf16.mxu1 %vm6336_vm1, %v6335_v1 }
  0xdb   : > { %4952 = vmatpush3.bf16.msra.mxu0 %v6712_v3  ;;  %4935 = vmatprep.mubr.msk.bf16.mxu0 %vm6336_vm1, %v6335_v1 }
  0xdc   : > { %4973 = vmatprep.subr.bf16.mxu0 %v6335_v1 }
  0xe1   : > { %5130 = vmatmul.mubr.msk.bf16.vlgmr.msra.gmra.mrb[0].mxu1 %vm217_vm2, %v6726_v11 }
  0xe2   : > { %4936 = vmatmul.mubr.msk.bf16.gmra.mrb[4].mxu0 %vm217_vm2, %v6671_v46  ;;  %5150 = vmatpush3.bf16.msra.mxu1 %v6712_v3 }
  0xe3   : > { %4939 = vmatprep.mubr.msk.bf16.mxu0 %vm6336_vm1, %v6335_v1  ;;  %5133 = vmatprep.mubr.msk.bf16.mxu1 %vm6336_vm1, %v6335_v1 }
  0xe4   : > { %5171 = vmatprep.subr.bf16.mxu1 %v6335_v1 }
  0xe9   : > { %5134 = vmatmul.mubr.msk.bf16.gmra.mrb[4].mxu1 %vm217_vm2, %v6740_v28 }
  0xea   : > { %4940 = vmatmul.mubr.msk.bf16.gmra.mrb[8].mxu0 %vm217_vm2, %v6683_v53  ;;  %5137 = vmatprep.mubr.msk.bf16.mxu1 %vm6336_vm1, %v6335_v1 }
  0xeb   : > { %4943 = vmatprep.mubr.msk.bf16.mxu0 %vm6336_vm1, %v6335_v1 }
  0xf1   : > { %5138 = vmatmul.mubr.msk.bf16.gmra.mrb[8].mxu1 %vm217_vm2, %v6757_v38 }
  0xf2   : > { %4944 = vmatmul.mubr.msk.bf16.gmra.mrb[12].mxu0 %vm217_vm2, %v6694_v58  ;;  %5141 = vmatprep.mubr.msk.bf16.mxu1 %vm6336_vm1, %v6335_v1 }
  0xf3   : > { %4947 = vmatprep.mubr.msk.bf16.mxu0 %vm6336_vm1, %v6335_v1 }
  0xf9   : > { %5142 = vmatmul.mubr.msk.bf16.gmra.mrb[12].mxu1 %vm217_vm2, %v6776_v55 }
  0xfa   : > { %4948 = vmatmul.mubr.msk.bf16.gmra.mrb[16].mxu0 %vm217_vm2, %v6709_v0  ;;  %5145 = vmatprep.mubr.msk.bf16.mxu1 %vm6336_vm1, %v6335_v1 }
  0xfb   : > { %4953 = vmatprep.mubr.msk.bf16.mxu0 %vm6336_vm1, %v6335_v1 }
 0x101   : > { %5146 = vmatmul.mubr.msk.bf16.gmra.mrb[16].mxu1 %vm217_vm2, %v6796_v6 }
 0x102   : > { %4954 = vmatmul.mubr.msk.bf16.vlgmr.msra.gmra.mrb[0].mxu0 %vm217_vm2, %v6799_v7  ;;  %5151 = vmatprep.mubr.msk.bf16.mxu1 %vm6336_vm1, %v6335_v1 }
 0x103   : > { %4974 = vmatpush3.bf16.msra.mxu0 %v6804_v10  ;;  %4957 = vmatprep.mubr.msk.bf16.mxu0 %vm6336_vm1, %v6335_v1 }
 0x104   : > { %4995 = vmatprep.subr.bf16.mxu0 %v6335_v1 }
 0x109   : > { %5152 = vmatmul.mubr.msk.bf16.vlgmr.msra.gmra.mrb[0].mxu1 %vm217_vm2, %v6829_v40 }
 0x10a   : > { %4958 = vmatmul.mubr.msk.bf16.gmra.mrb[4].mxu0 %vm217_vm2, %v6824_v34  ;;  %5172 = vmatpush3.bf16.msra.mxu1 %v6804_v10 }
 0x10b   : > { %4961 = vmatprep.mubr.msk.bf16.mxu0 %vm6336_vm1, %v6335_v1  ;;  %5155 = vmatprep.mubr.msk.bf16.mxu1 %vm6336_vm1, %v6335_v1 }
 0x10c   : > { %5193 = vmatprep.subr.bf16.mxu1 %v6335_v1 }
 0x111   : > { %5156 = vmatmul.mubr.msk.bf16.gmra.mrb[4].mxu1 %vm217_vm2, %v6855_v60 }
 0x112   : > { %4962 = vmatmul.mubr.msk.bf16.gmra.mrb[8].mxu0 %vm217_vm2, %v6850_v56  ;;  %5159 = vmatprep.mubr.msk.bf16.mxu1 %vm6336_vm1, %v6335_v1 }
 0x113   : > { %4965 = vmatprep.mubr.msk.bf16.mxu0 %vm6336_vm1, %v6335_v1 }
 0x119   : > { %5160 = vmatmul.mubr.msk.bf16.gmra.mrb[8].mxu1 %vm217_vm2, %v6874_v17 }
 0x11a   : > { %4966 = vmatmul.mubr.msk.bf16.gmra.mrb[12].mxu0 %vm217_vm2, %v6871_v15  ;;  %5163 = vmatprep.mubr.msk.bf16.mxu1 %vm6336_vm1, %v6335_v1 }
 0x11b   : > { %4969 = vmatprep.mubr.msk.bf16.mxu0 %vm6336_vm1, %v6335_v1 }
 0x121   : > { %5164 = vmatmul.mubr.msk.bf16.gmra.mrb[12].mxu1 %vm217_vm2, %v6890_v45 }
 0x122   : > { %4970 = vmatmul.mubr.msk.bf16.gmra.mrb[16].mxu0 %vm217_vm2, %v6887_v44  ;;  %5167 = vmatprep.mubr.msk.bf16.mxu1 %vm6336_vm1, %v6335_v1 }
 0x123   : > { %4975 = vmatprep.mubr.msk.bf16.mxu0 %vm6336_vm1, %v6335_v1 }
 0x129   : > { %5168 = vmatmul.mubr.msk.bf16.gmra.mrb[16].mxu1 %vm217_vm2, %v6905_v57 }
 0x12a   : > { %4976 = vmatmul.mubr.msk.bf16.vlgmr.msra.gmra.mrb[0].mxu0 %vm217_vm2, %v6829_v40  ;;  %5173 = vmatprep.mubr.msk.bf16.mxu1 %vm6336_vm1, %v6335_v1 }
 0x12b   : > { %4996 = vmatpush3.bf16.msra.mxu0 %v6908_v59  ;;  %4979 = vmatprep.mubr.msk.bf16.mxu0 %vm6336_vm1, %v6335_v1 }
 0x12c   : > { %5215 = vmatprep.subr.bf16.mxu0 %v6335_v1 }
 0x131   : > { %5174 = vmatmul.mubr.msk.bf16.vlgmr.msra.gmra.mrb[0].mxu1 %vm217_vm2, %v6923_v36 }
 0x132   : > { %4980 = vmatmul.mubr.msk.bf16.gmra.mrb[4].mxu0 %vm217_vm2, %v6855_v60  ;;  %5194 = vmatpush3.bf16.msra.mxu1 %v6908_v59 }
 0x133   : > { %4983 = vmatprep.mubr.msk.bf16.mxu0 %vm6336_vm1, %v6335_v1  ;;  %5177 = vmatprep.mubr.msk.bf16.mxu1 %vm6336_vm1, %v6335_v1 }
 0x134   : > { %5413 = vmatprep.subr.bf16.mxu1 %v6335_v1 }
 0x139   : > { %5178 = vmatmul.mubr.msk.bf16.gmra.mrb[4].mxu1 %vm217_vm2, %v6937_v9 }
 0x13a   : > { %4984 = vmatmul.mubr.msk.bf16.gmra.mrb[8].mxu0 %vm217_vm2, %v6874_v17  ;;  %5181 = vmatprep.mubr.msk.bf16.mxu1 %vm6336_vm1, %v6335_v1 }
 0x13b   : > { %4987 = vmatprep.mubr.msk.bf16.mxu0 %vm6336_vm1, %v6335_v1 }
 0x141   : > { %5182 = vmatmul.mubr.msk.bf16.gmra.mrb[8].mxu1 %vm217_vm2, %v6949_v12 }
 0x142   : > { %4988 = vmatmul.mubr.msk.bf16.gmra.mrb[12].mxu0 %vm217_vm2, %v6890_v45  ;;  %5185 = vmatprep.mubr.msk.bf16.mxu1 %vm6336_vm1, %v6335_v1 }
 0x143   : > { %4991 = vmatprep.mubr.msk.bf16.mxu0 %vm6336_vm1, %v6335_v1 }
 0x149   : > { %5186 = vmatmul.mubr.msk.bf16.gmra.mrb[12].mxu1 %vm217_vm2, %v6964_v27 }
 0x14a   : > { %4992 = vmatmul.mubr.msk.bf16.gmra.mrb[16].mxu0 %vm217_vm2, %v6905_v57  ;;  %5189 = vmatprep.mubr.msk.bf16.mxu1 %vm6336_vm1, %v6335_v1 }
 0x14b   : > { %4997 = vmatprep.mubr.msk.bf16.mxu0 %vm6336_vm1, %v6335_v1 }
 0x151   : > { %5190 = vmatmul.mubr.msk.bf16.gmra.mrb[16].mxu1 %vm217_vm2, %v6960_v13 }
 0x152   : > { %4998 = vmatmul.mubr.msk.bf16.vlgmr.msra.gmra.mrb[0].mxu0 %vm217_vm2, %v6923_v36  ;;  %5195 = vmatprep.mubr.msk.bf16.mxu1 %vm6336_vm1, %v6335_v1 }
 0x153   : > { %5216 = vmatpush3.bf16.msra.mxu0 %v6370_v2  ;;  %5001 = vmatprep.mubr.msk.bf16.mxu0 %vm6336_vm1, %v6335_v1 }
 0x154   : > { %5237 = vmatprep.subr.bf16.mxu0 %v6335_v1 }
 0x159   : > { %5196 = vmatmul.mubr.msk.bf16.vlgmr.msra.gmra.mrb[0].mxu1 %vm217_vm2, %v6988_v49 }
 0x15a   : > { %5002 = vmatmul.mubr.msk.bf16.gmra.mrb[4].mxu0 %vm217_vm2, %v6937_v9  ;;  %5414 = vmatpush3.bf16.msra.mxu1 %v6370_v2  ;;  %v2323_v2 = vrot.slane %v6846_v54, 1 }
 0x15b   : > { %5005 = vmatprep.mubr.msk.bf16.mxu0 %vm6336_vm1, %v6335_v1  ;;  %5199 = vmatprep.mubr.msk.bf16.mxu1 %vm6336_vm1, %v6335_v1 }
 0x15c   : > { %5435 = vmatprep.subr.bf16.mxu1 %v6335_v1  ;;  %v7014_v33 = vsel %vm1397_vm4, %v2321_v62, %v2323_v2  ;;  %v7029_v54 = vsel %vm1397_vm4, %v2323_v2, %v7025_v42  ;;  %v7359_v2 = vld [vmem:[%s6390_s21 + $0x98] sm:$0xf] }
 0x161   : > { %5200 = vmatmul.mubr.msk.bf16.gmra.mrb[4].mxu1 %vm217_vm2, %v7002_v37 }
 0x162   : > { %5006 = vmatmul.mubr.msk.bf16.gmra.mrb[8].mxu0 %vm217_vm2, %v6949_v12  ;;  %5203 = vmatprep.mubr.msk.bf16.mxu1 %vm6336_vm1, %v6335_v1 }
 0x163   : > { %5009 = vmatprep.mubr.msk.bf16.mxu0 %vm6336_vm1, %v6335_v1 }
 0x169   : > { %5204 = vmatmul.mubr.msk.bf16.gmra.mrb[8].mxu1 %vm217_vm2, %v7014_v33 }
 0x16a   : > { %5010 = vmatmul.mubr.msk.bf16.gmra.mrb[12].mxu0 %vm217_vm2, %v6964_v27  ;;  %5207 = vmatprep.mubr.msk.bf16.mxu1 %vm6336_vm1, %v6335_v1 }
 0x16b   : > { %5013 = vmatprep.mubr.msk.bf16.mxu0 %vm6336_vm1, %v6335_v1 }
 0x171   : > { %5208 = vmatmul.mubr.msk.bf16.gmra.mrb[12].mxu1 %vm217_vm2, %v7029_v54 }
 0x172   : > { %5014 = vmatmul.mubr.msk.bf16.gmra.mrb[16].mxu0 %vm217_vm2, %v6960_v13  ;;  %5211 = vmatprep.mubr.msk.bf16.mxu1 %vm6336_vm1, %v6335_v1 }
 0x173   : > { %5217 = vmatprep.mubr.msk.bf16.mxu0 %vm6336_vm1, %v6335_v1 }
 0x179   : > { %5212 = vmatmul.mubr.msk.bf16.gmra.mrb[16].mxu1 %vm217_vm2, %v7025_v42 }
 0x17a   : > { %5218 = vmatmul.mubr.msk.bf16.vlgmr.msra.gmra.mrb[20].mxu0 %vm217_vm2, %v6580_v20  ;;  %5415 = vmatprep.mubr.msk.bf16.mxu1 %vm6336_vm1, %v6335_v1 }
 0x17b   : > { %5238 = vmatpush3.bf16.msra.mxu0 %v6396_v5  ;;  %5221 = vmatprep.mubr.msk.bf16.mxu0 %vm6336_vm1, %v6335_v1 }
 0x17c   : > { %5259 = vmatprep.subr.bf16.mxu0 %v6335_v1 }
 0x181   : > { %5416 = vmatmul.mubr.msk.bf16.vlgmr.msra.gmra.mrb[20].mxu1 %vm217_vm2, %v6657_v39 }
 0x182   : > { %5222 = vmatmul.mubr.msk.bf16.gmra.mrb[24].mxu0 %vm217_vm2, %v6596_v22  ;;  %5436 = vmatpush3.bf16.msra.mxu1 %v6396_v5 }
 0x183   : > { %5225 = vmatprep.mubr.msk.bf16.mxu0 %vm6336_vm1, %v6335_v1  ;;  %5419 = vmatprep.mubr.msk.bf16.mxu1 %vm6336_vm1, %v6335_v1 }
 0x184   : > { %5457 = vmatprep.subr.bf16.mxu1 %v6335_v1 }
 0x189   : > { %5420 = vmatmul.mubr.msk.bf16.gmra.mrb[24].mxu1 %vm217_vm2, %v6671_v46 }
 0x18a   : > { %5226 = vmatmul.mubr.msk.bf16.gmra.mrb[28].mxu0 %vm217_vm2, %v6610_v24  ;;  %5423 = vmatprep.mubr.msk.bf16.mxu1 %vm6336_vm1, %v6335_v1 }
 0x18b   : > { %5229 = vmatprep.mubr.msk.bf16.mxu0 %vm6336_vm1, %v6335_v1 }
 0x191   : > { %5424 = vmatmul.mubr.msk.bf16.gmra.mrb[28].mxu1 %vm217_vm2, %v6683_v53 }
 0x192   : > { %5230 = vmatmul.mubr.msk.bf16.gmra.mrb[32].mxu0 %vm217_vm2, %v6624_v26  ;;  %5427 = vmatprep.mubr.msk.bf16.mxu1 %vm6336_vm1, %v6335_v1 }
 0x193   : > { %5233 = vmatprep.mubr.msk.bf16.mxu0 %vm6336_vm1, %v6335_v1 }
 0x199   : > { %5428 = vmatmul.mubr.msk.bf16.gmra.mrb[32].mxu1 %vm217_vm2, %v6694_v58 }
 0x19a   : > { %5234 = vmatmul.mubr.msk.bf16.gmra.mrb[36].mxu0 %vm217_vm2, %v6640_v31  ;;  %5431 = vmatprep.mubr.msk.bf16.mxu1 %vm6336_vm1, %v6335_v1 }
 0x19b   : > { %5239 = vmatprep.mubr.msk.bf16.mxu0 %vm6336_vm1, %v6335_v1 }
 0x1a1   : > { %5432 = vmatmul.mubr.msk.bf16.gmra.mrb[36].mxu1 %vm217_vm2, %v6709_v0 }
 0x1a2   : > { %5240 = vmatmul.mubr.msk.bf16.vlgmr.msra.gmra.mrb[20].mxu0 %vm217_vm2, %v6562_v16  ;;  %5437 = vmatprep.mubr.msk.bf16.mxu1 %vm6336_vm1, %v6335_v1 }
 0x1a3   : > { %5260 = vmatpush3.bf16.msra.mxu0 %v6462_v41  ;;  %5243 = vmatprep.mubr.msk.bf16.mxu0 %vm6336_vm1, %v6335_v1 }
 0x1a4   : > { %5281 = vmatprep.subr.bf16.mxu0 %v6335_v1 }
 0x1a9   : > { %5438 = vmatmul.mubr.msk.bf16.vlgmr.msra.gmra.mrb[20].mxu1 %vm217_vm2, %v6580_v20 }
 0x1aa   : > { %5244 = vmatmul.mubr.msk.bf16.gmra.mrb[24].mxu0 %vm217_vm2, %v6577_v19  ;;  %5458 = vmatpush3.bf16.msra.mxu1 %v6462_v41 }
 0x1ab   : > { %5247 = vmatprep.mubr.msk.bf16.mxu0 %vm6336_vm1, %v6335_v1  ;;  %5441 = vmatprep.mubr.msk.bf16.mxu1 %vm6336_vm1, %v6335_v1 }
 0x1ac   : > { %5479 = vmatprep.subr.bf16.mxu1 %v6335_v1 }
 0x1b1   : > { %5442 = vmatmul.mubr.msk.bf16.gmra.mrb[24].mxu1 %vm217_vm2, %v6596_v22 }
 0x1b2   : > { %5248 = vmatmul.mubr.msk.bf16.gmra.mrb[28].mxu0 %vm217_vm2, %v6593_v21  ;;  %5445 = vmatprep.mubr.msk.bf16.mxu1 %vm6336_vm1, %v6335_v1 }
 0x1b3   : > { %5251 = vmatprep.mubr.msk.bf16.mxu0 %vm6336_vm1, %v6335_v1 }
 0x1b9   : > { %5446 = vmatmul.mubr.msk.bf16.gmra.mrb[28].mxu1 %vm217_vm2, %v6610_v24 }
 0x1ba   : > { %5252 = vmatmul.mubr.msk.bf16.gmra.mrb[32].mxu0 %vm217_vm2, %v6607_v23  ;;  %5449 = vmatprep.mubr.msk.bf16.mxu1 %vm6336_vm1, %v6335_v1 }
 0x1bb   : > { %5255 = vmatprep.mubr.msk.bf16.mxu0 %vm6336_vm1, %v6335_v1 }
 0x1c1   : > { %5450 = vmatmul.mubr.msk.bf16.gmra.mrb[32].mxu1 %vm217_vm2, %v6624_v26 }
 0x1c2   : > { %5256 = vmatmul.mubr.msk.bf16.gmra.mrb[36].mxu0 %vm217_vm2, %v6621_v25  ;;  %5453 = vmatprep.mubr.msk.bf16.mxu1 %vm6336_vm1, %v6335_v1 }
 0x1c3   : > { %5261 = vmatprep.mubr.msk.bf16.mxu0 %vm6336_vm1, %v6335_v1 }
 0x1c9   : > { %5454 = vmatmul.mubr.msk.bf16.gmra.mrb[36].mxu1 %vm217_vm2, %v6640_v31 }
 0x1ca   : > { %5262 = vmatmul.mubr.msk.bf16.vlgmr.msra.gmra.mrb[20].mxu0 %vm217_vm2, %v6657_v39  ;;  %5459 = vmatprep.mubr.msk.bf16.mxu1 %vm6336_vm1, %v6335_v1 }
 0x1cb   : > { %5282 = vmatpush3.bf16.msra.mxu0 %v6510_v50  ;;  %5265 = vmatprep.mubr.msk.bf16.mxu0 %vm6336_vm1, %v6335_v1 }
 0x1cc   : > { %5303 = vmatprep.subr.bf16.mxu0 %v6335_v1 }
 0x1d1   : > { %5460 = vmatmul.mubr.msk.bf16.vlgmr.msra.gmra.mrb[20].mxu1 %vm217_vm2, %v6726_v11 }
 0x1d2   : > { %5266 = vmatmul.mubr.msk.bf16.gmra.mrb[24].mxu0 %vm217_vm2, %v6671_v46  ;;  %5480 = vmatpush3.bf16.msra.mxu1 %v6510_v50 }
 0x1d3   : > { %5269 = vmatprep.mubr.msk.bf16.mxu0 %vm6336_vm1, %v6335_v1  ;;  %5463 = vmatprep.mubr.msk.bf16.mxu1 %vm6336_vm1, %v6335_v1 }
 0x1d4   : > { %5501 = vmatprep.subr.bf16.mxu1 %v6335_v1 }
 0x1d9   : > { %5464 = vmatmul.mubr.msk.bf16.gmra.mrb[24].mxu1 %vm217_vm2, %v6740_v28 }
 0x1da   : > { %5270 = vmatmul.mubr.msk.bf16.gmra.mrb[28].mxu0 %vm217_vm2, %v6683_v53  ;;  %5467 = vmatprep.mubr.msk.bf16.mxu1 %vm6336_vm1, %v6335_v1 }
 0x1db   : > { %5273 = vmatprep.mubr.msk.bf16.mxu0 %vm6336_vm1, %v6335_v1 }
 0x1e1   : > { %5468 = vmatmul.mubr.msk.bf16.gmra.mrb[28].mxu1 %vm217_vm2, %v6757_v38 }
 0x1e2   : > { %5274 = vmatmul.mubr.msk.bf16.gmra.mrb[32].mxu0 %vm217_vm2, %v6694_v58  ;;  %5471 = vmatprep.mubr.msk.bf16.mxu1 %vm6336_vm1, %v6335_v1 }
 0x1e3   : > { %5277 = vmatprep.mubr.msk.bf16.mxu0 %vm6336_vm1, %v6335_v1 }
 0x1e9   : > { %5472 = vmatmul.mubr.msk.bf16.gmra.mrb[32].mxu1 %vm217_vm2, %v6776_v55 }
 0x1ea   : > { %5278 = vmatmul.mubr.msk.bf16.gmra.mrb[36].mxu0 %vm217_vm2, %v6709_v0  ;;  %5475 = vmatprep.mubr.msk.bf16.mxu1 %vm6336_vm1, %v6335_v1 }
 0x1eb   : > { %5283 = vmatprep.mubr.msk.bf16.mxu0 %vm6336_vm1, %v6335_v1 }
 0x1f1   : > { %5476 = vmatmul.mubr.msk.bf16.gmra.mrb[36].mxu1 %vm217_vm2, %v6796_v6 }
 0x1f2   : > { %5284 = vmatmul.mubr.msk.bf16.vlgmr.msra.gmra.mrb[20].mxu0 %vm217_vm2, %v6799_v7  ;;  %5481 = vmatprep.mubr.msk.bf16.mxu1 %vm6336_vm1, %v6335_v1 }
 0x1f3   : > { %5304 = vmatpush3.bf16.msra.mxu0 %v6565_v18  ;;  %5287 = vmatprep.mubr.msk.bf16.mxu0 %vm6336_vm1, %v6335_v1 }
 0x1f4   : > { %5325 = vmatprep.subr.bf16.mxu0 %v6335_v1 }
 0x1f9   : > { %5482 = vmatmul.mubr.msk.bf16.vlgmr.msra.gmra.mrb[20].mxu1 %vm217_vm2, %v6829_v40 }
 0x1fa   : > { %5288 = vmatmul.mubr.msk.bf16.gmra.mrb[24].mxu0 %vm217_vm2, %v6824_v34  ;;  %5502 = vmatpush3.bf16.msra.mxu1 %v6565_v18 }
 0x1fb   : > { %5291 = vmatprep.mubr.msk.bf16.mxu0 %vm6336_vm1, %v6335_v1  ;;  %5485 = vmatprep.mubr.msk.bf16.mxu1 %vm6336_vm1, %v6335_v1 }
 0x1fc   : > { %5523 = vmatprep.subr.bf16.mxu1 %v6335_v1 }
 0x201   : > { %5486 = vmatmul.mubr.msk.bf16.gmra.mrb[24].mxu1 %vm217_vm2, %v6855_v60 }
 0x202   : > { %5292 = vmatmul.mubr.msk.bf16.gmra.mrb[28].mxu0 %vm217_vm2, %v6850_v56  ;;  %5489 = vmatprep.mubr.msk.bf16.mxu1 %vm6336_vm1, %v6335_v1 }
 0x203   : > { %5295 = vmatprep.mubr.msk.bf16.mxu0 %vm6336_vm1, %v6335_v1 }
 0x209   : > { %5490 = vmatmul.mubr.msk.bf16.gmra.mrb[28].mxu1 %vm217_vm2, %v6874_v17 }
 0x20a   : > { %5296 = vmatmul.mubr.msk.bf16.gmra.mrb[32].mxu0 %vm217_vm2, %v6871_v15  ;;  %5493 = vmatprep.mubr.msk.bf16.mxu1 %vm6336_vm1, %v6335_v1 }
 0x20b   : > { %5299 = vmatprep.mubr.msk.bf16.mxu0 %vm6336_vm1, %v6335_v1 }
 0x211   : > { %5494 = vmatmul.mubr.msk.bf16.gmra.mrb[32].mxu1 %vm217_vm2, %v6890_v45 }
 0x212   : > { %5300 = vmatmul.mubr.msk.bf16.gmra.mrb[36].mxu0 %vm217_vm2, %v6887_v44  ;;  %5497 = vmatprep.mubr.msk.bf16.mxu1 %vm6336_vm1, %v6335_v1 }
 0x213   : > { %5305 = vmatprep.mubr.msk.bf16.mxu0 %vm6336_vm1, %v6335_v1 }
 0x219   : > { %5498 = vmatmul.mubr.msk.bf16.gmra.mrb[36].mxu1 %vm217_vm2, %v6905_v57 }
 0x21a   : > { %5306 = vmatmul.mubr.msk.bf16.vlgmr.msra.gmra.mrb[20].mxu0 %vm217_vm2, %v6829_v40  ;;  %5503 = vmatprep.mubr.msk.bf16.mxu1 %vm6336_vm1, %v6335_v1 }
 0x21b   : > { %5326 = vmatpush3.bf16.msra.mxu0 %v6643_v32  ;;  %5309 = vmatprep.mubr.msk.bf16.mxu0 %vm6336_vm1, %v6335_v1 }
 0x21c   : > { %5347 = vmatprep.subr.bf16.mxu0 %v6335_v1 }
 0x221   : > { %5504 = vmatmul.mubr.msk.bf16.vlgmr.msra.gmra.mrb[20].mxu1 %vm217_vm2, %v6923_v36 }
 0x222   : > { %5310 = vmatmul.mubr.msk.bf16.gmra.mrb[24].mxu0 %vm217_vm2, %v6855_v60  ;;  %5524 = vmatpush3.bf16.msra.mxu1 %v6643_v32 }
 0x223   : > { %5313 = vmatprep.mubr.msk.bf16.mxu0 %vm6336_vm1, %v6335_v1  ;;  %5507 = vmatprep.mubr.msk.bf16.mxu1 %vm6336_vm1, %v6335_v1 }
 0x224   : > { %5545 = vmatprep.subr.bf16.mxu1 %v6335_v1 }
 0x225   : > { %v7234_v5 = vpop.f32.mrb[0].mxu0 }
 0x226   : > { %v4999_v41 = vpop.f32.mrb[1].mxu0 }
 0x227   : > { %v7237_v50 = vpop.f32.mrb[2].mxu0 }
 0x228   : > { %v5000_v16 = vpop.f32.mrb[3].mxu0 }
 0x229   : > { %5508 = vmatmul.mubr.msk.bf16.gmra.mrb[24].mxu1 %vm217_vm2, %v6937_v9 }
 0x22a   : > { %5314 = vmatmul.mubr.msk.bf16.gmra.mrb[28].mxu0 %vm217_vm2, %v6874_v17  ;;  %5511 = vmatprep.mubr.msk.bf16.mxu1 %vm6336_vm1, %v6335_v1 }
 0x22b   : > { %5317 = vmatprep.mubr.msk.bf16.mxu0 %vm6336_vm1, %v6335_v1 }
 0x22c   : > { %v7249_v19 = vpop.f32.mrb[0].mxu1 }
 0x22d   : > { %v7247_v18 = vpop.f32.mrb[4].mxu0  ;;  %v2423_v21 = vmax.f32 %v7234_v5, %v7249_v19  ;;  %v5197_v22 = vpop.f32.mrb[1].mxu1 }
 0x22e   : > { %v5003_v20 = vpop.f32.mrb[5].mxu0  ;;  %v7255_v24 = vpop.f32.mrb[2].mxu1 }
 0x22f   : > { %v7253_v23 = vpop.f32.mrb[6].mxu0  ;;  %v2424_v26 = vmax.f32 %v7237_v50, %v7255_v24  ;;  %v5198_v31 = vpop.f32.mrb[3].mxu1 }
 0x230   : > { %v5004_v25 = vpop.f32.mrb[7].mxu0  ;;  %v7375_v31 = vld [vmem:[%s6390_s21 + $0x9c] sm:$0xff]  }
 0x231   : > { %5512 = vmatmul.mubr.msk.bf16.gmra.mrb[28].mxu1 %vm217_vm2, %v6949_v12  ;;  %v7370_v25 = vld [vmem:[%s6390_s21 + $0x74] sm:$0xff]  }
 0x232   : > { %5318 = vmatmul.mubr.msk.bf16.gmra.mrb[32].mxu0 %vm217_vm2, %v6890_v45  ;;  %5515 = vmatprep.mubr.msk.bf16.mxu1 %vm6336_vm1, %v6335_v1 }
 0x233   : > { %5321 = vmatprep.mubr.msk.bf16.mxu0 %vm6336_vm1, %v6335_v1 }
 0x234   : > { %v7269_v39 = vpop.f32.mrb[4].mxu1 }
 0x235   : > { %v7267_v32 = vpop.f32.mrb[8].mxu0  ;;  %v2425_v53 = vmax.f32 %v7247_v18, %v7269_v39  ;;  %v5201_v58 = vpop.f32.mrb[5].mxu1 }
 0x236   : > { %v5007_v46 = vpop.f32.mrb[9].mxu0  ;;  %v7275_v11 = vpop.f32.mrb[6].mxu1 }
 0x237   : > { %v7273_v0 = vpop.f32.mrb[10].mxu0  ;;  %v2426_v38 = vmax.f32 %v7253_v23, %v7275_v11  ;;  %v5202_v55 = vpop.f32.mrb[7].mxu1 }
 0x238   : > { %v5008_v28 = vpop.f32.mrb[11].mxu0 }
 0x239   : > { %5516 = vmatmul.mubr.msk.bf16.gmra.mrb[32].mxu1 %vm217_vm2, %v6964_v27 }
 0x23a   : > { %5322 = vmatmul.mubr.msk.bf16.gmra.mrb[36].mxu0 %vm217_vm2, %v6905_v57  ;;  %5519 = vmatprep.mubr.msk.bf16.mxu1 %vm6336_vm1, %v6335_v1 }
 0x23b   : > { %5327 = vmatprep.mubr.msk.bf16.mxu0 %vm6336_vm1, %v6335_v1 }
 0x23c   : > { %v7289_v7 = vpop.f32.mrb[8].mxu1 }
 0x23d   : > { %v7287_v6 = vpop.f32.mrb[12].mxu0  ;;  %v2427_v40 = vmax.f32 %v7267_v32, %v7289_v7  ;;  %v5205_v56 = vpop.f32.mrb[9].mxu1 }
 0x23e   : > { %v5011_v34 = vpop.f32.mrb[13].mxu0  ;;  %v7295_v14 = vpop.f32.mrb[10].mxu1 }
 0x23f   : > { %v7293_v60 = vpop.f32.mrb[14].mxu0  ;;  %v2428_v17 = vmax.f32 %v7273_v0, %v7295_v14  ;;  %v5206_v44 = vpop.f32.mrb[11].mxu1  ;;  %v3113_v34 = vshll.u32 %v7375_v31, 16 }
 0x240   : > { %v5012_v15 = vpop.f32.mrb[15].mxu0  ;;  %v7386_v44 = vld [vmem:[%s6390_s21 + $0x7c] sm:$0xff]  }
 0x241   : > { %5520 = vmatmul.mubr.msk.bf16.gmra.mrb[36].mxu1 %vm217_vm2, %v6960_v13 }
 0x242   : > { %5328 = vmatmul.mubr.msk.bf16.vlgmr.msra.gmra.mrb[20].mxu0 %vm217_vm2, %v6923_v36  ;;  %5525 = vmatprep.mubr.msk.bf16.mxu1 %vm6336_vm1, %v6335_v1 }
 0x243   : > { %5348 = vmatpush3.bf16.msra.mxu0 %v6712_v3  ;;  %5331 = vmatprep.mubr.msk.bf16.mxu0 %vm6336_vm1, %v6335_v1 }
 0x244   : > { %5369 = vmatprep.subr.bf16.mxu0 %v6335_v1  ;;  %v7311_v47 = vpop.f32.mrb[12].mxu1 }
 0x245   : > { %v7308_v45 = vpop.f32.mrb[16].mxu0  ;;  %v2429_v52 = vmax.f32 %v7287_v6, %v7311_v47  ;;  %v5209_v57 = vpop.f32.mrb[13].mxu1 }
 0x246   : > { %v5015_v51 = vpop.f32.mrb[17].mxu0  ;;  %v7315_v4 = vpop.f32.mrb[14].mxu1  ;;  %v3115_v57 = vrot.slane %v3113_v34, 1 }
 0x247   : > { %v1494_v63 = vpop.f32.mrb[18].mxu0  ;;  %v2430_v36 = vmax.f32 %v7293_v60, %v7315_v4  ;;  %v5210_v43 = vpop.f32.mrb[15].mxu1 }
 0x248   : > { %v5016_v8 = vpop.f32.mrb[19].mxu0  ;;  %v7393_v63 = vld [vmem:[%s6390_s21 + $0xa4] sm:$0xff]   ;;  %v2959_v43 = vshll.u32 %v7386_v44, 16 }
 0x249   : > { %5526 = vmatmul.mubr.msk.bf16.vlgmr.msra.gmra.mrb[20].mxu1 %vm217_vm2, %v6988_v49  ;;  %v2955_v8 = vshrl.u32 %v7370_v25, 16 }
 0x24a   : > { %5332 = vmatmul.mubr.msk.bf16.gmra.mrb[24].mxu0 %vm217_vm2, %v6937_v9  ;;  %5546 = vmatpush3.bf16.msra.mxu1 %v6712_v3  ;;  %v4488_v3 = vld [vmem:[%s6390_s21 + $0x64] sm:$0xf] }
 0x24b   : > { %5335 = vmatprep.mubr.msk.bf16.mxu0 %vm6336_vm1, %v6335_v1  ;;  %5529 = vmatprep.mubr.msk.bf16.mxu1 %vm6336_vm1, %v6335_v1  ;;  %v4498_v49 = vcombine.low %v4488_v3, %v7343_v35 }
 0x24c   : > { %5567 = vmatprep.subr.bf16.mxu1 %v6335_v1  ;;  %v7329_v61 = vpop.f32.mrb[16].mxu1 }
 0x24d   : > { %v2431_v9 = vmax.f32 %v7308_v45, %v7329_v61  ;;  %v5213_v29 = vpop.f32.mrb[17].mxu1  ;;  %v2938_v62 = vshll.u32 %v4498_v49, 16  ;;  %v2936_v41 = vshrl.u32 %v4498_v49, 16  ;;  %v2961_v49 = vrot.slane %v2959_v43, 1 }
 0x24e   : > { %v2411_v48 = vpop.f32.mrb[18].mxu1 }
 0x24f   : > { %v5214_v30 = vpop.f32.mrb[19].mxu1  ;;  %v2940_v16 = vrot.slane %v2938_v62, 1  ;;  %v3117_v48 = vshrl.u32 %v7375_v31, 16  ;;  %v7407_v62 = vld [vmem:[%s6390_s21 + $0x84] sm:$0x1f]  }
 0x250   : > { %v3121_v30 = vshll.u32 %v7393_v63, 16 }
 0x251   : > { %5530 = vmatmul.mubr.msk.bf16.gmra.mrb[24].mxu1 %vm217_vm2, %v7002_v37  ;;  %v4508_v37 = vld [vmem:[%s6390_s21 + $0x94] sm:$0xf]  ;;  %v2941_v20 = vor.u32 %v2940_v16, %v2936_v41  ;;  %v7413_v16 = vld [vmem:[%s6390_s21 + $0xac] sm:$0xff]  }
 0x252   : > { %5336 = vmatmul.mubr.msk.bf16.gmra.mrb[28].mxu0 %vm217_vm2, %v6949_v12  ;;  %5533 = vmatprep.mubr.msk.bf16.mxu1 %vm6336_vm1, %v6335_v1  ;;  %v7353_v12 = vld [vmem:[%s6390_s21 + $0x6c] sm:$0xff]   ;;  %v3123_v41 = vrot.slane %v3121_v30, 1 }
 0x253   : > { %5339 = vmatprep.mubr.msk.bf16.mxu0 %vm6336_vm1, %v6335_v1 }
 0x259   : > { %5534 = vmatmul.mubr.msk.bf16.gmra.mrb[28].mxu1 %vm217_vm2, %v7014_v33  ;;  %v4518_v33 = vcombine.low %v4508_v37, %v7359_v2  ;;  %v3119_v37 = vor.u32 %v3117_v48, %v3115_v57 }
 0x25a   : > { %5340 = vmatmul.mubr.msk.bf16.gmra.mrb[32].mxu0 %vm217_vm2, %v6964_v27  ;;  %5537 = vmatprep.mubr.msk.bf16.mxu1 %vm6336_vm1, %v6335_v1  ;;  %v2943_v27 = vshll.u32 %v7353_v12, 16 }
 0x25b   : > { %5343 = vmatprep.mubr.msk.bf16.mxu0 %vm6336_vm1, %v6335_v1  ;;  %v3108_v46 = vshll.u32 %v4518_v33, 16  ;;  %v3106_v28 = vshrl.u32 %v4518_v33, 16  ;;  %v2963_v33 = vshrl.u32 %v7386_v44, 16 }
 0x25c   : > { %v2945_v22 = vrot.slane %v2943_v27, 1 }
 0x25d   : > { %v3110_v55 = vrot.slane %v3108_v46, 1  ;;  %v3129_v46 = vshll.u32 %v7413_v16, 16 }
 0x25e   : > { %v2946_v58 = vsel %vm459_vm3, %v2941_v20, %v2945_v22  ;;  %v2967_v20 = vshll.u32 %v7407_v62, 16 }
 0x25f   : > { %v3111_v51 = vor.u32 %v3110_v55, %v3106_v28  ;;  %v3131_v28 = vrot.slane %v3129_v46, 1  ;;  %v7429_v55 = vld [vmem:[%s6390_s21 + $0xb4] sm:$0x1f]  }
 0x260   : > { %v3141_v30 = vshrl.u32 %v7429_v55, 16 }
 0x261   : > { %5538 = vmatmul.mubr.msk.bf16.gmra.mrb[32].mxu1 %vm217_vm2, %v7029_v54  ;;  %v2951_v54 = vshll.u32 %v7370_v25, 16  ;;  %v3116_v29 = vsel %vm459_vm3, %v3111_v51, %v3115_v57  ;;  %v3137_v51 = vshll.u32 %v7429_v55, 16  ;;  %v2971_v57 = vshrl.u32 %v7407_v62, 16 }
 0x262   : > { %5344 = vmatmul.mubr.msk.bf16.gmra.mrb[36].mxu0 %vm217_vm2, %v6960_v13  ;;  %5541 = vmatprep.mubr.msk.bf16.mxu1 %vm6336_vm1, %v6335_v1  ;;  %v2947_v13 = vshrl.u32 %v7353_v12, 16 }
 0x263   : > { %5349 = vmatprep.mubr.msk.bf16.mxu0 %vm6336_vm1, %v6335_v1  ;;  %v2953_v15 = vrot.slane %v2951_v54, 1 }
 0x264   : > { %v2949_v56 = vor.u32 %v2947_v13, %v2945_v22  ;;  %v3124_v22 = vsel %vm459_vm3, %v3119_v37, %v3123_v41  ;;  %v2969_v13 = vrot.slane %v2967_v20, 1 }
 0x265   : > { %v2957_v3 = vor.u32 %v2955_v8, %v2953_v15  ;;  %v3139_v8 = vrot.slane %v3137_v51, 1 }
 0x266   : > { %v2973_v43 = vor.u32 %v2971_v57, %v2969_v13 }
 0x267   : > { %v2962_v27 = vsel %vm459_vm3, %v2957_v3, %v2961_v49  ;;  %v4528_v3 = vld [vmem:[%s6390_s21 + $0x64] sm:$0xe] }
 0x268   : > { %v4529_v37 = vcombine.low %v4528_v3, %v7343_v35  ;;  %v3247_v35 = vrot.slane %v7370_v25, 1  ;;  %v3251_v25 = vrot.slane %v7407_v62, 1 }
 0x269   : > { %5542 = vmatmul.mubr.msk.bf16.gmra.mrb[36].mxu1 %vm217_vm2, %v7025_v42  ;;  %v2954_v42 = vsel %vm459_vm3, %v2949_v56, %v2953_v15  ;;  %v3133_v15 = vshrl.u32 %v7413_v16, 16 }
 0x26a   : > { %5350 = vmatmul.mubr.msk.bf16.vlgmr.msra.gmra.mrb[20].mxu0 %vm217_vm2, %v2946_v58  ;;  %5547 = vmatprep.mubr.msk.bf16.mxu1 %vm6336_vm1, %v6335_v1  ;;  %v2965_v58 = vor.u32 %v2963_v33, %v2961_v49  ;;  %v3143_v49 = vor.u32 %v3141_v30, %v3139_v8 }
 0x26b   : > { %5370 = vmatpush3.bf16.msra.mxu0 %v6804_v10  ;;  %5353 = vmatprep.mubr.msk.bf16.mxu0 %vm6336_vm1, %v6335_v1 }
 0x26c   : > { %5391 = vmatprep.subr.bf16.mxu0 %v6335_v1  ;;  %v2970_v34 = vsel %vm459_vm3, %v2965_v58, %v2969_v13 }
 0x271   : > { %5548 = vmatmul.mubr.msk.bf16.vlgmr.msra.gmra.mrb[20].mxu1 %vm217_vm2, %v3116_v29 }
 0x272   : > { %5354 = vmatmul.mubr.msk.bf16.gmra.mrb[24].mxu0 %vm217_vm2, %v2954_v42  ;;  %5568 = vmatpush3.bf16.msra.mxu1 %v6804_v10  ;;  %v3125_v10 = vshrl.u32 %v7393_v63, 16  ;;  %v3135_v42 = vor.u32 %v3133_v15, %v3131_v28 }
 0x273   : > { %5357 = vmatprep.mubr.msk.bf16.mxu0 %vm6336_vm1, %v6335_v1  ;;  %5551 = vmatprep.mubr.msk.bf16.mxu1 %vm6336_vm1, %v6335_v1 }
 0x274   : > { %5589 = vmatprep.subr.bf16.mxu1 %v6335_v1  ;;  %v3127_v54 = vor.u32 %v3125_v10, %v3123_v41  ;;  %v3140_v48 = vsel %vm459_vm3, %v3135_v42, %v3139_v8  ;;  %v3244_v41 = vrot.slane %v4529_v37, 1  ;;  %v3993_v10 = vrot.slane %v7375_v31, 1 }
 0x275   : > { %v3997_v31 = vrot.slane %v7413_v16, 1 }
 0x276   : > { %v3132_v56 = vsel %vm459_vm3, %v3127_v54, %v3131_v28 }
 0x279   : > { %5552 = vmatmul.mubr.msk.bf16.gmra.mrb[24].mxu1 %vm217_vm2, %v3124_v22 }
 0x27a   : > { %5358 = vmatmul.mubr.msk.bf16.gmra.mrb[28].mxu0 %vm217_vm2, %v2962_v27  ;;  %5555 = vmatprep.mubr.msk.bf16.mxu1 %vm6336_vm1, %v6335_v1  ;;  %v3245_v27 = vrot.slane %v7353_v12, 1 }
 0x27b   : > { %5361 = vmatprep.mubr.msk.bf16.mxu0 %vm6336_vm1, %v6335_v1 }
 0x27c   : > { %v3246_v33 = vsel %vm1397_vm4, %v3244_v41, %v3245_v27 }
 0x281   : > { %5556 = vmatmul.mubr.msk.bf16.gmra.mrb[28].mxu1 %vm217_vm2, %v3132_v56 }
 0x282   : > { %5362 = vmatmul.mubr.msk.bf16.gmra.mrb[32].mxu0 %vm217_vm2, %v2970_v34  ;;  %5559 = vmatprep.mubr.msk.bf16.mxu1 %vm6336_vm1, %v6335_v1 }
 0x283   : > { %5365 = vmatprep.mubr.msk.bf16.mxu0 %vm6336_vm1, %v6335_v1 }
 0x289   : > { %5560 = vmatmul.mubr.msk.bf16.gmra.mrb[32].mxu1 %vm217_vm2, %v3140_v48 }
 0x28a   : > { %5366 = vmatmul.mubr.msk.bf16.gmra.mrb[36].mxu0 %vm217_vm2, %v2973_v43  ;;  %5563 = vmatprep.mubr.msk.bf16.mxu1 %vm6336_vm1, %v6335_v1 }
 0x28b   : > { %5371 = vmatprep.mubr.msk.bf16.mxu0 %vm6336_vm1, %v6335_v1 }
 0x291   : > { %5564 = vmatmul.mubr.msk.bf16.gmra.mrb[36].mxu1 %vm217_vm2, %v3143_v49 }
 0x292   : > { %5372 = vmatmul.mubr.msk.bf16.vlgmr.msra.gmra.mrb[20].mxu0 %vm217_vm2, %v3116_v29  ;;  %5569 = vmatprep.mubr.msk.bf16.mxu1 %vm6336_vm1, %v6335_v1  ;;  %v3248_v29 = vsel %vm1397_vm4, %v3245_v27, %v3247_v35 }
 0x293   : > { %5392 = vmatpush3.bf16.msra.mxu0 %v6908_v59  ;;  %5375 = vmatprep.mubr.msk.bf16.mxu0 %vm6336_vm1, %v6335_v1 }
 0x299   : > { %5570 = vmatmul.mubr.msk.bf16.vlgmr.msra.gmra.mrb[20].mxu1 %vm217_vm2, %v3246_v33 }
 0x29a   : > { %5376 = vmatmul.mubr.msk.bf16.gmra.mrb[24].mxu0 %vm217_vm2, %v3124_v22  ;;  %5590 = vmatpush3.bf16.msra.mxu1 %v6908_v59  ;;  %v3249_v59 = vrot.slane %v7386_v44, 1  ;;  %v4575_v44 = vld [vmem:[%s6390_s21 + $0x94] sm:$0xe] }
 0x29b   : > { %5379 = vmatprep.mubr.msk.bf16.mxu0 %vm6336_vm1, %v6335_v1  ;;  %5573 = vmatprep.mubr.msk.bf16.mxu1 %vm6336_vm1, %v6335_v1  ;;  %v4576_v22 = vcombine.low %v4575_v44, %v7359_v2  ;;  %v3995_v2 = vrot.slane %v7393_v63, 1  ;;  %v3999_v63 = vrot.slane %v7429_v55, 1 }
 0x29c   : > { %v3250_v12 = vsel %vm1397_vm4, %v3247_v35, %v3249_v59  ;;  %v3252_v20 = vsel %vm1397_vm4, %v3249_v59, %v3251_v25 }
 0x29d   : > { %v3992_v62 = vrot.slane %v4576_v22, 1  ;;  %v3996_v58 = vsel %vm1397_vm4, %v3993_v10, %v3995_v2  ;;  %v3998_v13 = vsel %vm1397_vm4, %v3995_v2, %v3997_v31  ;;  %v4000_v54 = vsel %vm1397_vm4, %v3997_v31, %v3999_v63 }
 0x29f   : > { %v3994_v46 = vsel %vm1397_vm4, %v3992_v62, %v3993_v10 }
 0x2a1   : > { %5574 = vmatmul.mubr.msk.bf16.gmra.mrb[24].mxu1 %vm217_vm2, %v3248_v29 }
 0x2a2   : > { %5380 = vmatmul.mubr.msk.bf16.gmra.mrb[28].mxu0 %vm217_vm2, %v3132_v56  ;;  %5577 = vmatprep.mubr.msk.bf16.mxu1 %vm6336_vm1, %v6335_v1 }
 0x2a3   : > { %5383 = vmatprep.mubr.msk.bf16.mxu0 %vm6336_vm1, %v6335_v1 }
 0x2a9   : > { %5578 = vmatmul.mubr.msk.bf16.gmra.mrb[28].mxu1 %vm217_vm2, %v3250_v12 }
 0x2aa   : > { %5384 = vmatmul.mubr.msk.bf16.gmra.mrb[32].mxu0 %vm217_vm2, %v3140_v48  ;;  %5581 = vmatprep.mubr.msk.bf16.mxu1 %vm6336_vm1, %v6335_v1 }
 0x2ab   : > { %5387 = vmatprep.mubr.msk.bf16.mxu0 %vm6336_vm1, %v6335_v1 }
 0x2b1   : > { %5582 = vmatmul.mubr.msk.bf16.gmra.mrb[32].mxu1 %vm217_vm2, %v3252_v20 }
 0x2b2   : > { %5388 = vmatmul.mubr.msk.bf16.gmra.mrb[36].mxu0 %vm217_vm2, %v3143_v49  ;;  %5585 = vmatprep.mubr.msk.bf16.mxu1 %vm6336_vm1, %v6335_v1 }
 0x2b3   : > { %5393 = vmatprep.mubr.msk.bf16.mxu0 %vm6336_vm1, %v6335_v1 }
 0x2b9   : > { %5586 = vmatmul.mubr.msk.bf16.gmra.mrb[36].mxu1 %vm217_vm2, %v3251_v25 }
 0x2ba   : > { %5394 = vmatmul.mubr.msk.bf16.vlgmr.msra.gmra.mrb[20].mxu0 %vm217_vm2, %v3246_v33  ;;  %5591 = vmatprep.mubr.msk.bf16.mxu1 %vm6336_vm1, %v6335_v1 }
 0x2bb   : > { %5397 = vmatprep.mubr.msk.bf16.mxu0 %vm6336_vm1, %v6335_v1 }
 0x2c1   : > { %5592 = vmatmul.mubr.msk.bf16.vlgmr.msra.gmra.mrb[20].mxu1 %vm217_vm2, %v3994_v46 }
 0x2c2   : > { %5398 = vmatmul.mubr.msk.bf16.gmra.mrb[24].mxu0 %vm217_vm2, %v3248_v29  ;;  %5595 = vmatprep.mubr.msk.bf16.mxu1 %vm6336_vm1, %v6335_v1 }
 0x2c3   : > { %5401 = vmatprep.mubr.msk.bf16.mxu0 %vm6336_vm1, %v6335_v1 }
 0x2c9   : > { %5596 = vmatmul.mubr.msk.bf16.gmra.mrb[24].mxu1 %vm217_vm2, %v3996_v58 }
 0x2ca   : > { %5402 = vmatmul.mubr.msk.bf16.gmra.mrb[28].mxu0 %vm217_vm2, %v3250_v12  ;;  %5599 = vmatprep.mubr.msk.bf16.mxu1 %vm6336_vm1, %v6335_v1 }
 0x2cb   : > { %5405 = vmatprep.mubr.msk.bf16.mxu0 %vm6336_vm1, %v6335_v1 }
 0x2d1   : > { %5600 = vmatmul.mubr.msk.bf16.gmra.mrb[28].mxu1 %vm217_vm2, %v3998_v13 }
 0x2d2   : > { %5406 = vmatmul.mubr.msk.bf16.gmra.mrb[32].mxu0 %vm217_vm2, %v3252_v20  ;;  %5603 = vmatprep.mubr.msk.bf16.mxu1 %vm6336_vm1, %v6335_v1 }
 0x2d3   : > { %5409 = vmatprep.mubr.msk.bf16.mxu0 %vm6336_vm1, %v6335_v1 }
 0x2d9   : > { %5604 = vmatmul.mubr.msk.bf16.gmra.mrb[32].mxu1 %vm217_vm2, %v4000_v54 }
 0x2da   : > { %5410 = vmatmul.mubr.msk.bf16.gmra.mrb[36].mxu0 %vm217_vm2, %v3251_v25  ;;  %5607 = vmatprep.mubr.msk.bf16.mxu1 %vm6336_vm1, %v6335_v1  ;;  %v7540_v1 = vld [vmem:[%s7601_s2] ss:$0 sm:$0xff] }
 0x2e1   : > { %5608 = vmatmul.mubr.msk.bf16.gmra.mrb[36].mxu1 %vm217_vm2, %v3999_v63 }
 0x38d   : > { %v3302_v16 = vpop.f32.mrb[20].mxu0 }
 0x38e   : > { %v3349_v28 = vmax.f32 %v2423_v21, %v3302_v16  ;;  %v5395_v34 = vpop.f32.mrb[21].mxu0 }
 0x38f   : > { %v3305_v56 = vpop.f32.mrb[22].mxu0 }
 0x390   : > { %v3350_v55 = vmax.f32 %v2424_v26, %v3305_v56  ;;  %v5396_v15 = vpop.f32.mrb[23].mxu0 }
 0x394   : > { %v4050_v57 = vpop.f32.mrb[20].mxu1 }
 0x395   : > { %v3310_v51 = vpop.f32.mrb[24].mxu0  ;;  %v4097_v19 = vmax.f32 %v3349_v28, %v4050_v57  ;;  %v5593_v21 = vpop.f32.mrb[21].mxu1 }
 0x396   : > { %v3351_v42 = vmax.f32 %v2425_v53, %v3310_v51  ;;  %v5399_v5 = vpop.f32.mrb[25].mxu0  ;;  %v4053_v43 = vpop.f32.mrb[22].mxu1 }
 0x397   : > { %v3313_v8 = vpop.f32.mrb[26].mxu0  ;;  %v4113_v26 = vadd.f32 %v7540_v1, %v4097_v19  ;;  %v4098_v48 = vmax.f32 %v3350_v55, %v4053_v43  ;;  %v5594_v30 = vpop.f32.mrb[23].mxu1 }
 0x398   : > { %v3352_v50 = vmax.f32 %v2426_v38, %v3313_v8  ;;  %v5400_v24 = vpop.f32.mrb[27].mxu0 }
 0x399   : > { %v4122_v3 = vmax.f32 %v4113_v26, 0.0  ;;  %v4114_v49 = vadd.f32 %v7540_v1, %v4098_v48 }
 0x39b   : > { %v4594_v18 = vpack.c.bf16 %v4122_v3, %v4122_v3  ;;  %v4123_v39 = vmax.f32 %v4114_v49, 0.0 }
 0x39c   : > { %v4058_v53 = vpop.f32.mrb[24].mxu1 }
 0x39d   : > { %v3318_v23 = vpop.f32.mrb[28].mxu0  ;;  %4169 = vst.msk [vmem:[%s7554_s16] sm:$0xf] %vm4168_vm5, %v4594_v18  ;;  %v4595_v37 = vpack.c.bf16 %v4123_v39, %v4123_v39  ;;  %v4099_v41 = vmax.f32 %v3351_v42, %v4058_v53  ;;  %v5597_v27 = vpop.f32.mrb[25].mxu1 }
 0x39e   : > { %v3353_v11 = vmax.f32 %v2427_v40, %v3318_v23  ;;  %v5403_v38 = vpop.f32.mrb[29].mxu0  ;;  %v4061_v35 = vpop.f32.mrb[26].mxu1 }
 0x39f   : > { %v3321_v33 = vpop.f32.mrb[30].mxu0  ;;  %4170 = vst.msk [vmem:[%s7554_s16 + $0x4] sm:$0xf] %vm4168_vm5, %v4595_v37  ;;  %v4115_v12 = vadd.f32 %v7540_v1, %v4099_v41  ;;  %v4100_v32 = vmax.f32 %v3352_v50, %v4061_v35  ;;  %v5598_v7 = vpop.f32.mrb[27].mxu1 }
 0x3a0   : > { %v3354_v29 = vmax.f32 %v2428_v17, %v3321_v33  ;;  %v5404_v59 = vpop.f32.mrb[31].mxu0 }
 0x3a1   : > { %v4124_v40 = vmax.f32 %v4115_v12, 0.0  ;;  %v4116_v25 = vadd.f32 %v7540_v1, %v4100_v32 }
 0x3a3   : > { %v4596_v20 = vpack.c.bf16 %v4124_v40, %v4124_v40  ;;  %v4125_v44 = vmax.f32 %v4116_v25, 0.0 }
 0x3a4   : > { %v4066_v62 = vpop.f32.mrb[28].mxu1 }
 0x3a5   : > { %v3326_v22 = vpop.f32.mrb[32].mxu0  ;;  %4171 = vst.msk [vmem:[%s7554_s16 + $0x8] sm:$0xf] %vm4168_vm5, %v4596_v20  ;;  %v4597_v17 = vpack.c.bf16 %v4125_v44, %v4125_v44  ;;  %v4101_v10 = vmax.f32 %v3353_v11, %v4066_v62  ;;  %v5601_v46 = vpop.f32.mrb[29].mxu1 }
 0x3a6   : > { %v3355_v0 = vmax.f32 %v2429_v52, %v3326_v22  ;;  %v5407_v14 = vpop.f32.mrb[33].mxu0  ;;  %v4069_v58 = vpop.f32.mrb[30].mxu1 }
 0x3a7   : > { %v3329_v2 = vpop.f32.mrb[34].mxu0  ;;  %4172 = vst.msk [vmem:[%s7554_s16 + $0xc] sm:$0xf] %vm4168_vm5, %v4597_v17  ;;  %v4117_v63 = vadd.f32 %v7540_v1, %v4101_v10  ;;  %v4102_v6 = vmax.f32 %v3354_v29, %v4069_v58  ;;  %v5602_v47 = vpop.f32.mrb[31].mxu1 }
 0x3a8   : > { %v3356_v31 = vmax.f32 %v2430_v36, %v3329_v2  ;;  %v5408_v13 = vpop.f32.mrb[35].mxu0 }
 0x3a9   : > { %v4126_v52 = vmax.f32 %v4117_v63, 0.0  ;;  %v4118_v54 = vadd.f32 %v7540_v1, %v4102_v6 }
 0x3ab   : > { %v4598_v16 = vpack.c.bf16 %v4126_v52, %v4126_v52  ;;  %v4127_v28 = vmax.f32 %v4118_v54, 0.0 }
 0x3ac   : > { %v4074_v56 = vpop.f32.mrb[32].mxu1 }
 0x3ad   : > { %v3334_v34 = vpop.f32.mrb[36].mxu0  ;;  %4173 = vst.msk [vmem:[%s7554_s16 + $0x10] sm:$0xf] %vm4168_vm5, %v4598_v16  ;;  %v4599_v36 = vpack.c.bf16 %v4127_v28, %v4127_v28  ;;  %v4103_v55 = vmax.f32 %v3355_v0, %v4074_v56  ;;  %v5605_v15 = vpop.f32.mrb[33].mxu1 }
 0x3ae   : > { %v3357_v60 = vmax.f32 %v2431_v9, %v3334_v34  ;;  %v5411_v4 = vpop.f32.mrb[37].mxu0  ;;  %v4077_v57 = vpop.f32.mrb[34].mxu1 }
 0x3af   : > { %v3337_v51 = vpop.f32.mrb[38].mxu0  ;;  %4174 = vst.msk [vmem:[%s7554_s16 + $0x14] sm:$0xf] %vm4168_vm5, %v4599_v36  ;;  %v4119_v5 = vadd.f32 %v7540_v1, %v4103_v55  ;;  %v4104_v19 = vmax.f32 %v3356_v31, %v4077_v57  ;;  %v5606_v21 = vpop.f32.mrb[35].mxu1 }
 0x3b0   : > { %v5412_v42 = vpop.f32.mrb[39].mxu0 }
 0x3b1   : > { %v4128_v45 = vmax.f32 %v4119_v5, 0.0  ;;  %v4120_v61 = vadd.f32 %v7540_v1, %v4104_v19 }
 0x3b3   : > { %v4600_v9 = vpack.c.bf16 %v4128_v45, %v4128_v45  ;;  %v4129_v8 = vmax.f32 %v4120_v61, 0.0 }
 0x3b4   : > { %v4082_v43 = vpop.f32.mrb[36].mxu1 }
 0x3b5   : > { %4175 = vst.msk [vmem:[%s7554_s16 + $0x18] sm:$0xf] %vm4168_vm5, %v4600_v9  ;;  %v4601_v50 = vpack.c.bf16 %v4129_v8, %v4129_v8  ;;  %v4105_v24 = vmax.f32 %v3357_v60, %v4082_v43  ;;  %v5609_v26 = vpop.f32.mrb[37].mxu1 }
 0x3b6   : > { %v4085_v48 = vpop.f32.mrb[38].mxu1 }
 0x3b7   : > { %4176 = vst.msk [vmem:[%s7554_s16 + $0x1c] sm:$0xf] %vm4168_vm5, %v4601_v50  ;;  %v4121_v30 = vadd.f32 %v7540_v1, %v4105_v24  ;;  %v5610_v3 = vpop.f32.mrb[39].mxu1 }
 0x3b9   : > { %v4130_v49 = vmax.f32 %v4121_v30, 0.0 }
 0x3bb   : > { %v4602_v18 = vpack.c.bf16 %v4130_v49, %v4130_v49 }
 0x3bd   : > { %4177 = vst.msk [vmem:[%s7554_s16 + $0x20] sm:$0xf] %vm4168_vm5, %v4602_v18 }
 0x3be PF: > { %s13_s12 = sadd.s32 1, %s6333_s12  }
 0x3bf   : > { %p10_p4 = scmp.ge.s32.totalorder %s13_s12, 4  }
 0x3c1   :  { %12 = sbr.rel (!%p10_p4) target bundleno = 1 (0x1), region = 73 }

// kernel: vggfc_forward.7
= control target key start
LH: loop header
LB: loop body
LE: loop exit
PB: predicated region body
PF: predicated region fallthrough
CT: control target
= control target key end

     0   :  { %v681_v0 = vmov 0.0   ;;  %vm682_vm0 = vmmov 0   ;;  %s895_s1 = inlined_call_operand.vmem [shape: bf16[128,128], index: 1, kind: input, shape index: {}]   ;;  %s896_s3 = inlined_call_operand.vmem [shape: bf16[128,128], index: 3, kind: input, shape index: {}]   ;;  %s897_s0 = inlined_call_operand.vmem [shape: bf16[8,128], index: 0, kind: input, shape index: {}]   ;;  %s898_s5 = inlined_call_operand.vmem [shape: bf16[128,128], index: 5, kind: input, shape index: {}]   ;;  %s899_s2 = inlined_call_operand.vmem [shape: f32[1,128], index: 2, kind: input, shape index: {}, may-alias: {2,4,6,8}]   ;;  %s900_s7 = inlined_call_operand.vmem [shape: bf16[128,128], index: 7, kind: input, shape index: {}]   ;;  %s901_s4 = inlined_call_operand.vmem [shape: f32[1,128], index: 4, kind: input, shape index: {}, may-alias: {2,4,6,8}]   ;;  %s902_s6 = inlined_call_operand.vmem [shape: f32[1,128], index: 6, kind: input, shape index: {}, may-alias: {2,4,6,8}]   ;;  %s903_s9 = inlined_call_operand.vmem [shape: f32[8,128], index: 9, kind: output, shape index: {0}]   ;;  %s904_s8 = inlined_call_operand.vmem [shape: f32[1,128], index: 8, kind: input, shape index: {}, may-alias: {2,4,6,8}]   ;;  %s905_s10 = inlined_call_operand.vmem [shape: f32[8,128], index: 10, kind: output, shape index: {1}]  }
   0x1   :  { %567 = vmatprep.subr.bf16.mxu0 %v681_v0  ;;  %v649_v1 = vld [vmem:[%s895_s1] sm:$0xff]   ;;  %583 = vmatprep.mubr.msk.bf16.mxu0 %vm682_vm0, %v681_v0  ;;  %v650_v2 = vld [vmem:[%s895_s1 + $0x8] sm:$0xff]   ;;  %v651_v3 = vld [vmem:[%s895_s1 + $0x10] sm:$0xff]  }
   0x2   :  { %587 = vmatprep.subr.bf16.mxu1 %v681_v0  ;;  %603 = vmatprep.mubr.msk.bf16.mxu1 %vm682_vm0, %v681_v0  ;;  %v657_v4 = vld [vmem:[%s896_s3] sm:$0xff]   ;;  %v652_v5 = vld [vmem:[%s895_s1 + $0x18] sm:$0xff]   ;;  %v658_v6 = vld [vmem:[%s896_s3 + $0x8] sm:$0xff]  }
   0x3   :  { %568 = vmatpush3.bf16.msra.mxu0 %v649_v1  ;;  %588 = vmatpush3.bf16.msra.mxu1 %v657_v4  ;;  %v653_v7 = vld [vmem:[%s895_s1 + $0x20] sm:$0xff]   ;;  %v659_v8 = vld [vmem:[%s896_s3 + $0x10] sm:$0xff]   ;;  %v654_v9 = vld [vmem:[%s895_s1 + $0x28] sm:$0xff]  }
   0x4   :  { %569 = vmatprep.subr.bf16.mxu0 %v681_v0  ;;  %589 = vmatprep.subr.bf16.mxu1 %v681_v0  ;;  %v660_v10 = vld [vmem:[%s896_s3 + $0x18] sm:$0xff]   ;;  %v655_v11 = vld [vmem:[%s895_s1 + $0x30] sm:$0xff]   ;;  %v661_v12 = vld [vmem:[%s896_s3 + $0x20] sm:$0xff]  }
   0x5   :  { %v656_v13 = vld [vmem:[%s895_s1 + $0x38] sm:$0xff]   ;;  %v662_v14 = vld [vmem:[%s896_s3 + $0x28] sm:$0xff]   ;;  %v35_v15 = vld [vmem:[%s897_s0] sm:$0xf] }
   0x6   :  { %v663_v16 = vld [vmem:[%s896_s3 + $0x30] sm:$0xff]   ;;  %v664_v17 = vld [vmem:[%s896_s3 + $0x38] sm:$0xff]   ;;  %v665_v18 = vld [vmem:[%s898_s5] sm:$0xff]  }
   0x7   :  { %570 = vmatpush3.bf16.msra.mxu0 %v650_v2  ;;  %590 = vmatpush3.bf16.msra.mxu1 %v658_v6  ;;  %v666_v19 = vld [vmem:[%s898_s5 + $0x8] sm:$0xff]   ;;  %v667_v20 = vld [vmem:[%s898_s5 + $0x10] sm:$0xff]   ;;  %v668_v21 = vld [vmem:[%s898_s5 + $0x18] sm:$0xff]  }
   0x8   :  { %571 = vmatprep.subr.bf16.mxu0 %v681_v0  ;;  %591 = vmatprep.subr.bf16.mxu1 %v681_v0  ;;  %v669_v22 = vld [vmem:[%s898_s5 + $0x20] sm:$0xff]   ;;  %v670_v23 = vld [vmem:[%s898_s5 + $0x28] sm:$0xff]   ;;  %v671_v32 = vld [vmem:[%s898_s5 + $0x30] sm:$0xff]  }
   0x9   :  { %v495_v24 = vld [vmem:[%s899_s2] ss:$0 sm:$0xff]  ;;  %v672_v33 = vld [vmem:[%s898_s5 + $0x38] sm:$0xff]   ;;  %v674_v35 = vld [vmem:[%s900_s7 + $0x8] sm:$0xff]  }
   0xa   :  { %v673_v34 = vld [vmem:[%s900_s7] sm:$0xff]   ;;  %v675_v36 = vld [vmem:[%s900_s7 + $0x10] sm:$0xff]   ;;  %v676_v37 = vld [vmem:[%s900_s7 + $0x18] sm:$0xff]  }
   0xb   :  { %572 = vmatpush3.bf16.msra.mxu0 %v651_v3  ;;  %592 = vmatpush3.bf16.msra.mxu1 %v659_v8  ;;  %v677_v38 = vld [vmem:[%s900_s7 + $0x20] sm:$0xff]   ;;  %v678_v39 = vld [vmem:[%s900_s7 + $0x28] sm:$0xff]   ;;  %v679_v40 = vld [vmem:[%s900_s7 + $0x30] sm:$0xff]  }
   0xc   :  { %573 = vmatprep.subr.bf16.mxu0 %v681_v0  ;;  %593 = vmatprep.subr.bf16.mxu1 %v681_v0  ;;  %v504_v41 = vld [vmem:[%s901_s4] ss:$0 sm:$0xff]  ;;  %v680_v49 = vld [vmem:[%s900_s7 + $0x38] sm:$0xff]  }
   0xd   :  { %v513_v50 = vld [vmem:[%s902_s6] ss:$0 sm:$0xff] }
   0xe   :  { %v522_v57 = vld [vmem:[%s904_s8] ss:$0 sm:$0xff] }
   0xf   :  { %574 = vmatpush3.bf16.msra.mxu0 %v652_v5  ;;  %594 = vmatpush3.bf16.msra.mxu1 %v660_v10 }
  0x10   :  { %575 = vmatprep.subr.bf16.mxu0 %v681_v0  ;;  %595 = vmatprep.subr.bf16.mxu1 %v681_v0 }
  0x13   :  { %576 = vmatpush3.bf16.msra.mxu0 %v653_v7  ;;  %596 = vmatpush3.bf16.msra.mxu1 %v661_v12 }
  0x14   :  { %577 = vmatprep.subr.bf16.mxu0 %v681_v0  ;;  %597 = vmatprep.subr.bf16.mxu1 %v681_v0 }
  0x17   :  { %578 = vmatpush3.bf16.msra.mxu0 %v654_v9  ;;  %598 = vmatpush3.bf16.msra.mxu1 %v662_v14 }
  0x18   :  { %579 = vmatprep.subr.bf16.mxu0 %v681_v0  ;;  %599 = vmatprep.subr.bf16.mxu1 %v681_v0 }
  0x1b   :  { %580 = vmatpush3.bf16.msra.mxu0 %v655_v11  ;;  %600 = vmatpush3.bf16.msra.mxu1 %v663_v16 }
  0x1c   :  { %581 = vmatprep.subr.bf16.mxu0 %v681_v0  ;;  %601 = vmatprep.subr.bf16.mxu1 %v681_v0 }
  0x1f   :  { %582 = vmatpush3.bf16.msra.mxu0 %v656_v13  ;;  %602 = vmatpush3.bf16.msra.mxu1 %v664_v17 }
  0x20   :  { %607 = vmatprep.subr.bf16.mxu0 %v681_v0  ;;  %627 = vmatprep.subr.bf16.mxu1 %v681_v0 }
  0x22   :  { %584 = vmatmul.mubr.bf16.vlgmr.msra.gmra.mrb[0].mxu0 %v35_v15 }
  0x23   :  { %623 = vmatprep.mubr.msk.bf16.mxu0 %vm682_vm0, %v681_v0  ;;  %608 = vmatpush3.bf16.msra.mxu0 %v665_v18 }
  0x24   :  { %609 = vmatprep.subr.bf16.mxu0 %v681_v0 }
  0x27   :  { %610 = vmatpush3.bf16.msra.mxu0 %v666_v19 }
  0x28   :  { %611 = vmatprep.subr.bf16.mxu0 %v681_v0 }
  0x2b   :  { %612 = vmatpush3.bf16.msra.mxu0 %v667_v20 }
  0x2c   :  { %613 = vmatprep.subr.bf16.mxu0 %v681_v0 }
  0x2f   :  { %614 = vmatpush3.bf16.msra.mxu0 %v668_v21 }
  0x30   :  { %615 = vmatprep.subr.bf16.mxu0 %v681_v0 }
  0x33   :  { %616 = vmatpush3.bf16.msra.mxu0 %v669_v22 }
  0x34   :  { %617 = vmatprep.subr.bf16.mxu0 %v681_v0 }
  0x37   :  { %618 = vmatpush3.bf16.msra.mxu0 %v670_v23 }
  0x38   :  { %619 = vmatprep.subr.bf16.mxu0 %v681_v0 }
  0x3b   :  { %620 = vmatpush3.bf16.msra.mxu0 %v671_v32 }
  0x3c   :  { %621 = vmatprep.subr.bf16.mxu0 %v681_v0 }
  0x3f   :  { %622 = vmatpush3.bf16.msra.mxu0 %v672_v33 }
  0xf5   :  { %v141_v25 = vpop.f32.mrb[0].mxu0 }
  0xf6   :  { %v142_v26 = vadd.f32 %v495_v24, %v141_v25  ;;  %v585_v27 = vpop.f32.mrb[1].mxu0 }
  0xf7   :  { %v144_v28 = vpop.f32.mrb[2].mxu0 }
  0xf8   :  { %v147_v29 = vmax.f32 %v142_v26, 0.0  ;;  %v586_v30 = vpop.f32.mrb[3].mxu0 }
  0xfa   :  { %v148_v31 = vpack.c.bf16 %v147_v29, %v147_v29 }
  0xfc   :  { %604 = vmatmul.mubr.bf16.vlgmr.msra.gmra.mrb[0].mxu1 %v148_v31 }
  0xfd   :  { %643 = vmatprep.mubr.msk.bf16.mxu1 %vm682_vm0, %v681_v0  ;;  %628 = vmatpush3.bf16.msra.mxu1 %v673_v34 }
  0xfe   :  { %629 = vmatprep.subr.bf16.mxu1 %v681_v0 }
 0x101   :  { %630 = vmatpush3.bf16.msra.mxu1 %v674_v35 }
 0x102   :  { %631 = vmatprep.subr.bf16.mxu1 %v681_v0 }
 0x105   :  { %632 = vmatpush3.bf16.msra.mxu1 %v675_v36 }
 0x106   :  { %633 = vmatprep.subr.bf16.mxu1 %v681_v0 }
 0x109   :  { %634 = vmatpush3.bf16.msra.mxu1 %v676_v37 }
 0x10a   :  { %635 = vmatprep.subr.bf16.mxu1 %v681_v0 }
 0x10d   :  { %636 = vmatpush3.bf16.msra.mxu1 %v677_v38 }
 0x10e   :  { %637 = vmatprep.subr.bf16.mxu1 %v681_v0 }
 0x111   :  { %638 = vmatpush3.bf16.msra.mxu1 %v678_v39 }
 0x112   :  { %639 = vmatprep.subr.bf16.mxu1 %v681_v0 }
 0x115   :  { %640 = vmatpush3.bf16.msra.mxu1 %v679_v40 }
 0x116   :  { %641 = vmatprep.subr.bf16.mxu1 %v681_v0 }
 0x119   :  { %642 = vmatpush3.bf16.msra.mxu1 %v680_v49 }
 0x1cf   :  { %v254_v42 = vpop.f32.mrb[0].mxu1 }
 0x1d0   :  { %v255_v43 = vadd.f32 %v504_v41, %v254_v42  ;;  %v605_v44 = vpop.f32.mrb[1].mxu1 }
 0x1d1   :  { %v257_v45 = vpop.f32.mrb[2].mxu1 }
 0x1d2   :  { %v260_v46 = vmax.f32 %v255_v43, 0.0  ;;  %v606_v47 = vpop.f32.mrb[3].mxu1 }
 0x1d4   :  { %v261_v48 = vpack.c.bf16 %v260_v46, %v260_v46 }
 0x1d6   :  { %624 = vmatmul.mubr.bf16.vlgmr.msra.gmra.mrb[4].mxu0 %v261_v48 }
 0x2a9   :  { %v367_v51 = vpop.f32.mrb[4].mxu0 }
 0x2aa   :  { %v368_v52 = vadd.f32 %v513_v50, %v367_v51  ;;  %v625_v53 = vpop.f32.mrb[5].mxu0 }
 0x2ab   :  { %v370_v54 = vpop.f32.mrb[6].mxu0 }
 0x2ac   :  { %v373_v55 = vpack.c.bf16 %v368_v52, %v368_v52  ;;  %485 = vst [vmem:[%s903_s9] sm:$0xff] %v368_v52  ;;  %v626_v56 = vpop.f32.mrb[7].mxu0 }
 0x2ae   :  { %644 = vmatmul.mubr.bf16.vlgmr.msra.gmra.mrb[4].mxu1 %v373_v55 }
 0x381   :  { %v479_v58 = vpop.f32.mrb[4].mxu1 }
 0x382   :  { %v480_v59 = vadd.f32 %v522_v57, %v479_v58  ;;  %v645_v60 = vpop.f32.mrb[5].mxu1 }
 0x383   :  { %v482_v61 = vpop.f32.mrb[6].mxu1 }
 0x384   :  { %486 = vst [vmem:[%s905_s10] sm:$0xff] %v480_v59  ;;  %v646_v62 = vpop.f32.mrb[7].mxu1 }

</bundles_post_ra>
